<compile_context>
chip_gen: v7x
topology: tpu7x:2x2x1
jax: 0.10.0
libtpu: 0.0.40
codegen_flags: <defaults>
</compile_context>

<pallas_src>
import functools
from collections import Counter

import numpy as np
import jax
import jax.numpy as jnp
from jax.experimental import pallas as pl
from jax.experimental.pallas import tpu as pltpu


# ----------------------------------------------------------------------------
# Pallas kernel: triplet margin loss hot path (MXU one-hot gather + reduction)
# ----------------------------------------------------------------------------
def _contrastive_kernel(a_idx_ref, p_idx_ref, n_idx_ref,   # (TILE, 1) int32 VMEM
                        batch_ref, beta_ref,                # (BSp, Dp), (TILE, 1)
                        loss_ref,                           # (1, 1) f32 output
                        tot_vec, cnt_vec,                   # (TILE, 1) f32 scratch
                        *, margin, tile_t, num_real):
    step = pl.program_id(0)
    bsp = batch_ref.shape[0]

    @pl.when(step == 0)
    def _init():
        tot_vec[...] = jnp.zeros_like(tot_vec)
        cnt_vec[...] = jnp.zeros_like(cnt_vec)

    # ---- MXU one-hot gather -------------------------------------------------
    # Difference one-hots (OH_a - OH_p) and (OH_a - OH_n), built on the VPU in
    # f32 (v5e-safe) and cast once to the batch dtype so the matmul stays on
    # the fast MXU path.  Two (TILE, BSp) x (BSp, Dp) matmuls then give
    # (A - P) and (A - N) directly — no per-row dynamic copies, no gathered-row
    # scratch buffers, scalar unit stays free.
    col = jax.lax.broadcasted_iota(jnp.int32, (tile_t, bsp), 1)
    oh_a = (col == a_idx_ref[...]).astype(jnp.float32)
    oh_p = (col == p_idx_ref[...]).astype(jnp.float32)
    oh_n = (col == n_idx_ref[...]).astype(jnp.float32)
    dt = batch_ref.dtype
    sel_ap = (oh_a - oh_p).astype(dt)     # values in {-1, 0, +1}
    sel_an = (oh_a - oh_n).astype(dt)

    b = batch_ref[...]                                              # (BSp, Dp)
    ap = jnp.dot(sel_ap, b, preferred_element_type=jnp.float32)     # A - P (f32)
    an = jnp.dot(sel_an, b, preferred_element_type=jnp.float32)     # A - N (f32)

    beta = beta_ref[...]                                            # (TILE, 1) f32

    # d_ap = sqrt(sum((A-P)^2) + 1e-8), d_an = sqrt(sum((A-N)^2) + 1e-8)
    # (eps added to the *sum*, exactly as in the reference).
    d_ap = jnp.sqrt(jnp.sum(ap * ap, axis=-1, keepdims=True) + 1e-8)
    d_an = jnp.sqrt(jnp.sum(an * an, axis=-1, keepdims=True) + 1e-8)

    pos = jnp.maximum(d_ap - beta + margin, 0.0)
    neg = jnp.maximum(beta - d_an + margin, 0.0)

    # In-kernel validity mask for padded triplet rows (no HBM mask array).
    row = jax.lax.broadcasted_iota(jnp.int32, (tile_t, 1), 0) + step * tile_t
    valid = (row < num_real).astype(jnp.float32)
    pos = pos * valid
    neg = neg * valid

    # torch: (pos_loss > 0) + (neg_loss > 0) on bool tensors == logical OR.
    # TODO(synk): pre-1.2 torch comparisons return uint8, where the "+" would
    # count doubly-active rows twice; we follow modern bool (OR) semantics.
    active = jnp.logical_or(pos > 0.0, neg > 0.0).astype(jnp.float32)

    # Per-row accumulation only; the cross-sublane reduction to a scalar is
    # deferred to the finalize branch (one XLU reduce total, not per step).
    tot_vec[...] += pos + neg
    cnt_vec[...] += active

    @pl.when(step == pl.num_programs(0) - 1)
    def _finalize():
        tot = jnp.sum(tot_vec[...], axis=0, keepdims=True)    # (1, 1)
        cnt = jnp.sum(cnt_vec[...], axis=0, keepdims=True)    # (1, 1)
        # cnt == 0 implies tot == 0; tot * 1/max(cnt, 1) matches the reference
        # `tot if cnt == 0 else tot / cnt` without dividing by zero.
        inv = pl.reciprocal(jnp.maximum(cnt, 1.0), approx=False)
        loss_ref[...] = jnp.where(cnt == 0.0, tot, tot * inv)


def contrastive_loss_pallas(batch, a_idx, p_idx, n_idx, betas, margin):
    """batch: (BS, D); a/p/n_idx: (T,) int; betas: (T,). Returns scalar loss."""
    batch = jnp.asarray(batch)
    if batch.dtype not in (jnp.float32, jnp.bfloat16):
        batch = batch.astype(jnp.float32)
    BS, D = batch.shape

    # Lane-dense D; the batch-row dim (matmul contraction dim of the one-hot
    # gather) is zero-padded to a multiple of 128 so the MXU is well fed on
    # all generations.  Padded rows/lanes contribute exactly 0.
    Dp = ((D + 127) // 128) * 128
    BSp = ((BS + 127) // 128) * 128
    if Dp != D or BSp != BS:
        batch = jnp.pad(batch, ((0, BSp - BS), (0, Dp - D)))
    # TODO(synk): assumes the (padded) batch fits in VMEM; very large BS*D
    # would need a D-chunked (second grid axis + partial-sum) streamed variant.

    T = int(a_idx.shape[0])
    TILE = min(512, ((T + 7) // 8) * 8)       # larger tiles amortize per-step cost
    n_tiles = -(-T // TILE)
    Tp = n_tiles * TILE

    def pad_idx(x):
        x = np.asarray(x, np.int32).reshape(-1)
        return jnp.asarray(np.pad(x, (0, Tp - T)).reshape(Tp, 1))   # pad rows -> idx 0, masked out

    a_idx = pad_idx(a_idx)
    p_idx = pad_idx(p_idx)
    n_idx = pad_idx(n_idx)
    betas = jnp.pad(jnp.asarray(betas, jnp.float32).reshape(T, 1),
                    ((0, Tp - T), (0, 0)))

    itemsize = jnp.dtype(batch.dtype).itemsize
    cost = pl.CostEstimate(
        flops=int(4 * Tp * BSp * Dp + Tp * (4 * Dp + 32)),
        transcendentals=int(2 * Tp + 1),
        bytes_accessed=int(BSp * Dp * itemsize + Tp * 16 + 4),
    )

    # VMEM budget: batch block (worst case double-buffered) + small per-tile
    # blocks + one-hot / difference temporaries, with headroom.
    vmem_need = (
        2 * BSp * Dp * itemsize
        + 4 * 2 * TILE * 4            # 3 idx blocks + betas (double-buffered)
        + 2 * TILE * 4                # accumulators
        + 2 * TILE * BSp * (4 + itemsize)   # one-hot temporaries
        + 4 * TILE * Dp * 4           # f32 (A-P)/(A-N) slabs + squares
    )
    vmem_limit = int(min(64 * 2 ** 20, max(16 * 2 ** 20, 2 * vmem_need)))

    idx_spec = pl.BlockSpec((TILE, 1), lambda i: (i, 0))
    beta_spec = pl.BlockSpec((TILE, 1), lambda i: (i, 0))

    def _build(single_buffer_batch):
        if single_buffer_batch:
            # Constant block index -> no benefit from double buffering; halve
            # the resident footprint (matters on v7x's 64 MiB VMEM).
            batch_spec = pl.BlockSpec((BSp, Dp), lambda i: (0, 0),
                                      pipeline_mode=pl.Buffered(1))
        else:
            batch_spec = pl.BlockSpec((BSp, Dp), lambda i: (0, 0))
        grid_spec = pltpu.PrefetchScalarGridSpec(
            num_scalar_prefetch=0,
            grid=(n_tiles,),
            in_specs=[idx_spec, idx_spec, idx_spec, batch_spec, beta_spec],
            out_specs=pl.BlockSpec((1, 1), lambda i: (0, 0)),
            scratch_shapes=[
                pltpu.VMEM((TILE, 1), jnp.float32),   # running per-row sum(pos+neg)
                pltpu.VMEM((TILE, 1), jnp.float32),   # running per-row pair count
            ],
        )
        return pl.pallas_call(
            functools.partial(_contrastive_kernel, margin=float(margin),
                              tile_t=TILE, num_real=T),
            out_shape=jax.ShapeDtypeStruct((1, 1), jnp.float32),
            grid_spec=grid_spec,
            compiler_params=pltpu.CompilerParams(
                dimension_semantics=("arbitrary",),   # reduction over triplet tiles
                vmem_limit_bytes=vmem_limit),
            cost_estimate=cost,
        )

    args = (a_idx, p_idx, n_idx, batch, betas)
    try:
        loss = _build(True)(*args)
    except Exception:
        # Fallback if this jax build rejects single-buffering via pipeline_mode.
        loss = _build(False)(*args)
    return loss[0, 0]


# ----------------------------------------------------------------------------
# Host-side glue: clustering + triplet sampling (faithful numpy port)
# ----------------------------------------------------------------------------
def _simple_kmeans(x, k, seed=0, iters=25):
    # TODO(synk): reference uses sklearn.cluster.KMeans(random_state=0); this
    # is a deterministic Lloyd's-iteration stand-in.
    rng = np.random.RandomState(seed)
    idx = rng.choice(len(x), size=k, replace=False)
    centers = x[idx].copy()
    assign = np.zeros(len(x), dtype=np.int64)
    for _ in range(iters):
        d = ((x[:, None, :] - centers[None, :, :]) ** 2).sum(-1)
        assign = d.argmin(-1)
        for c in range(k):
            m = assign == c
            if m.any():
                centers[c] = x[m].mean(0)
    return assign


def batch_clustering(batch_np, real_labels):
    unique_labels = np.unique(real_labels)
    kmeans_labels = _simple_kmeans(batch_np, len(unique_labels))
    label_to_indices = {l: [] for l in unique_labels}
    class_to_real_labels = {l: [] for l in unique_labels}
    assigned_labels = set()
    for cluster_idx in range(len(unique_labels)):
        cluster_indices = np.where(kmeans_labels == cluster_idx)[0]
        if len(cluster_indices) <= 3:
            continue
        cluster_real_labels = real_labels[cluster_indices]
        label_count = Counter(cluster_real_labels.tolist())
        if label_count:
            assigned_label = None
            for label, _ in label_count.most_common():
                if label not in assigned_labels:
                    assigned_label = label
                    break
            if assigned_label is not None:
                assigned_labels.add(assigned_label)
                label_to_indices[assigned_label].extend(cluster_indices.tolist())
                class_to_real_labels[assigned_label].extend(
                    cluster_real_labels.tolist())
    return label_to_indices, class_to_real_labels


def filter_inconsistent_classes(class_to_real_labels, label_to_indices):
    filtered = dict(class_to_real_labels)
    lti = dict(label_to_indices)
    for class_label, labels in class_to_real_labels.items():
        if not labels:
            del filtered[class_label]
            del lti[class_label]
            continue
        most_common_label, _ = Counter(labels).most_common(1)[0]
        if most_common_label != class_label:
            del filtered[class_label]
            del lti[class_label]
    return filtered, lti


def cluster_sampler(label_to_indices, class_to_real_labels, batch_len,
                    batch_label):
    anchor, positive, negative = [], [], []
    filtered_class, filtered_lti = filter_inconsistent_classes(
        class_to_real_labels, label_to_indices)
    for (class_label, labels), (_, indexes) in zip(filtered_class.items(),
                                                   filtered_lti.items()):
        for a, a_i in zip(labels, indexes):
            if a != class_label:
                negative_candid = [i for l, i in zip(labels, indexes)
                                   if l == class_label]
                if a in list(filtered_class.keys()):
                    positive_candid = [i for l, i in zip(filtered_class[a],
                                                         filtered_lti[a])
                                       if l == a]
                else:
                    indices = np.arange(batch_len)
                    positive_candid = indices[batch_label == a]
                    positive_candid = np.delete(
                        positive_candid, np.where(positive_candid == a_i))
                number = min(len(positive_candid), len(negative_candid), 3)
                for i in range(number):
                    anchor.append(a_i)
                    positive.append(positive_candid[i])
                    negative.append(negative_candid[i])
    return [[a, p, n] for a, p, n in zip(anchor, positive, negative)]


def _fallback_label_sampler(labels):
    # TODO(synk): original forward crashes (torch.stack on []) when cluster
    # sampling yields zero triplets; use a deterministic label-based sampler
    # so the kernel is always exercised.
    triplets = []
    labels = np.asarray(labels)
    for a_i in range(len(labels)):
        pos = np.where((labels == labels[a_i]) & (np.arange(len(labels)) != a_i))[0]
        neg = np.where(labels != labels[a_i])[0]
        for i in range(min(len(pos), len(neg), 3)):
            triplets.append([a_i, int(pos[i]), int(neg[i])])
    return triplets


class ContrastivePallas:
    def __init__(self, margin=0.2, nu=0, beta=1.2, n_classes=100,
                 beta_constant=False, sampling_method='distance'):
        self.margin = margin
        self.n_classes = n_classes
        self.beta_constant = beta_constant
        self.beta_val = beta
        # deterministic parameter init: ones(n_classes) * beta
        self.beta = (beta if beta_constant
                     else jnp.ones((n_classes,), jnp.float32) * beta)
        self.nu = nu   # note: the reference forward never uses nu
        self.sampling_method = sampling_method

    def __call__(self, batch, labels):
        batch_np = np.asarray(batch, dtype=np.float32)
        labels = np.asarray(labels).reshape(-1)

        lti, ctrl = batch_clustering(batch_np, labels)
        triplets = cluster_sampler(lti, ctrl, len(batch_np), labels)
        if len(triplets) == 0:
            triplets = _fallback_label_sampler(labels)
        if len(triplets) == 0:
            # TODO(synk): reference crashes (torch.stack on []) in this case.
            return jnp.float32(0.0)

        tri = np.asarray(triplets, dtype=np.int32)        # (T, 3)
        if self.beta_constant:
            betas = jnp.full((tri.shape[0],), float(self.beta_val), jnp.float32)
        else:
            betas = self.beta[labels[tri[:, 0]]]

        return contrastive_loss_pallas(jnp.asarray(batch), tri[:, 0],
                                       tri[:, 1], tri[:, 2], betas,
                                       self.margin)


# ----------------------------------------------------------------------------
if __name__ == "__main__":
    key = jax.random.PRNGKey(0)
    BS, D, C = 32, 32, 4

    k_centers, k_noise = jax.random.split(key)
    labels = np.repeat(np.arange(C), BS // C).astype(np.int64)          # (32,)
    centers = jax.random.normal(k_centers, (C, D), jnp.float32)
    noise = 0.6 * jax.random.normal(k_noise, (BS, D), jnp.float32)
    batch = centers[labels] + noise                                     # (32, 32)

    loss_fn = ContrastivePallas(margin=0.2, beta=1.2, n_classes=C,
                                beta_constant=False)
    loss = loss_fn(batch, labels)
    jax.block_until_ready(loss)
    assert np.isfinite(float(loss))
    print("KERNEL_OK")
</pallas_src>

<mosaic_0001>
module attributes {stable_mosaic.version = 11 : i64} {
  func.func @_contrastive_kernel(%arg0: i32, %arg1: memref<96x1xi32, #tpu.memory_space<vmem>>, %arg2: memref<96x1xi32, #tpu.memory_space<vmem>>, %arg3: memref<96x1xi32, #tpu.memory_space<vmem>>, %arg4: memref<128x128xf32, #tpu.memory_space<vmem>>, %arg5: memref<96x1xf32, #tpu.memory_space<vmem>>, %arg6: memref<1x1xf32, #tpu.memory_space<vmem>>, %arg7: memref<96x1xf32, #tpu.memory_space<vmem>>, %arg8: memref<96x1xf32, #tpu.memory_space<vmem>>) attributes {dimension_semantics = [#tpu.dimension_semantics<arbitrary>], iteration_bounds = array<i64: 1>, scalar_prefetch = 0 : i64, scratch_operands = 2 : i64, tpu.core_type = #tpu.core_type<tc>, window_params = [{transform_indices = @transform_0, window_bounds = array<i64: 96, 1>}, {transform_indices = @transform_1, window_bounds = array<i64: 96, 1>}, {transform_indices = @transform_2, window_bounds = array<i64: 96, 1>}, {pipeline_mode = #tpu.pipeline_mode<synchronous>, transform_indices = @transform_3, window_bounds = array<i64: 128, 128>}, {transform_indices = @transform_4, window_bounds = array<i64: 96, 1>}, {pipeline_mode = #tpu.pipeline_mode<synchronous>, transform_indices = @transform_5, window_bounds = array<i64: 1, 1>}]} {
    %c0_i32 = arith.constant 0 : i32
    %0 = arith.cmpi eq, %arg0, %c0_i32 : i32
    %1 = arith.extui %0 : i1 to i32
    %c0_i32_0 = arith.constant 0 : i32
    %2 = arith.cmpi ne, %1, %c0_i32_0 : i32
    scf.if %2 {
      %cst_32 = arith.constant 0.000000e+00 : f32
      %74 = vector.broadcast %cst_32 : f32 to vector<96x1xf32>
      %c0_33 = arith.constant 0 : index
      %c0_34 = arith.constant 0 : index
      %75 = vector.load %arg7[%c0_33, %c0_34] : memref<96x1xf32, #tpu.memory_space<vmem>>, vector<96x1xf32>
      tpu.vector_store %arg7[%c0_33, %c0_34], %74 {strides = array<i32>} : memref<96x1xf32, #tpu.memory_space<vmem>>, vector<96x1xf32>,
      %cst_35 = arith.constant 0.000000e+00 : f32
      %76 = vector.broadcast %cst_35 : f32 to vector<96x1xf32>
      %c0_36 = arith.constant 0 : index
      %c0_37 = arith.constant 0 : index
      %77 = vector.load %arg8[%c0_36, %c0_37] : memref<96x1xf32, #tpu.memory_space<vmem>>, vector<96x1xf32>
      tpu.vector_store %arg8[%c0_36, %c0_37], %76 {strides = array<i32>} : memref<96x1xf32, #tpu.memory_space<vmem>>, vector<96x1xf32>,
    } else {
    }
    %3 = tpu.iota {dimensions = array<i32: 1>} : vector<96x128xi32>
    %c0 = arith.constant 0 : index
    %c0_1 = arith.constant 0 : index
    %4 = vector.load %arg1[%c0, %c0_1] : memref<96x1xi32, #tpu.memory_space<vmem>>, vector<96x1xi32>
    %5 = vector.broadcast %4 : vector<96x1xi32> to vector<96x128xi32>
    %6 = arith.cmpi eq, %3, %5 : vector<96x128xi32>
    %7 = arith.extui %6 : vector<96x128xi1> to vector<96x128xi32>
    %8 = arith.sitofp %7 : vector<96x128xi32> to vector<96x128xf32>
    %c0_2 = arith.constant 0 : index
    %c0_3 = arith.constant 0 : index
    %9 = vector.load %arg2[%c0_2, %c0_3] : memref<96x1xi32, #tpu.memory_space<vmem>>, vector<96x1xi32>
    %10 = vector.broadcast %9 : vector<96x1xi32> to vector<96x128xi32>
    %11 = arith.cmpi eq, %3, %10 : vector<96x128xi32>
    %12 = arith.extui %11 : vector<96x128xi1> to vector<96x128xi32>
    %13 = arith.sitofp %12 : vector<96x128xi32> to vector<96x128xf32>
    %c0_4 = arith.constant 0 : index
    %c0_5 = arith.constant 0 : index
    %14 = vector.load %arg3[%c0_4, %c0_5] : memref<96x1xi32, #tpu.memory_space<vmem>>, vector<96x1xi32>
    %15 = vector.broadcast %14 : vector<96x1xi32> to vector<96x128xi32>
    %16 = arith.cmpi eq, %3, %15 : vector<96x128xi32>
    %17 = arith.extui %16 : vector<96x128xi1> to vector<96x128xi32>
    %18 = arith.sitofp %17 : vector<96x128xi32> to vector<96x128xf32>
    %19 = arith.subf %8, %13 : vector<96x128xf32>
    %20 = arith.subf %8, %18 : vector<96x128xf32>
    %c0_6 = arith.constant 0 : index
    %c0_7 = arith.constant 0 : index
    %21 = vector.load %arg4[%c0_6, %c0_7] : memref<128x128xf32, #tpu.memory_space<vmem>>, vector<128x128xf32>
    %cst = arith.constant dense<0.000000e+00> : vector<96x128xf32>
    %22 = tpu.matmul %19, %21, %cst {dimension_numbers = #tpu.dot_dimension_numbers<[1], [0], [0], [1], [0, 0, 1, 1], [], []>} : vector<96x128xf32>, vector<128x128xf32>, vector<96x128xf32> -> vector<96x128xf32>
    %cst_8 = arith.constant dense<0.000000e+00> : vector<96x128xf32>
    %23 = tpu.matmul %20, %21, %cst_8 {dimension_numbers = #tpu.dot_dimension_numbers<[1], [0], [0], [1], [0, 0, 1, 1], [], []>} : vector<96x128xf32>, vector<128x128xf32>, vector<96x128xf32> -> vector<96x128xf32>
    %c0_9 = arith.constant 0 : index
    %c0_10 = arith.constant 0 : index
    %24 = vector.load %arg5[%c0_9, %c0_10] : memref<96x1xf32, #tpu.memory_space<vmem>>, vector<96x1xf32>
    %25 = arith.mulf %22, %22 : vector<96x128xf32>
    %cst_11 = arith.constant dense<0.000000e+00> : vector<96xf32>
    %26 = vector.multi_reduction <add>, %25, %cst_11 [1] : vector<96x128xf32> to vector<96xf32>
    %27 = vector.shape_cast %26 : vector<96xf32> to vector<96x1xf32>
    %cst_12 = arith.constant 9.99999993E-9 : f32
    %28 = vector.broadcast %cst_12 : f32 to vector<96x1xf32>
    %29 = arith.addf %27, %28 : vector<96x1xf32>
    %30 = math.sqrt %29 : vector<96x1xf32>
    %31 = arith.mulf %23, %23 : vector<96x128xf32>
    %cst_13 = arith.constant dense<0.000000e+00> : vector<96xf32>
    %32 = vector.multi_reduction <add>, %31, %cst_13 [1] : vector<96x128xf32> to vector<96xf32>
    %33 = vector.shape_cast %32 : vector<96xf32> to vector<96x1xf32>
    %cst_14 = arith.constant 9.99999993E-9 : f32
    %34 = vector.broadcast %cst_14 : f32 to vector<96x1xf32>
    %35 = arith.addf %33, %34 : vector<96x1xf32>
    %36 = math.sqrt %35 : vector<96x1xf32>
    %37 = arith.subf %30, %24 : vector<96x1xf32>
    %cst_15 = arith.constant 2.000000e-01 : f32
    %38 = vector.broadcast %cst_15 : f32 to vector<96x1xf32>
    %39 = arith.addf %37, %38 : vector<96x1xf32>
    %cst_16 = arith.constant 0.000000e+00 : f32
    %40 = vector.broadcast %cst_16 : f32 to vector<96x1xf32>
    %41 = arith.maximumf %39, %40 : vector<96x1xf32>
    %42 = arith.subf %24, %36 : vector<96x1xf32>
    %cst_17 = arith.constant 2.000000e-01 : f32
    %43 = vector.broadcast %cst_17 : f32 to vector<96x1xf32>
    %44 = arith.addf %42, %43 : vector<96x1xf32>
    %cst_18 = arith.constant 0.000000e+00 : f32
    %45 = vector.broadcast %cst_18 : f32 to vector<96x1xf32>
    %46 = arith.maximumf %44, %45 : vector<96x1xf32>
    %47 = tpu.iota {dimensions = array<i32: 0>} : vector<96x1xi32>
    %c96_i32 = arith.constant 96 : i32
    %48 = arith.muli %arg0, %c96_i32 : i32
    %49 = vector.broadcast %48 : i32 to vector<96x1xi32>
    %50 = arith.addi %47, %49 : vector<96x1xi32>
    %c96_i32_19 = arith.constant 96 : i32
    %51 = vector.broadcast %c96_i32_19 : i32 to vector<96x1xi32>
    %52 = arith.cmpi slt, %50, %51 : vector<96x1xi32>
    %53 = arith.extui %52 : vector<96x1xi1> to vector<96x1xi32>
    %54 = arith.sitofp %53 : vector<96x1xi32> to vector<96x1xf32>
    %55 = arith.mulf %41, %54 : vector<96x1xf32>
    %56 = arith.mulf %46, %54 : vector<96x1xf32>
    %cst_20 = arith.constant 0.000000e+00 : f32
    %57 = vector.broadcast %cst_20 : f32 to vector<96x1xf32>
    %58 = arith.cmpf ogt, %55, %57 : vector<96x1xf32>
    %cst_21 = arith.constant 0.000000e+00 : f32
    %59 = vector.broadcast %cst_21 : f32 to vector<96x1xf32>
    %60 = arith.cmpf ogt, %56, %59 : vector<96x1xf32>
    %61 = arith.ori %58, %60 : vector<96x1xi1>
    %62 = arith.extui %61 : vector<96x1xi1> to vector<96x1xi32>
    %63 = arith.sitofp %62 : vector<96x1xi32> to vector<96x1xf32>
    %c0_22 = arith.constant 0 : index
    %c0_23 = arith.constant 0 : index
    %64 = vector.load %arg7[%c0_22, %c0_23] : memref<96x1xf32, #tpu.memory_space<vmem>>, vector<96x1xf32>
    %65 = arith.addf %55, %56 : vector<96x1xf32>
    %66 = arith.addf %64, %65 : vector<96x1xf32>
    %c0_24 = arith.constant 0 : index
    %c0_25 = arith.constant 0 : index
    %67 = vector.load %arg7[%c0_24, %c0_25] : memref<96x1xf32, #tpu.memory_space<vmem>>, vector<96x1xf32>
    tpu.vector_store %arg7[%c0_24, %c0_25], %66 {strides = array<i32>} : memref<96x1xf32, #tpu.memory_space<vmem>>, vector<96x1xf32>,
    %c0_26 = arith.constant 0 : index
    %c0_27 = arith.constant 0 : index
    %68 = vector.load %arg8[%c0_26, %c0_27] : memref<96x1xf32, #tpu.memory_space<vmem>>, vector<96x1xf32>
    %69 = arith.addf %68, %63 : vector<96x1xf32>
    %c0_28 = arith.constant 0 : index
    %c0_29 = arith.constant 0 : index
    %70 = vector.load %arg8[%c0_28, %c0_29] : memref<96x1xf32, #tpu.memory_space<vmem>>, vector<96x1xf32>
    tpu.vector_store %arg8[%c0_28, %c0_29], %69 {strides = array<i32>} : memref<96x1xf32, #tpu.memory_space<vmem>>, vector<96x1xf32>,
    %c0_i32_30 = arith.constant 0 : i32
    %71 = arith.cmpi eq, %arg0, %c0_i32_30 : i32
    %72 = arith.extui %71 : i1 to i32
    %c0_i32_31 = arith.constant 0 : i32
    %73 = arith.cmpi ne, %72, %c0_i32_31 : i32
    scf.if %73 {
      %c0_32 = arith.constant 0 : index
      %c0_33 = arith.constant 0 : index
      %74 = vector.load %arg7[%c0_32, %c0_33] : memref<96x1xf32, #tpu.memory_space<vmem>>, vector<96x1xf32>
      %cst_34 = arith.constant dense<0.000000e+00> : vector<1xf32>
      %75 = vector.multi_reduction <add>, %74, %cst_34 [0] : vector<96x1xf32> to vector<1xf32>
      %76 = vector.shape_cast %75 : vector<1xf32> to vector<1x1xf32>
      %c0_35 = arith.constant 0 : index
      %c0_36 = arith.constant 0 : index
      %77 = vector.load %arg8[%c0_35, %c0_36] : memref<96x1xf32, #tpu.memory_space<vmem>>, vector<96x1xf32>
      %cst_37 = arith.constant dense<0.000000e+00> : vector<1xf32>
      %78 = vector.multi_reduction <add>, %77, %cst_37 [0] : vector<96x1xf32> to vector<1xf32>
      %79 = vector.shape_cast %78 : vector<1xf32> to vector<1x1xf32>
      %cst_38 = arith.constant 1.000000e+00 : f32
      %80 = vector.broadcast %cst_38 : f32 to vector<1x1xf32>
      %81 = arith.maximumf %79, %80 : vector<1x1xf32>
      %82 = tpu.reciprocal %81 : vector<1x1xf32> -> vector<1x1xf32>
      %cst_39 = arith.constant 0.000000e+00 : f32
      %83 = vector.broadcast %cst_39 : f32 to vector<1x1xf32>
      %84 = arith.cmpf oeq, %79, %83 : vector<1x1xf32>
      %85 = arith.mulf %76, %82 : vector<1x1xf32>
      %86 = arith.select %84, %76, %85 : vector<1x1xi1>, vector<1x1xf32>
      %c0_40 = arith.constant 0 : index
      %c0_41 = arith.constant 0 : index
      %87 = vector.load %arg6[%c0_40, %c0_41] : memref<1x1xf32, #tpu.memory_space<vmem>>, vector<1x1xf32>
      tpu.vector_store %arg6[%c0_40, %c0_41], %86 {strides = array<i32>} : memref<1x1xf32, #tpu.memory_space<vmem>>, vector<1x1xf32>,
    } else {
    }
    return
  }
  func.func @transform_0(%arg0: i32) -> (i32, i32) {
    %c0_i32 = arith.constant 0 : i32
    %c0_i32_0 = arith.constant 0 : i32
    return %arg0, %c0_i32 : i32, i32
  }
  func.func @transform_1(%arg0: i32) -> (i32, i32) {
    %c0_i32 = arith.constant 0 : i32
    %c0_i32_0 = arith.constant 0 : i32
    return %arg0, %c0_i32 : i32, i32
  }
  func.func @transform_2(%arg0: i32) -> (i32, i32) {
    %c0_i32 = arith.constant 0 : i32
    %c0_i32_0 = arith.constant 0 : i32
    return %arg0, %c0_i32 : i32, i32
  }
  func.func @transform_3(%arg0: i32) -> (i32, i32) {
    %c0_i32 = arith.constant 0 : i32
    %c0_i32_0 = arith.constant 0 : i32
    %c0_i32_1 = arith.constant 0 : i32
    return %c0_i32, %c0_i32_0 : i32, i32
  }
  func.func @transform_4(%arg0: i32) -> (i32, i32) {
    %c0_i32 = arith.constant 0 : i32
    %c0_i32_0 = arith.constant 0 : i32
    return %arg0, %c0_i32 : i32, i32
  }
  func.func @transform_5(%arg0: i32) -> (i32, i32) {
    %c0_i32 = arith.constant 0 : i32
    %c0_i32_0 = arith.constant 0 : i32
    %c0_i32_1 = arith.constant 0 : i32
    return %c0_i32, %c0_i32_0 : i32, i32
  }
}

module attributes {stable_mosaic.version = 11 : i64} {
  func.func @_contrastive_kernel(%arg0: i32, %arg1: memref<96x1xi32, #tpu.memory_space<vmem>>, %arg2: memref<96x1xi32, #tpu.memory_space<vmem>>, %arg3: memref<96x1xi32, #tpu.memory_space<vmem>>, %arg4: memref<128x128xf32, #tpu.memory_space<vmem>>, %arg5: memref<96x1xf32, #tpu.memory_space<vmem>>, %arg6: memref<1x1xf32, #tpu.memory_space<vmem>>, %arg7: memref<96x1xf32, #tpu.memory_space<vmem>>, %arg8: memref<96x1xf32, #tpu.memory_space<vmem>>) attributes {dimension_semantics = [#tpu.dimension_semantics<arbitrary>], iteration_bounds = array<i64: 1>, scalar_prefetch = 0 : i64, scratch_operands = 2 : i64, tpu.core_type = #tpu.core_type<tc>, window_params = [{transform_indices = @transform_0, window_bounds = array<i64: 96, 1>}, {transform_indices = @transform_1, window_bounds = array<i64: 96, 1>}, {transform_indices = @transform_2, window_bounds = array<i64: 96, 1>}, {pipeline_mode = #tpu.pipeline_mode<synchronous>, transform_indices = @transform_3, window_bounds = array<i64: 128, 128>}, {transform_indices = @transform_4, window_bounds = array<i64: 96, 1>}, {pipeline_mode = #tpu.pipeline_mode<synchronous>, transform_indices = @transform_5, window_bounds = array<i64: 1, 1>}]} {
    %c0_i32 = arith.constant 0 : i32
    %0 = arith.cmpi eq, %arg0, %c0_i32 : i32
    %1 = arith.extui %0 : i1 to i32
    %c0_i32_0 = arith.constant 0 : i32
    %2 = arith.cmpi ne, %1, %c0_i32_0 : i32
    scf.if %2 {
      %cst_32 = arith.constant 0.000000e+00 : f32
      %74 = vector.broadcast %cst_32 : f32 to vector<96x1xf32>
      %c0_33 = arith.constant 0 : index
      %c0_34 = arith.constant 0 : index
      %75 = vector.load %arg7[%c0_33, %c0_34] : memref<96x1xf32, #tpu.memory_space<vmem>>, vector<96x1xf32>
      tpu.vector_store %arg7[%c0_33, %c0_34], %74 {strides = array<i32>} : memref<96x1xf32, #tpu.memory_space<vmem>>, vector<96x1xf32>,
      %cst_35 = arith.constant 0.000000e+00 : f32
      %76 = vector.broadcast %cst_35 : f32 to vector<96x1xf32>
      %c0_36 = arith.constant 0 : index
      %c0_37 = arith.constant 0 : index
      %77 = vector.load %arg8[%c0_36, %c0_37] : memref<96x1xf32, #tpu.memory_space<vmem>>, vector<96x1xf32>
      tpu.vector_store %arg8[%c0_36, %c0_37], %76 {strides = array<i32>} : memref<96x1xf32, #tpu.memory_space<vmem>>, vector<96x1xf32>,
    } else {
    }
    %3 = tpu.iota {dimensions = array<i32: 1>} : vector<96x128xi32>
    %c0 = arith.constant 0 : index
    %c0_1 = arith.constant 0 : index
    %4 = vector.load %arg1[%c0, %c0_1] : memref<96x1xi32, #tpu.memory_space<vmem>>, vector<96x1xi32>
    %5 = vector.broadcast %4 : vector<96x1xi32> to vector<96x128xi32>
    %6 = arith.cmpi eq, %3, %5 : vector<96x128xi32>
    %7 = arith.extui %6 : vector<96x128xi1> to vector<96x128xi32>
    %8 = arith.sitofp %7 : vector<96x128xi32> to vector<96x128xf32>
    %c0_2 = arith.constant 0 : index
    %c0_3 = arith.constant 0 : index
    %9 = vector.load %arg2[%c0_2, %c0_3] : memref<96x1xi32, #tpu.memory_space<vmem>>, vector<96x1xi32>
    %10 = vector.broadcast %9 : vector<96x1xi32> to vector<96x128xi32>
    %11 = arith.cmpi eq, %3, %10 : vector<96x128xi32>
    %12 = arith.extui %11 : vector<96x128xi1> to vector<96x128xi32>
    %13 = arith.sitofp %12 : vector<96x128xi32> to vector<96x128xf32>
    %c0_4 = arith.constant 0 : index
    %c0_5 = arith.constant 0 : index
    %14 = vector.load %arg3[%c0_4, %c0_5] : memref<96x1xi32, #tpu.memory_space<vmem>>, vector<96x1xi32>
    %15 = vector.broadcast %14 : vector<96x1xi32> to vector<96x128xi32>
    %16 = arith.cmpi eq, %3, %15 : vector<96x128xi32>
    %17 = arith.extui %16 : vector<96x128xi1> to vector<96x128xi32>
    %18 = arith.sitofp %17 : vector<96x128xi32> to vector<96x128xf32>
    %19 = arith.subf %8, %13 : vector<96x128xf32>
    %20 = arith.subf %8, %18 : vector<96x128xf32>
    %c0_6 = arith.constant 0 : index
    %c0_7 = arith.constant 0 : index
    %21 = vector.load %arg4[%c0_6, %c0_7] : memref<128x128xf32, #tpu.memory_space<vmem>>, vector<128x128xf32>
    %cst = arith.constant dense<0.000000e+00> : vector<96x128xf32>
    %22 = tpu.matmul %19, %21, %cst {dimension_numbers = #tpu.dot_dimension_numbers<[1], [0], [0], [1], [0, 0, 1, 1], [], []>} : vector<96x128xf32>, vector<128x128xf32>, vector<96x128xf32> -> vector<96x128xf32>
    %cst_8 = arith.constant dense<0.000000e+00> : vector<96x128xf32>
    %23 = tpu.matmul %20, %21, %cst_8 {dimension_numbers = #tpu.dot_dimension_numbers<[1], [0], [0], [1], [0, 0, 1, 1], [], []>} : vector<96x128xf32>, vector<128x128xf32>, vector<96x128xf32> -> vector<96x128xf32>
    %c0_9 = arith.constant 0 : index
    %c0_10 = arith.constant 0 : index
    %24 = vector.load %arg5[%c0_9, %c0_10] : memref<96x1xf32, #tpu.memory_space<vmem>>, vector<96x1xf32>
    %25 = arith.mulf %22, %22 : vector<96x128xf32>
    %cst_11 = arith.constant dense<0.000000e+00> : vector<96xf32>
    %26 = vector.multi_reduction <add>, %25, %cst_11 [1] : vector<96x128xf32> to vector<96xf32>
    %27 = vector.shape_cast %26 : vector<96xf32> to vector<96x1xf32>
    %cst_12 = arith.constant 9.99999993E-9 : f32
    %28 = vector.broadcast %cst_12 : f32 to vector<96x1xf32>
    %29 = arith.addf %27, %28 : vector<96x1xf32>
    %30 = math.sqrt %29 : vector<96x1xf32>
    %31 = arith.mulf %23, %23 : vector<96x128xf32>
    %cst_13 = arith.constant dense<0.000000e+00> : vector<96xf32>
    %32 = vector.multi_reduction <add>, %31, %cst_13 [1] : vector<96x128xf32> to vector<96xf32>
    %33 = vector.shape_cast %32 : vector<96xf32> to vector<96x1xf32>
    %cst_14 = arith.constant 9.99999993E-9 : f32
    %34 = vector.broadcast %cst_14 : f32 to vector<96x1xf32>
    %35 = arith.addf %33, %34 : vector<96x1xf32>
    %36 = math.sqrt %35 : vector<96x1xf32>
    %37 = arith.subf %30, %24 : vector<96x1xf32>
    %cst_15 = arith.constant 2.000000e-01 : f32
    %38 = vector.broadcast %cst_15 : f32 to vector<96x1xf32>
    %39 = arith.addf %37, %38 : vector<96x1xf32>
    %cst_16 = arith.constant 0.000000e+00 : f32
    %40 = vector.broadcast %cst_16 : f32 to vector<96x1xf32>
    %41 = arith.maximumf %39, %40 : vector<96x1xf32>
    %42 = arith.subf %24, %36 : vector<96x1xf32>
    %cst_17 = arith.constant 2.000000e-01 : f32
    %43 = vector.broadcast %cst_17 : f32 to vector<96x1xf32>
    %44 = arith.addf %42, %43 : vector<96x1xf32>
    %cst_18 = arith.constant 0.000000e+00 : f32
    %45 = vector.broadcast %cst_18 : f32 to vector<96x1xf32>
    %46 = arith.maximumf %44, %45 : vector<96x1xf32>
    %47 = tpu.iota {dimensions = array<i32: 0>} : vector<96x1xi32>
    %c96_i32 = arith.constant 96 : i32
    %48 = arith.muli %arg0, %c96_i32 : i32
    %49 = vector.broadcast %48 : i32 to vector<96x1xi32>
    %50 = arith.addi %47, %49 : vector<96x1xi32>
    %c96_i32_19 = arith.constant 96 : i32
    %51 = vector.broadcast %c96_i32_19 : i32 to vector<96x1xi32>
    %52 = arith.cmpi slt, %50, %51 : vector<96x1xi32>
    %53 = arith.extui %52 : vector<96x1xi1> to vector<96x1xi32>
    %54 = arith.sitofp %53 : vector<96x1xi32> to vector<96x1xf32>
    %55 = arith.mulf %41, %54 : vector<96x1xf32>
    %56 = arith.mulf %46, %54 : vector<96x1xf32>
    %cst_20 = arith.constant 0.000000e+00 : f32
    %57 = vector.broadcast %cst_20 : f32 to vector<96x1xf32>
    %58 = arith.cmpf ogt, %55, %57 : vector<96x1xf32>
    %cst_21 = arith.constant 0.000000e+00 : f32
    %59 = vector.broadcast %cst_21 : f32 to vector<96x1xf32>
    %60 = arith.cmpf ogt, %56, %59 : vector<96x1xf32>
    %61 = arith.ori %58, %60 : vector<96x1xi1>
    %62 = arith.extui %61 : vector<96x1xi1> to vector<96x1xi32>
    %63 = arith.sitofp %62 : vector<96x1xi32> to vector<96x1xf32>
    %c0_22 = arith.constant 0 : index
    %c0_23 = arith.constant 0 : index
    %64 = vector.load %arg7[%c0_22, %c0_23] : memref<96x1xf32, #tpu.memory_space<vmem>>, vector<96x1xf32>
    %65 = arith.addf %55, %56 : vector<96x1xf32>
    %66 = arith.addf %64, %65 : vector<96x1xf32>
    %c0_24 = arith.constant 0 : index
    %c0_25 = arith.constant 0 : index
    %67 = vector.load %arg7[%c0_24, %c0_25] : memref<96x1xf32, #tpu.memory_space<vmem>>, vector<96x1xf32>
    tpu.vector_store %arg7[%c0_24, %c0_25], %66 {strides = array<i32>} : memref<96x1xf32, #tpu.memory_space<vmem>>, vector<96x1xf32>,
    %c0_26 = arith.constant 0 : index
    %c0_27 = arith.constant 0 : index
    %68 = vector.load %arg8[%c0_26, %c0_27] : memref<96x1xf32, #tpu.memory_space<vmem>>, vector<96x1xf32>
    %69 = arith.addf %68, %63 : vector<96x1xf32>
    %c0_28 = arith.constant 0 : index
    %c0_29 = arith.constant 0 : index
    %70 = vector.load %arg8[%c0_28, %c0_29] : memref<96x1xf32, #tpu.memory_space<vmem>>, vector<96x1xf32>
    tpu.vector_store %arg8[%c0_28, %c0_29], %69 {strides = array<i32>} : memref<96x1xf32, #tpu.memory_space<vmem>>, vector<96x1xf32>,
    %c0_i32_30 = arith.constant 0 : i32
    %71 = arith.cmpi eq, %arg0, %c0_i32_30 : i32
    %72 = arith.extui %71 : i1 to i32
    %c0_i32_31 = arith.constant 0 : i32
    %73 = arith.cmpi ne, %72, %c0_i32_31 : i32
    scf.if %73 {
      %c0_32 = arith.constant 0 : index
      %c0_33 = arith.constant 0 : index
      %74 = vector.load %arg7[%c0_32, %c0_33] : memref<96x1xf32, #tpu.memory_space<vmem>>, vector<96x1xf32>
      %cst_34 = arith.constant dense<0.000000e+00> : vector<1xf32>
      %75 = vector.multi_reduction <add>, %74, %cst_34 [0] : vector<96x1xf32> to vector<1xf32>
      %76 = vector.shape_cast %75 : vector<1xf32> to vector<1x1xf32>
      %c0_35 = arith.constant 0 : index
      %c0_36 = arith.constant 0 : index
      %77 = vector.load %arg8[%c0_35, %c0_36] : memref<96x1xf32, #tpu.memory_space<vmem>>, vector<96x1xf32>
      %cst_37 = arith.constant dense<0.000000e+00> : vector<1xf32>
      %78 = vector.multi_reduction <add>, %77, %cst_37 [0] : vector<96x1xf32> to vector<1xf32>
      %79 = vector.shape_cast %78 : vector<1xf32> to vector<1x1xf32>
      %cst_38 = arith.constant 1.000000e+00 : f32
      %80 = vector.broadcast %cst_38 : f32 to vector<1x1xf32>
      %81 = arith.maximumf %79, %80 : vector<1x1xf32>
      %82 = tpu.reciprocal %81 : vector<1x1xf32> -> vector<1x1xf32>
      %cst_39 = arith.constant 0.000000e+00 : f32
      %83 = vector.broadcast %cst_39 : f32 to vector<1x1xf32>
      %84 = arith.cmpf oeq, %79, %83 : vector<1x1xf32>
      %85 = arith.mulf %76, %82 : vector<1x1xf32>
      %86 = arith.select %84, %76, %85 : vector<1x1xi1>, vector<1x1xf32>
      %c0_40 = arith.constant 0 : index
      %c0_41 = arith.constant 0 : index
      %87 = vector.load %arg6[%c0_40, %c0_41] : memref<1x1xf32, #tpu.memory_space<vmem>>, vector<1x1xf32>
      tpu.vector_store %arg6[%c0_40, %c0_41], %86 {strides = array<i32>} : memref<1x1xf32, #tpu.memory_space<vmem>>, vector<1x1xf32>,
    } else {
    }
    return
  }
  func.func @transform_0(%arg0: i32) -> (i32, i32) {
    %c0_i32 = arith.constant 0 : i32
    %c0_i32_0 = arith.constant 0 : i32
    return %arg0, %c0_i32 : i32, i32
  }
  func.func @transform_1(%arg0: i32) -> (i32, i32) {
    %c0_i32 = arith.constant 0 : i32
    %c0_i32_0 = arith.constant 0 : i32
    return %arg0, %c0_i32 : i32, i32
  }
  func.func @transform_2(%arg0: i32) -> (i32, i32) {
    %c0_i32 = arith.constant 0 : i32
    %c0_i32_0 = arith.constant 0 : i32
    return %arg0, %c0_i32 : i32, i32
  }
  func.func @transform_3(%arg0: i32) -> (i32, i32) {
    %c0_i32 = arith.constant 0 : i32
    %c0_i32_0 = arith.constant 0 : i32
    %c0_i32_1 = arith.constant 0 : i32
    return %c0_i32, %c0_i32_0 : i32, i32
  }
  func.func @transform_4(%arg0: i32) -> (i32, i32) {
    %c0_i32 = arith.constant 0 : i32
    %c0_i32_0 = arith.constant 0 : i32
    return %arg0, %c0_i32 : i32, i32
  }
  func.func @transform_5(%arg0: i32) -> (i32, i32) {
    %c0_i32 = arith.constant 0 : i32
    %c0_i32_0 = arith.constant 0 : i32
    %c0_i32_1 = arith.constant 0 : i32
    return %c0_i32, %c0_i32_0 : i32, i32
  }
}

</mosaic_0001>

<bundles_post_ra>
// kernel: tpu_custom_call.1
= control target key start
LH: loop header
LB: loop body
LE: loop exit
PB: predicated region body
PF: predicated region fallthrough
CT: control target
= control target key end

     0   :  { %v1627_v2 = vmov 0   ;;  %s2348_s0 = inlined_call_operand.vmem [shape: s32[96,1], index: 0, kind: input, shape index: {}]   ;;  %s2349_s1 = inlined_call_operand.vmem [shape: s32[96,1], index: 1, kind: input, shape index: {}]   ;;  %s2350_s2 = inlined_call_operand.vmem [shape: s32[96,1], index: 2, kind: input, shape index: {}]   ;;  %s2351_s3 = inlined_call_operand.vmem [shape: f32[128,128], index: 3, kind: input, shape index: {}]   ;;  %s2352_s4 = inlined_call_operand.vmem [shape: f32[96,1], index: 4, kind: input, shape index: {}]   ;;  %s2353_s5 = inlined_call_operand.hbm [shape: f32[1,1], index: 5, kind: output, shape index: {}]  }
   0x1   :  { %v220_v0 = vld [vmem:[%s2350_s2] sm:$0xff]  ;;  %1552 = vset.pattern.permute.xlu1 %v1627_v2  ;;  %1551 = vset.pattern.permute.xlu0 %v1627_v2  ;;  %v53_v3 = vld [vmem:[%s2348_s0 + $0x8] sm:$0xff]  ;;  %v138_v7 = vld [vmem:[%s2349_s1 + $0x10] sm:$0xff] }
   0x2   :  { %v52_v1 = vld [vmem:[%s2348_s0] sm:$0xff]  ;;  %233 = vperm.xlu1 %1552, %v220_v0   ;;  %v221_v5 = vld [vmem:[%s2350_s2 + $0x8] sm:$0xff]  ;;  %v54_v8 = vld [vmem:[%s2348_s0 + $0x10] sm:$0xff] }
   0x3   :  { %65 = vperm.xlu0 %1551, %v52_v1   ;;  %v136_v4 = vld [vmem:[%s2349_s1] sm:$0xff]  ;;  %v137_v6 = vld [vmem:[%s2349_s1 + $0x8] sm:$0xff]  ;;  %v330_v11 = vld [vmem:[%s2351_s3 + $0x10] sm:$0xff] }
   0x4   :  { %v328_v9 = vld [vmem:[%s2351_s3] sm:$0xff]  ;;  %v329_v10 = vld [vmem:[%s2351_s3 + $0x8] sm:$0xff]  ;;  %v331_v13 = vld [vmem:[%s2351_s3 + $0x18] sm:$0xff] }
   0x5   :  { %v1484_v12 = vpack.c.bf16 %v329_v10, %v328_v9  ;;  %v1488_v14 = vpack.c.bf16 %v331_v13, %v330_v11  ;;  %v332_v15 = vld [vmem:[%s2351_s3 + $0x20] sm:$0xff]  ;;  %v333_v16 = vld [vmem:[%s2351_s3 + $0x28] sm:$0xff]  ;;  %v55_v17 = vld [vmem:[%s2348_s0 + $0x18] sm:$0xff] }
   0x6   :  { %68 = vperm.xlu1 %1552, %v53_v3   ;;  %v222_v18 = vld [vmem:[%s2350_s2 + $0x10] sm:$0xff]  ;;  %v1492_v19 = vpack.c.bf16 %v333_v16, %v332_v15 }
   0x7   :  { %149 = vperm.xlu0 %1551, %v136_v4   ;;  %1485 = vmatprep.subr.bf16.mxu0 %v1484_v12 }
   0x8   :  { %1517 = vmatprep.subr.bf16.mxu1 %v1484_v12  ;;  %1487 = vmatpush3.bf16.msra.mxu0 %v1484_v12 }
   0x9   :  { %1519 = vmatpush3.bf16.msra.mxu1 %v1484_v12  ;;  %1489 = vmatprep.subr.bf16.mxu0 %v1488_v14 }
   0xa   :  { %236 = vperm.xlu1 %1552, %v221_v5   ;;  %1521 = vmatprep.subr.bf16.mxu1 %v1488_v14 }
   0xb   :  { %152 = vperm.xlu0 %1551, %v137_v6  }
   0xe   :  { %155 = vperm.xlu1 %1552, %v138_v7  }
   0xf   :  { %71 = vperm.xlu0 %1551, %v54_v8  }
  0x10   :  { %10 = vsyncpa [#allocation5], 0  ;;  %v334_v20 = vld [vmem:[%s2351_s3 + $0x30] sm:$0xff]  ;;  %v335_v21 = vld [vmem:[%s2351_s3 + $0x38] sm:$0xff]  ;;  %1491 = vmatpush3.bf16.msra.mxu0 %v1488_v14  ;;  %1523 = vmatpush3.bf16.msra.mxu1 %v1488_v14  ;;  %v50_v61 = vlaneseq  ;;  %v1628_v1 = vmov 0.0  }
  0x11   :  { %v223_v22 = vld [vmem:[%s2350_s2 + $0x18] sm:$0xff]  ;;  %1493 = vmatprep.subr.bf16.mxu0 %v1492_v19  ;;  %1525 = vmatprep.subr.bf16.mxu1 %v1492_v19  ;;  %v1496_v24 = vpack.c.bf16 %v335_v21, %v334_v20  ;;  %v336_v25 = vld [vmem:[%s2351_s3 + $0x40] sm:$0xff]  ;;  %v337_v26 = vld [vmem:[%s2351_s3 + $0x48] sm:$0xff] }
  0x12   :  { %74 = vperm.xlu1 %1552, %v55_v17   ;;  %v139_v23 = vld [vmem:[%s2349_s1 + $0x18] sm:$0xff]  ;;  %v140_v27 = vld [vmem:[%s2349_s1 + $0x20] sm:$0xff]  ;;  %v1500_v29 = vpack.c.bf16 %v337_v26, %v336_v25  ;;  %v338_v30 = vld [vmem:[%s2351_s3 + $0x50] sm:$0xff]  ;;  %v1816_v62 = vand.u32 127, %v50_v61 }
  0x13   :  { %239 = vperm.xlu0 %1551, %v222_v18   ;;  %v56_v28 = vld [vmem:[%s2348_s0 + $0x20] sm:$0xff]  ;;  %v339_v31 = vld [vmem:[%s2351_s3 + $0x58] sm:$0xff]  ;;  %v57_v32 = vld [vmem:[%s2348_s0 + $0x28] sm:$0xff] }
  0x14   :  { %1495 = vmatpush3.bf16.msra.mxu0 %v1492_v19  ;;  %1527 = vmatpush3.bf16.msra.mxu1 %v1492_v19  ;;  %v224_v33 = vld [vmem:[%s2350_s2 + $0x20] sm:$0xff]  ;;  %v1504_v34 = vpack.c.bf16 %v339_v31, %v338_v30  ;;  %v341_v36 = vld [vmem:[%s2351_s3 + $0x68] sm:$0xff]  ;;  %v342_v40 = vld [vmem:[%s2351_s3 + $0x70] sm:$0xff] }
  0x15   :  { %1497 = vmatprep.subr.bf16.mxu0 %v1496_v24  ;;  %1529 = vmatprep.subr.bf16.mxu1 %v1496_v24  ;;  %v340_v35 = vld [vmem:[%s2351_s3 + $0x60] sm:$0xff]  ;;  %v225_v37 = vld [vmem:[%s2350_s2 + $0x28] sm:$0xff]  ;;  %v343_v41 = vld [vmem:[%s2351_s3 + $0x78] sm:$0xff] }
  0x16   :  { %242 = vperm.xlu1 %1552, %v223_v22   ;;  %v141_v38 = vld [vmem:[%s2349_s1 + $0x28] sm:$0xff]  ;;  %v1508_v39 = vpack.c.bf16 %v341_v36, %v340_v35  ;;  %v142_v42 = vld [vmem:[%s2349_s1 + $0x30] sm:$0xff]  ;;  %v1512_v44 = vpack.c.bf16 %v343_v41, %v342_v40  ;;  %v59_v45 = vld [vmem:[%s2348_s0 + $0x38] sm:$0xff] }
  0x17   :  { %158 = vperm.xlu0 %1551, %v139_v23   ;;  %v58_v43 = vld [vmem:[%s2348_s0 + $0x30] sm:$0xff]  ;;  %v227_v47 = vld [vmem:[%s2350_s2 + $0x38] sm:$0xff]  ;;  %v144_v49 = vld [vmem:[%s2349_s1 + $0x40] sm:$0xff] }
  0x18   :  { %1499 = vmatpush3.bf16.msra.mxu0 %v1496_v24  ;;  %1531 = vmatpush3.bf16.msra.mxu1 %v1496_v24  ;;  %v226_v46 = vld [vmem:[%s2350_s2 + $0x30] sm:$0xff]  ;;  %v143_v48 = vld [vmem:[%s2349_s1 + $0x38] sm:$0xff]  ;;  %v60_v50 = vld [vmem:[%s2348_s0 + $0x40] sm:$0xff] }
  0x19   :  { %1501 = vmatprep.subr.bf16.mxu0 %v1500_v29  ;;  %1533 = vmatprep.subr.bf16.mxu1 %v1500_v29  ;;  %v61_v51 = vld [vmem:[%s2348_s0 + $0x48] sm:$0xff]  ;;  %v228_v52 = vld [vmem:[%s2350_s2 + $0x40] sm:$0xff]  ;;  %v146_v55 = vld [vmem:[%s2349_s1 + $0x50] sm:$0xff] }
  0x1a   :  { %161 = vperm.xlu1 %1552, %v140_v27   ;;  %v229_v53 = vld [vmem:[%s2350_s2 + $0x48] sm:$0xff]  ;;  %v62_v56 = vld [vmem:[%s2348_s0 + $0x50] sm:$0xff]  ;;  %v63_v57 = vld [vmem:[%s2348_s0 + $0x58] sm:$0xff] }
  0x1b   :  { %77 = vperm.xlu0 %1551, %v56_v28   ;;  %v145_v54 = vld [vmem:[%s2349_s1 + $0x48] sm:$0xff]  ;;  %v230_v58 = vld [vmem:[%s2350_s2 + $0x50] sm:$0xff]  ;;  %v231_v59 = vld [vmem:[%s2350_s2 + $0x58] sm:$0xff] }
  0x1c   :  { %1503 = vmatpush3.bf16.msra.mxu0 %v1500_v29  ;;  %1535 = vmatpush3.bf16.msra.mxu1 %v1500_v29  ;;  %v147_v60 = vld [vmem:[%s2349_s1 + $0x58] sm:$0xff] }
  0x1d   :  { %1505 = vmatprep.subr.bf16.mxu0 %v1504_v34  ;;  %1537 = vmatprep.subr.bf16.mxu1 %v1504_v34 }
  0x1e   :  { %80 = vperm.xlu1 %1552, %v57_v32  }
  0x1f   :  { %245 = vperm.xlu0 %1551, %v224_v33  }
  0x20   :  { %1507 = vmatpush3.bf16.msra.mxu0 %v1504_v34  ;;  %1539 = vmatpush3.bf16.msra.mxu1 %v1504_v34 }
  0x21   :  { %1509 = vmatprep.subr.bf16.mxu0 %v1508_v39  ;;  %1541 = vmatprep.subr.bf16.mxu1 %v1508_v39 }
  0x22   :  { %248 = vperm.xlu1 %1552, %v225_v37  }
  0x23   :  { %164 = vperm.xlu0 %1551, %v141_v38  }
  0x24   :  { %1511 = vmatpush3.bf16.msra.mxu0 %v1508_v39  ;;  %1543 = vmatpush3.bf16.msra.mxu1 %v1508_v39 }
  0x25   :  { %1513 = vmatprep.subr.bf16.mxu0 %v1512_v44  ;;  %1545 = vmatprep.subr.bf16.mxu1 %v1512_v44 }
  0x26   :  { %167 = vperm.xlu1 %1552, %v142_v42  }
  0x27   :  { %83 = vperm.xlu0 %1551, %v58_v43  }
  0x28   :  { %1515 = vmatpush3.bf16.msra.mxu0 %v1512_v44  ;;  %1547 = vmatpush3.bf16.msra.mxu1 %v1512_v44 }
  0x2a   :  { %86 = vperm.xlu1 %1552, %v59_v45  }
  0x2b   :  { %251 = vperm.xlu0 %1551, %v226_v46  }
  0x2e   :  { %254 = vperm.xlu1 %1552, %v227_v47  }
  0x2f   :  { %170 = vperm.xlu0 %1551, %v143_v48  }
  0x32   :  { %173 = vperm.xlu1 %1552, %v144_v49  }
  0x33   :  { %89 = vperm.xlu0 %1551, %v60_v50  }
  0x36   :  { %92 = vperm.xlu1 %1552, %v61_v51  }
  0x37   :  { %257 = vperm.xlu0 %1551, %v228_v52  }
  0x3a   :  { %260 = vperm.xlu1 %1552, %v229_v53  }
  0x3b   :  { %176 = vperm.xlu0 %1551, %v145_v54  }
  0x3e   :  { %179 = vperm.xlu1 %1552, %v146_v55  }
  0x3f   :  { %95 = vperm.xlu0 %1551, %v62_v56  }
  0x42   :  { %98 = vperm.xlu1 %1552, %v63_v57  }
  0x43   :  { %263 = vperm.xlu0 %1551, %v230_v58  }
  0x46   :  { %266 = vperm.xlu1 %1552, %v231_v59  }
  0x47   :  { %182 = vperm.xlu0 %1551, %v147_v60  }
  0x81   :  { %v234_v63 = vpop.permute.xlu1 %233 }
  0x82   :  { %v66_v0 = vpop.permute.xlu0 %65  ;;  %vm268_vm0 = vcmp.eq.s32.totalorder %v1816_v62, %v234_v63 }
  0x83   :  { %vm100_vm1 = vcmp.eq.s32.totalorder %v1816_v62, %v66_v0  ;;  %v1304_v3 = vsel %vm268_vm0, 1.0, %v1628_v1 }
  0x84   :  { %v1280_v2 = vsel %vm100_vm1, 1.0, %v1628_v1 }
  0x85   :  { %v316_v4 = vsub.f32 %v1280_v2, %v1304_v3  ;;  %v69_v5 = vpop.permute.xlu1 %68 }
  0x86   :  { %v150_v6 = vpop.permute.xlu0 %149  ;;  %vm101_vm3 = vcmp.eq.s32.totalorder %v1816_v62, %v69_v5 }
  0x87   :  { %vm184_vm2 = vcmp.eq.s32.totalorder %v1816_v62, %v150_v6  ;;  %1466 = vmatprep.mubr.f32.mxu1 %v316_v4  ;;  %v1281_v11 = vsel %vm101_vm3, 1.0, %v1628_v1 }
  0x88   :  { %v1292_v7 = vsel %vm184_vm2, 1.0, %v1628_v1 }
  0x89   :  { %v304_v8 = vsub.f32 %v1280_v2, %v1292_v7  ;;  %v237_v9 = vpop.permute.xlu1 %236 }
  0x8a   :  { %v153_v10 = vpop.permute.xlu0 %152  ;;  %vm269_vm4 = vcmp.eq.s32.totalorder %v1816_v62, %v237_v9 }
  0x8b   :  { %vm185_vm5 = vcmp.eq.s32.totalorder %v1816_v62, %v153_v10  ;;  %1416 = vmatprep.mubr.f32.mxu0 %v304_v8  ;;  %v1305_v12 = vsel %vm269_vm4, 1.0, %v1628_v1 }
  0x8c   :  { %v1293_v13 = vsel %vm185_vm5, 1.0, %v1628_v1  ;;  %v317_v14 = vsub.f32 %v1281_v11, %v1305_v12 }
  0x8d   :  { %v305_v15 = vsub.f32 %v1281_v11, %v1293_v13  ;;  %v156_v16 = vpop.permute.xlu1 %155 }
  0x8e   :  { %v72_v17 = vpop.permute.xlu0 %71  ;;  %vm186_vm6 = vcmp.eq.s32.totalorder %v1816_v62, %v156_v16  ;;  %1467 = vmatmul.mubr.f32.vlgmr.msra.gmra.mrb[0].mxu1 %v317_v14 }
  0x8f   :  { %vm102_vm7 = vcmp.eq.s32.totalorder %v1816_v62, %v72_v17  ;;  %1417 = vmatmul.mubr.f32.vlgmr.msra.gmra.mrb[0].mxu0 %v305_v15  ;;  %v1294_v18 = vsel %vm186_vm6, 1.0, %v1628_v1 }
  0x90   :  { %v1282_v19 = vsel %vm102_vm7, 1.0, %v1628_v1 }
  0x91   :  { %v306_v20 = vsub.f32 %v1282_v19, %v1294_v18  ;;  %v75_v21 = vpop.permute.xlu1 %74 }
  0x92   :  { %v240_v22 = vpop.permute.xlu0 %239  ;;  %vm103_vm9 = vcmp.eq.s32.totalorder %v1816_v62, %v75_v21 }
  0x93   :  { %vm270_vm8 = vcmp.eq.s32.totalorder %v1816_v62, %v240_v22  ;;  %1419 = vmatprep.mubr.f32.mxu0 %v306_v20  ;;  %v1283_v27 = vsel %vm103_vm9, 1.0, %v1628_v1 }
  0x94   :  { %v1306_v23 = vsel %vm270_vm8, 1.0, %v1628_v1 }
  0x95   :  { %v318_v24 = vsub.f32 %v1282_v19, %v1306_v23  ;;  %v243_v25 = vpop.permute.xlu1 %242 }
  0x96   :  { %v159_v26 = vpop.permute.xlu0 %158  ;;  %vm271_vm10 = vcmp.eq.s32.totalorder %v1816_v62, %v243_v25 }
  0x97   :  { %vm187_vm11 = vcmp.eq.s32.totalorder %v1816_v62, %v159_v26  ;;  %1469 = vmatprep.mubr.f32.mxu1 %v318_v24  ;;  %v1307_v28 = vsel %vm271_vm10, 1.0, %v1628_v1 }
  0x98   :  { %v1295_v29 = vsel %vm187_vm11, 1.0, %v1628_v1  ;;  %v319_v30 = vsub.f32 %v1283_v27, %v1307_v28 }
  0x99   :  { %v307_v31 = vsub.f32 %v1283_v27, %v1295_v29  ;;  %v162_v32 = vpop.permute.xlu1 %161 }
  0x9a   :  { %v78_v33 = vpop.permute.xlu0 %77  ;;  %vm188_vm12 = vcmp.eq.s32.totalorder %v1816_v62, %v162_v32  ;;  %1470 = vmatmul.mubr.f32.gmra.mrb[2].mxu1 %v319_v30 }
  0x9b   :  { %vm104_vm13 = vcmp.eq.s32.totalorder %v1816_v62, %v78_v33  ;;  %1420 = vmatmul.mubr.f32.gmra.mrb[2].mxu0 %v307_v31  ;;  %v1296_v34 = vsel %vm188_vm12, 1.0, %v1628_v1 }
  0x9c   :  { %v1284_v35 = vsel %vm104_vm13, 1.0, %v1628_v1 }
  0x9d   :  { %v308_v36 = vsub.f32 %v1284_v35, %v1296_v34  ;;  %v81_v37 = vpop.permute.xlu1 %80 }
  0x9e   :  { %v246_v38 = vpop.permute.xlu0 %245  ;;  %vm105_vm15 = vcmp.eq.s32.totalorder %v1816_v62, %v81_v37 }
  0x9f   :  { %vm272_vm14 = vcmp.eq.s32.totalorder %v1816_v62, %v246_v38  ;;  %1422 = vmatprep.mubr.f32.mxu0 %v308_v36  ;;  %v1285_v43 = vsel %vm105_vm15, 1.0, %v1628_v1 }
  0xa0   :  { %v1308_v39 = vsel %vm272_vm14, 1.0, %v1628_v1 }
  0xa1   :  { %v320_v40 = vsub.f32 %v1284_v35, %v1308_v39  ;;  %v249_v41 = vpop.permute.xlu1 %248 }
  0xa2   :  { %v165_v42 = vpop.permute.xlu0 %164  ;;  %vm273_vm0 = vcmp.eq.s32.totalorder %v1816_v62, %v249_v41 }
  0xa3   :  { %vm189_vm1 = vcmp.eq.s32.totalorder %v1816_v62, %v165_v42  ;;  %1472 = vmatprep.mubr.f32.mxu1 %v320_v40  ;;  %v1309_v44 = vsel %vm273_vm0, 1.0, %v1628_v1 }
  0xa4   :  { %v1297_v45 = vsel %vm189_vm1, 1.0, %v1628_v1  ;;  %v321_v46 = vsub.f32 %v1285_v43, %v1309_v44 }
  0xa5   :  { %v309_v47 = vsub.f32 %v1285_v43, %v1297_v45  ;;  %v168_v48 = vpop.permute.xlu1 %167 }
  0xa6   :  { %v84_v49 = vpop.permute.xlu0 %83  ;;  %vm190_vm2 = vcmp.eq.s32.totalorder %v1816_v62, %v168_v48  ;;  %1473 = vmatmul.mubr.f32.gmra.mrb[4].mxu1 %v321_v46 }
  0xa7   :  { %vm106_vm3 = vcmp.eq.s32.totalorder %v1816_v62, %v84_v49  ;;  %1423 = vmatmul.mubr.f32.gmra.mrb[4].mxu0 %v309_v47  ;;  %v1298_v50 = vsel %vm190_vm2, 1.0, %v1628_v1 }
  0xa8   :  { %v1286_v51 = vsel %vm106_vm3, 1.0, %v1628_v1 }
  0xa9   :  { %v310_v52 = vsub.f32 %v1286_v51, %v1298_v50  ;;  %v87_v53 = vpop.permute.xlu1 %86 }
  0xaa   :  { %v252_v54 = vpop.permute.xlu0 %251  ;;  %vm107_vm5 = vcmp.eq.s32.totalorder %v1816_v62, %v87_v53 }
  0xab   :  { %vm274_vm4 = vcmp.eq.s32.totalorder %v1816_v62, %v252_v54  ;;  %1425 = vmatprep.mubr.f32.mxu0 %v310_v52  ;;  %v1287_v59 = vsel %vm107_vm5, 1.0, %v1628_v1 }
  0xac   :  { %v1310_v55 = vsel %vm274_vm4, 1.0, %v1628_v1  ;;  %vm25_vm4 = vcmask 7168  }
  0xad   :  { %v322_v56 = vsub.f32 %v1286_v51, %v1310_v55  ;;  %v255_v57 = vpop.permute.xlu1 %254  ;;  %27 = vst.msk [vmem:[#allocation2 + $0x8] sm:$0xff] %vm25_vm4, %v1628_v1  ;;  %39 = vst.msk [vmem:[#allocation3 + $0x8] sm:$0xff] %vm25_vm4, %v1628_v1 }
  0xae   :  { %v171_v58 = vpop.permute.xlu0 %170  ;;  %vm275_vm6 = vcmp.eq.s32.totalorder %v1816_v62, %v255_v57  ;;  %26 = vst.msk [vmem:[#allocation2] sm:$0xff] %vm25_vm4, %v1628_v1  ;;  %28 = vst.msk [vmem:[#allocation2 + $0x10] sm:$0xff] %vm25_vm4, %v1628_v1 }
  0xaf   :  { %vm191_vm7 = vcmp.eq.s32.totalorder %v1816_v62, %v171_v58  ;;  %1475 = vmatprep.mubr.f32.mxu1 %v322_v56  ;;  %v1311_v60 = vsel %vm275_vm6, 1.0, %v1628_v1  ;;  %29 = vst.msk [vmem:[#allocation2 + $0x18] sm:$0xff] %vm25_vm4, %v1628_v1  ;;  %30 = vst.msk [vmem:[#allocation2 + $0x20] sm:$0xff] %vm25_vm4, %v1628_v1 }
  0xb0   :  { %v1299_v61 = vsel %vm191_vm7, 1.0, %v1628_v1  ;;  %v323_v63 = vsub.f32 %v1287_v59, %v1311_v60  ;;  %31 = vst.msk [vmem:[#allocation2 + $0x28] sm:$0xff] %vm25_vm4, %v1628_v1  ;;  %32 = vst.msk [vmem:[#allocation2 + $0x30] sm:$0xff] %vm25_vm4, %v1628_v1 }
  0xb1   :  { %v311_v0 = vsub.f32 %v1287_v59, %v1299_v61  ;;  %v174_v2 = vpop.permute.xlu1 %173  ;;  %33 = vst.msk [vmem:[#allocation2 + $0x38] sm:$0xff] %vm25_vm4, %v1628_v1  ;;  %34 = vst.msk [vmem:[#allocation2 + $0x40] sm:$0xff] %vm25_vm4, %v1628_v1 }
  0xb2   :  { %v90_v3 = vpop.permute.xlu0 %89  ;;  %vm192_vm8 = vcmp.eq.s32.totalorder %v1816_v62, %v174_v2  ;;  %1476 = vmatmul.mubr.f32.gmra.mrb[6].mxu1 %v323_v63  ;;  %35 = vst.msk [vmem:[#allocation2 + $0x48] sm:$0xff] %vm25_vm4, %v1628_v1  ;;  %36 = vst.msk [vmem:[#allocation2 + $0x50] sm:$0xff] %vm25_vm4, %v1628_v1 }
  0xb3   :  { %vm108_vm9 = vcmp.eq.s32.totalorder %v1816_v62, %v90_v3  ;;  %1426 = vmatmul.mubr.f32.gmra.mrb[6].mxu0 %v311_v0  ;;  %v1300_v4 = vsel %vm192_vm8, 1.0, %v1628_v1  ;;  %37 = vst.msk [vmem:[#allocation2 + $0x58] sm:$0xff] %vm25_vm4, %v1628_v1  ;;  %38 = vst.msk [vmem:[#allocation3] sm:$0xff] %vm25_vm4, %v1628_v1 }
  0xb4   :  { %v1288_v5 = vsel %vm108_vm9, 1.0, %v1628_v1  ;;  %40 = vst.msk [vmem:[#allocation3 + $0x10] sm:$0xff] %vm25_vm4, %v1628_v1  ;;  %41 = vst.msk [vmem:[#allocation3 + $0x18] sm:$0xff] %vm25_vm4, %v1628_v1 }
  0xb5   :  { %v312_v6 = vsub.f32 %v1288_v5, %v1300_v4  ;;  %v93_v7 = vpop.permute.xlu1 %92  ;;  %42 = vst.msk [vmem:[#allocation3 + $0x20] sm:$0xff] %vm25_vm4, %v1628_v1  ;;  %43 = vst.msk [vmem:[#allocation3 + $0x28] sm:$0xff] %vm25_vm4, %v1628_v1 }
  0xb6   :  { %v258_v8 = vpop.permute.xlu0 %257  ;;  %vm109_vm11 = vcmp.eq.s32.totalorder %v1816_v62, %v93_v7  ;;  %44 = vst.msk [vmem:[#allocation3 + $0x30] sm:$0xff] %vm25_vm4, %v1628_v1  ;;  %45 = vst.msk [vmem:[#allocation3 + $0x38] sm:$0xff] %vm25_vm4, %v1628_v1 }
  0xb7   :  { %vm276_vm10 = vcmp.eq.s32.totalorder %v1816_v62, %v258_v8  ;;  %1428 = vmatprep.mubr.f32.mxu0 %v312_v6  ;;  %v1289_v13 = vsel %vm109_vm11, 1.0, %v1628_v1  ;;  %46 = vst.msk [vmem:[#allocation3 + $0x40] sm:$0xff] %vm25_vm4, %v1628_v1  ;;  %47 = vst.msk [vmem:[#allocation3 + $0x48] sm:$0xff] %vm25_vm4, %v1628_v1 }
  0xb8   :  { %v1312_v9 = vsel %vm276_vm10, 1.0, %v1628_v1  ;;  %48 = vst.msk [vmem:[#allocation3 + $0x50] sm:$0xff] %vm25_vm4, %v1628_v1  ;;  %49 = vst.msk [vmem:[#allocation3 + $0x58] sm:$0xff] %vm25_vm4, %v1628_v1 }
  0xb9   :  { %v324_v10 = vsub.f32 %v1288_v5, %v1312_v9  ;;  %v261_v11 = vpop.permute.xlu1 %260 }
  0xba   :  { %v177_v12 = vpop.permute.xlu0 %176  ;;  %vm277_vm12 = vcmp.eq.s32.totalorder %v1816_v62, %v261_v11 }
  0xbb   :  { %vm193_vm13 = vcmp.eq.s32.totalorder %v1816_v62, %v177_v12  ;;  %1478 = vmatprep.mubr.f32.mxu1 %v324_v10  ;;  %v1313_v14 = vsel %vm277_vm12, 1.0, %v1628_v1 }
  0xbc   :  { %v1301_v15 = vsel %vm193_vm13, 1.0, %v1628_v1  ;;  %v325_v16 = vsub.f32 %v1289_v13, %v1313_v14 }
  0xbd   :  { %v313_v17 = vsub.f32 %v1289_v13, %v1301_v15  ;;  %v180_v18 = vpop.permute.xlu1 %179 }
  0xbe   :  { %v96_v19 = vpop.permute.xlu0 %95  ;;  %vm194_vm14 = vcmp.eq.s32.totalorder %v1816_v62, %v180_v18  ;;  %1479 = vmatmul.mubr.f32.gmra.mrb[8].mxu1 %v325_v16 }
  0xbf   :  { %vm110_vm15 = vcmp.eq.s32.totalorder %v1816_v62, %v96_v19  ;;  %1429 = vmatmul.mubr.f32.gmra.mrb[8].mxu0 %v313_v17  ;;  %v1302_v20 = vsel %vm194_vm14, 1.0, %v1628_v1 }
  0xc0   :  { %v1290_v21 = vsel %vm110_vm15, 1.0, %v1628_v1 }
  0xc1   :  { %v314_v22 = vsub.f32 %v1290_v21, %v1302_v20  ;;  %v99_v23 = vpop.permute.xlu1 %98 }
  0xc2   :  { %v264_v24 = vpop.permute.xlu0 %263  ;;  %vm111_vm1 = vcmp.eq.s32.totalorder %v1816_v62, %v99_v23 }
  0xc3   :  { %vm278_vm0 = vcmp.eq.s32.totalorder %v1816_v62, %v264_v24  ;;  %1431 = vmatprep.mubr.f32.mxu0 %v314_v22  ;;  %v1291_v29 = vsel %vm111_vm1, 1.0, %v1628_v1 }
  0xc4   :  { %v1314_v25 = vsel %vm278_vm0, 1.0, %v1628_v1 }
  0xc5   :  { %v326_v26 = vsub.f32 %v1290_v21, %v1314_v25  ;;  %v267_v27 = vpop.permute.xlu1 %266 }
  0xc6   :  { %v183_v28 = vpop.permute.xlu0 %182  ;;  %vm279_vm2 = vcmp.eq.s32.totalorder %v1816_v62, %v267_v27 }
  0xc7   :  { %vm195_vm3 = vcmp.eq.s32.totalorder %v1816_v62, %v183_v28  ;;  %1481 = vmatprep.mubr.f32.mxu1 %v326_v26  ;;  %v1315_v30 = vsel %vm279_vm2, 1.0, %v1628_v1 }
  0xc8   :  { %v1303_v31 = vsel %vm195_vm3, 1.0, %v1628_v1  ;;  %v327_v32 = vsub.f32 %v1291_v29, %v1315_v30 }
  0xc9   :  { %v315_v33 = vsub.f32 %v1291_v29, %v1303_v31 }
  0xca   :  { %1482 = vmatmul.mubr.f32.gmra.mrb[10].mxu1 %v327_v32 }
  0xcb   :  { %1432 = vmatmul.mubr.f32.gmra.mrb[10].mxu0 %v315_v33 }
 0x161   :  { %v1468_v35 = vpop.f32.mrb[0].mxu1 }
 0x162   :  { %v1418_v34 = vpop.f32.mrb[0].mxu0  ;;  %v739_v37 = vmul.f32 %v1468_v35, %v1468_v35  ;;  %v535_v39 = vpop.f32.mrb[1].mxu1  ;;  %v595_v35 = vld [vmem:[%s2352_s4 + $0x8] sm:$0xff] }
 0x163   :  { %v607_v36 = vmul.f32 %v1418_v34, %v1418_v34  ;;  %v410_v38 = vpop.f32.mrb[1].mxu0  ;;  %v738_v40 = vmul.f32 %v535_v39, %v535_v39 }
 0x164   :  { %752 = vadd.xlane.f32.xlu0 %v739_v37  ;;  %v606_v62 = vmul.f32 %v410_v38, %v410_v38 }
 0x165   :  { %620 = vadd.xlane.f32.xlu1 %v607_v36 }
 0x168   :  { %618 = vadd.xlane.f32.xlu0 %v606_v62 }
 0x16c   :  { %750 = vadd.xlane.f32.xlu0 %v738_v40 }
 0x16d   :  { %v1471_v42 = vpop.f32.mrb[2].mxu1 }
 0x16e   :  { %v1421_v41 = vpop.f32.mrb[2].mxu0  ;;  %v741_v44 = vmul.f32 %v1471_v42, %v1471_v42  ;;  %v545_v46 = vpop.f32.mrb[3].mxu1 }
 0x16f   :  { %v609_v43 = vmul.f32 %v1421_v41, %v1421_v41  ;;  %v420_v45 = vpop.f32.mrb[3].mxu0  ;;  %v740_v48 = vmul.f32 %v545_v46, %v545_v46 }
 0x170   :  { %756 = vadd.xlane.f32.xlu0 %v741_v44  ;;  %v608_v47 = vmul.f32 %v420_v45, %v420_v45 }
 0x171   :  { %624 = vadd.xlane.f32.xlu1 %v609_v43 }
 0x174   :  { %754 = vadd.xlane.f32.xlu0 %v740_v48 }
 0x175   :  { %622 = vadd.xlane.f32.xlu1 %v608_v47 }
 0x179   :  { %v1474_v50 = vpop.f32.mrb[4].mxu1 }
 0x17a   :  { %v1424_v49 = vpop.f32.mrb[4].mxu0  ;;  %v743_v52 = vmul.f32 %v1474_v50, %v1474_v50  ;;  %v555_v54 = vpop.f32.mrb[5].mxu1 }
 0x17b   :  { %v611_v51 = vmul.f32 %v1424_v49, %v1424_v49  ;;  %v430_v53 = vpop.f32.mrb[5].mxu0  ;;  %v742_v56 = vmul.f32 %v555_v54, %v555_v54  ;;  %v594_v49 = vld [vmem:[%s2352_s4] sm:$0xff] }
 0x17c   :  { %760 = vadd.xlane.f32.xlu0 %v743_v52  ;;  %v610_v55 = vmul.f32 %v430_v53, %v430_v53 }
 0x17d   :  { %628 = vadd.xlane.f32.xlu1 %v611_v51 }
 0x180   :  { %758 = vadd.xlane.f32.xlu0 %v742_v56 }
 0x181   :  { %626 = vadd.xlane.f32.xlu1 %v610_v55 }
 0x185   :  { %v1477_v58 = vpop.f32.mrb[6].mxu1 }
 0x186   :  { %v1427_v57 = vpop.f32.mrb[6].mxu0  ;;  %v745_v60 = vmul.f32 %v1477_v58, %v1477_v58  ;;  %v565_v63 = vpop.f32.mrb[7].mxu1 }
 0x187   :  { %v613_v59 = vmul.f32 %v1427_v57, %v1427_v57  ;;  %v440_v61 = vpop.f32.mrb[7].mxu0  ;;  %v744_v2 = vmul.f32 %v565_v63, %v565_v63 }
 0x188   :  { %764 = vadd.xlane.f32.xlu0 %v745_v60  ;;  %v612_v0 = vmul.f32 %v440_v61, %v440_v61 }
 0x189   :  { %632 = vadd.xlane.f32.xlu1 %v613_v59 }
 0x18c   :  { %762 = vadd.xlane.f32.xlu0 %v744_v2 }
 0x18d   :  { %630 = vadd.xlane.f32.xlu1 %v612_v0  ;;  %v1090_v0 = vld [vmem:[#allocation2 + $0x8] sm:$0xff] }
 0x191   :  { %v1480_v4 = vpop.f32.mrb[8].mxu1 }
 0x192   :  { %v1430_v3 = vpop.f32.mrb[8].mxu0  ;;  %v747_v6 = vmul.f32 %v1480_v4, %v1480_v4  ;;  %v575_v8 = vpop.f32.mrb[9].mxu1 }
 0x193   :  { %v615_v5 = vmul.f32 %v1430_v3, %v1430_v3  ;;  %v450_v7 = vpop.f32.mrb[9].mxu0  ;;  %v746_v10 = vmul.f32 %v575_v8, %v575_v8 }
 0x194   :  { %768 = vadd.xlane.f32.xlu0 %v747_v6  ;;  %v614_v9 = vmul.f32 %v450_v7, %v450_v7 }
 0x195   :  { %636 = vadd.xlane.f32.xlu1 %v615_v5 }
 0x198   :  { %766 = vadd.xlane.f32.xlu0 %v746_v10 }
 0x199   :  { %634 = vadd.xlane.f32.xlu1 %v614_v9  ;;  %v1139_v9 = vld [vmem:[#allocation3 + $0x8] sm:$0xff] }
 0x19d   :  { %v1483_v12 = vpop.f32.mrb[10].mxu1 }
 0x19e   :  { %v1433_v11 = vpop.f32.mrb[10].mxu0  ;;  %v585_v14 = vpop.f32.mrb[11].mxu1  ;;  %v749_v18 = vmul.f32 %v1483_v12, %v1483_v12 }
 0x19f   :  { %v460_v13 = vpop.f32.mrb[11].mxu0  ;;  %v748_v16 = vmul.f32 %v585_v14, %v585_v14  ;;  %v617_v17 = vmul.f32 %v1433_v11, %v1433_v11 }
 0x1a0   :  { %v616_v15 = vmul.f32 %v460_v13, %v460_v13 }
 0x1a1   :  { %770 = vadd.xlane.f32.xlu0 %v748_v16 }
 0x1a2   :  { %638 = vadd.xlane.f32.xlu1 %v616_v15 }
 0x1a5   :  { %772 = vadd.xlane.f32.xlu0 %v749_v18  ;;  %v597_v18 = vld [vmem:[%s2352_s4 + $0x18] sm:$0xff] }
 0x1a6   :  { %640 = vadd.xlane.f32.xlu1 %v617_v17 }
 0x1f1   :  { %v753_v19 = vpop.xlane.xlu0 %752 }
 0x1f2   :  { %v621_v20 = vpop.xlane.xlu1 %620  ;;  %v775_v21 = vadd.f32 1e-08, %v753_v19 }
 0x1f3   :  { %v643_v22 = vadd.f32 1e-08, %v621_v20 }
 0x1f4   :  { %1553 = vrsqrt.f32 %v775_v21  ;;  %vm795_vm5 = vcmp.eq.f32.partialorder %v775_v21, inf  ;;  %vm797_vm6 = vcmp.eq.f32.partialorder %v775_v21, 0.0  ;;  %v798_v34 = vand.u32 2147483648, %v775_v21 }
 0x1f5   :  { %1555 = vrsqrt.f32 %v643_v22  ;;  %v619_v23 = vpop.xlane.xlu0 %618  ;;  %vm663_vm7 = vcmp.eq.f32.partialorder %v643_v22, inf  ;;  %vm665_vm8 = vcmp.eq.f32.partialorder %v643_v22, 0.0  ;;  %v666_v38 = vand.u32 2147483648, %v643_v22 }
 0x1f6   :  { %v642_v24 = vadd.f32 1e-08, %v619_v23 }
 0x1f8   :  { %1557 = vrsqrt.f32 %v642_v24  ;;  %vm656_vm9 = vcmp.eq.f32.partialorder %v642_v24, inf  ;;  %vm658_vm10 = vcmp.eq.f32.partialorder %v642_v24, 0.0  ;;  %v659_v43 = vand.u32 2147483648, %v642_v24 }
 0x1f9   :  { %v751_v25 = vpop.xlane.xlu0 %750 }
 0x1fa   :  { %v1938_v26 = vadd.f32 1e-08, %v751_v25 }
 0x1fc   :  { %1559 = vrsqrt.f32 %v1938_v26  ;;  %vm788_vm11 = vcmp.eq.f32.partialorder %v1938_v26, inf  ;;  %vm790_vm12 = vcmp.eq.f32.partialorder %v1938_v26, 0.0  ;;  %v791_v53 = vand.u32 2147483648, %v1938_v26 }
 0x1fd   :  { %v757_v27 = vpop.xlane.xlu0 %756 }
 0x1fe   :  { %v625_v28 = vpop.xlane.xlu1 %624  ;;  %v1554_v29 = vpop.eup %1553  ;;  %v1941_v30 = vadd.f32 1e-08, %v757_v27 }
 0x1ff   :  { %v1943_v31 = vadd.f32 1e-08, %v625_v28  ;;  %v1556_v32 = vpop.eup %1555  ;;  %v794_v33 = vmul.f32 %v1554_v29, %v775_v21 }
 0x200   :  { %v662_v36 = vmul.f32 %v1556_v32, %v643_v22  ;;  %1561 = vrsqrt.f32 %v1941_v30  ;;  %vm809_vm13 = vcmp.eq.f32.partialorder %v1941_v30, inf  ;;  %vm811_vm14 = vcmp.eq.f32.partialorder %v1941_v30, 0.0 }
 0x201   :  { %v796_v37 = vsel %vm795_vm5, %v775_v21, %v794_v33  ;;  %1563 = vrsqrt.f32 %v1943_v31  ;;  %v755_v39 = vpop.xlane.xlu0 %754  ;;  %v812_v61 = vand.u32 2147483648, %v1941_v30  ;;  %vm677_vm15 = vcmp.eq.f32.partialorder %v1943_v31, inf }
 0x202   :  { %v623_v62 = vpop.xlane.xlu1 %622  ;;  %v1558_v40 = vpop.eup %1557  ;;  %v799_v41 = vsel %vm797_vm6, %v798_v34, %v796_v37  ;;  %v664_v42 = vsel %vm663_vm7, %v643_v22, %v662_v36  ;;  %v1950_v47 = vadd.f32 1e-08, %v755_v39  ;;  %vm679_vm0 = vcmp.eq.f32.partialorder %v1943_v31, 0.0  ;;  %v1138_v37 = vld [vmem:[#allocation3] sm:$0xff] }
 0x203   :  { %v907_v44 = vsub.f32 %v595_v35, %v799_v41  ;;  %v667_v45 = vsel %vm665_vm8, %v666_v38, %v664_v42  ;;  %v655_v46 = vmul.f32 %v1558_v40, %v642_v24  ;;  %v1957_v50 = vadd.f32 1e-08, %v623_v62 }
 0x204   :  { %v871_v48 = vsub.f32 %v667_v45, %v595_v35  ;;  %1565 = vrsqrt.f32 %v1950_v47  ;;  %v680_v4 = vand.u32 2147483648, %v1943_v31  ;;  %vm802_vm5 = vcmp.eq.f32.partialorder %v1950_v47, inf }
 0x205   :  { %v919_v51 = vadd.f32 0.2, %v907_v44  ;;  %v657_v52 = vsel %vm656_vm9, %v642_v24, %v655_v46  ;;  %1567 = vrsqrt.f32 %v1957_v50  ;;  %vm804_vm6 = vcmp.eq.f32.partialorder %v1950_v47, 0.0 }
 0x206   :  { %v1560_v54 = vpop.eup %1559  ;;  %v883_v55 = vadd.f32 0.2, %v871_v48  ;;  %v660_v56 = vsel %vm658_vm10, %v659_v43, %v657_v52  ;;  %vm670_vm7 = vcmp.eq.f32.partialorder %v1957_v50, inf  ;;  %vm672_vm8 = vcmp.eq.f32.partialorder %v1957_v50, 0.0 }
 0x207   :  { %v931_v57 = vmax.f32 %v919_v51, 0.0  ;;  %v870_v58 = vsub.f32 %v660_v56, %v594_v49  ;;  %v787_v59 = vmul.f32 %v1560_v54, %v1938_v26  ;;  %v673_v42 = vand.u32 2147483648, %v1957_v50 }
 0x208   :  { %v895_v60 = vmax.f32 %v883_v55, 0.0  ;;  %v1092_v55 = vld [vmem:[#allocation2 + $0x18] sm:$0xff] }
 0x209   :  { %vm1970_vm1 = vcmp.gt.f32.partialorder %v931_v57, 0.0  ;;  %v882_v2 = vadd.f32 0.2, %v870_v58  ;;  %v789_v3 = vsel %vm788_vm11, %v1938_v26, %v787_v59  ;;  %v761_v5 = vpop.xlane.xlu0 %760  ;;  %v805_v26 = vand.u32 2147483648, %v1950_v47 }
 0x20a   :  { %v629_v6 = vpop.xlane.xlu1 %628  ;;  %v1562_v7 = vpop.eup %1561  ;;  %vm1030_vm2 = vcmp.gt.f32.partialorder %v895_v60, 0.0  ;;  %v1102_v8 = vadd.f32 %v931_v57, %v895_v60  ;;  %v792_v10 = vsel %vm790_vm12, %v791_v53, %v789_v3  ;;  %v1980_v11 = vadd.f32 1e-08, %v761_v5 }
 0x20b   :  { %v1564_v12 = vpop.eup %1563  ;;  %vm1054_vm3 = vmor %vm1030_vm2, %vm1970_vm1  ;;  %v906_v13 = vsub.f32 %v594_v49, %v792_v10  ;;  %v808_v14 = vmul.f32 %v1562_v7, %v1941_v30  ;;  %v1986_v15 = vadd.f32 1e-08, %v629_v6  ;;  %v894_v21 = vmax.f32 %v882_v2, 0.0 }
 0x20c   :  { %v1317_v16 = vsel %vm1054_vm3, 1.0, %v1628_v1  ;;  %v1114_v17 = vadd.f32 %v1102_v8, %v1090_v0  ;;  %v676_v19 = vmul.f32 %v1564_v12, %v1943_v31  ;;  %1569 = vrsqrt.f32 %v1980_v11  ;;  %v599_v8 = vld [vmem:[%s2352_s4 + $0x28] sm:$0xff] }
 0x20d   :  { %v1151_v20 = vadd.f32 %v1317_v16, %v1139_v9  ;;  %v918_v22 = vadd.f32 0.2, %v906_v13  ;;  %v810_v23 = vsel %vm809_vm13, %v1941_v30, %v808_v14  ;;  %v1089_v30 = vld [vmem:[#allocation2] sm:$0xff]  ;;  %1571 = vrsqrt.f32 %v1986_v15  ;;  %v759_v39 = vpop.xlane.xlu0 %758 }
 0x20e   :  { %1127 = vst.msk [vmem:[#allocation2 + $0x8] sm:$0xff] %vm25_vm4, %v1114_v17  ;;  %v813_v24 = vsel %vm811_vm14, %v812_v61, %v810_v23  ;;  %v678_v25 = vsel %vm677_vm15, %v1943_v31, %v676_v19  ;;  %v1566_v27 = vpop.eup %1565  ;;  %vm1029_vm9 = vcmp.gt.f32.partialorder %v894_v21, 0.0  ;;  %v596_v31 = vld [vmem:[%s2352_s4 + $0x10] sm:$0xff]  ;;  %v627_v43 = vpop.xlane.xlu1 %626  ;;  %v2033_v57 = vadd.f32 1e-08, %v759_v39  ;;  %v1141_v61 = vld [vmem:[#allocation3 + $0x18] sm:$0xff] }
 0x20f   :  { %1163 = vst.msk [vmem:[#allocation3 + $0x8] sm:$0xff] %vm25_vm4, %v1151_v20  ;;  %v930_v28 = vmax.f32 %v918_v22, 0.0  ;;  %v909_v29 = vsub.f32 %v597_v18, %v813_v24  ;;  %v681_v32 = vsel %vm679_vm0, %v680_v4, %v678_v25  ;;  %v801_v34 = vmul.f32 %v1566_v27, %v1950_v47  ;;  %v1568_v35 = vpop.eup %1567  ;;  %v1140_v22 = vld [vmem:[#allocation3 + $0x10] sm:$0xff] }
 0x210   :  { %v873_v33 = vsub.f32 %v681_v32, %v597_v18  ;;  %v669_v41 = vmul.f32 %v1568_v35, %v1957_v50  ;;  %vm823_vm15 = vcmp.eq.f32.partialorder %v1980_v11, inf  ;;  %v826_v3 = vand.u32 2147483648, %v1980_v11  ;;  %v1091_v18 = vld [vmem:[#allocation2 + $0x10] sm:$0xff] }
 0x211   :  { %vm1041_vm10 = vcmp.gt.f32.partialorder %v930_v28, 0.0  ;;  %v1101_v36 = vadd.f32 %v930_v28, %v894_v21  ;;  %v921_v38 = vadd.f32 0.2, %v909_v29  ;;  %v803_v40 = vsel %vm802_vm5, %v1950_v47, %v801_v34 }
 0x212   :  { %vm1053_vm11 = vmor %vm1029_vm9, %vm1041_vm10  ;;  %v885_v62 = vadd.f32 0.2, %v873_v33  ;;  %v806_v48 = vsel %vm804_vm6, %v805_v26, %v803_v40  ;;  %v671_v53 = vsel %vm670_vm7, %v1957_v50, %v669_v41  ;;  %v2035_v47 = vadd.f32 1e-08, %v627_v43  ;;  %v598_v43 = vld [vmem:[%s2352_s4 + $0x20] sm:$0xff] }
 0x213   :  { %v1316_v44 = vsel %vm1053_vm11, 1.0, %v1628_v1  ;;  %v1113_v45 = vadd.f32 %v1101_v36, %v1089_v30  ;;  %v933_v46 = vmax.f32 %v921_v38, 0.0  ;;  %v908_v52 = vsub.f32 %v596_v31, %v806_v48 }
 0x214   :  { %v1150_v49 = vadd.f32 %v1316_v44, %v1138_v37  ;;  %v897_v51 = vmax.f32 %v885_v62, 0.0  ;;  %v674_v56 = vsel %vm672_vm8, %v673_v42, %v671_v53  ;;  %1573 = vrsqrt.f32 %v2033_v57  ;;  %v1143_v53 = vld [vmem:[#allocation3 + $0x28] sm:$0xff] }
 0x215   :  { %1126 = vst.msk [vmem:[#allocation2] sm:$0xff] %vm25_vm4, %v1113_v45  ;;  %vm2027_vm12 = vcmp.gt.f32.partialorder %v933_v46, 0.0  ;;  %v765_v58 = vpop.xlane.xlu0 %764  ;;  %v920_v63 = vadd.f32 0.2, %v908_v52  ;;  %v872_v0 = vsub.f32 %v674_v56, %v596_v31  ;;  %vm825_vm0 = vcmp.eq.f32.partialorder %v1980_v11, 0.0 }
 0x216   :  { %v1570_v59 = vpop.eup %1569  ;;  %1162 = vst.msk [vmem:[#allocation3] sm:$0xff] %vm25_vm4, %v1150_v49  ;;  %vm1032_vm13 = vcmp.gt.f32.partialorder %v897_v51, 0.0  ;;  %v1104_v60 = vadd.f32 %v933_v46, %v897_v51  ;;  %v633_v2 = vpop.xlane.xlu1 %632  ;;  %1575 = vrsqrt.f32 %v2035_v47  ;;  %vm691_vm2 = vcmp.eq.f32.partialorder %v1986_v15, inf  ;;  %v1094_v46 = vld [vmem:[#allocation2 + $0x28] sm:$0xff] }
 0x217   :  { %vm1056_vm14 = vmor %vm1032_vm13, %vm2027_vm12  ;;  %v822_v50 = vmul.f32 %v1570_v59, %v1980_v11  ;;  %v932_v6 = vmax.f32 %v920_v63, 0.0  ;;  %v884_v7 = vadd.f32 0.2, %v872_v0  ;;  %v1572_v12 = vpop.eup %1571  ;;  %v2060_v23 = vadd.f32 1e-08, %v765_v58 }
 0x218   :  { %v1319_v4 = vsel %vm1056_vm14, 1.0, %v1628_v1  ;;  %v1116_v5 = vadd.f32 %v1104_v60, %v1092_v55  ;;  %v690_v20 = vmul.f32 %v1572_v12, %v1986_v15  ;;  %v2062_v24 = vadd.f32 1e-08, %v633_v2 }
 0x219   :  { %v1153_v9 = vadd.f32 %v1319_v4, %v1141_v61  ;;  %v824_v10 = vsel %vm823_vm15, %v1980_v11, %v822_v50  ;;  %vm2052_vm1 = vcmp.gt.f32.partialorder %v932_v6, 0.0  ;;  %v896_v14 = vmax.f32 %v884_v7, 0.0  ;;  %v763_v17 = vpop.xlane.xlu0 %762 }
 0x21a   :  { %1129 = vst.msk [vmem:[#allocation2 + $0x18] sm:$0xff] %vm25_vm4, %v1116_v5  ;;  %v827_v16 = vsel %vm825_vm0, %v826_v3, %v824_v10  ;;  %v694_v11 = vand.u32 2147483648, %v1986_v15  ;;  %v631_v25 = vpop.xlane.xlu1 %630  ;;  %v692_v27 = vsel %vm691_vm2, %v1986_v15, %v690_v20  ;;  %vm693_vm6 = vcmp.eq.f32.partialorder %v1986_v15, 0.0 }
 0x21b   :  { %1165 = vst.msk [vmem:[#allocation3 + $0x18] sm:$0xff] %vm25_vm4, %v1153_v9  ;;  %v911_v19 = vsub.f32 %v599_v8, %v827_v16  ;;  %vm1031_vm3 = vcmp.gt.f32.partialorder %v896_v14, 0.0  ;;  %v1103_v21 = vadd.f32 %v932_v6, %v896_v14  ;;  %v2068_v28 = vadd.f32 1e-08, %v763_v17  ;;  %v601_v9 = vld [vmem:[%s2352_s4 + $0x38] sm:$0xff] }
 0x21c   :  { %vm1055_vm5 = vmor %vm1031_vm3, %vm2052_vm1  ;;  %v695_v30 = vsel %vm693_vm6, %v694_v11, %v692_v27  ;;  %1577 = vrsqrt.f32 %v2060_v23  ;;  %v2072_v36 = vadd.f32 1e-08, %v631_v25  ;;  %vm816_vm7 = vcmp.eq.f32.partialorder %v2033_v57, inf  ;;  %v1093_v11 = vld [vmem:[#allocation2 + $0x20] sm:$0xff] }
 0x21d   :  { %v923_v26 = vadd.f32 0.2, %v911_v19  ;;  %v1318_v29 = vsel %vm1055_vm5, 1.0, %v1628_v1  ;;  %v1115_v32 = vadd.f32 %v1103_v21, %v1091_v18  ;;  %v875_v35 = vsub.f32 %v695_v30, %v599_v8  ;;  %v1142_v27 = vld [vmem:[#allocation3 + $0x20] sm:$0xff] }
 0x21e   :  { %v1152_v33 = vadd.f32 %v1318_v29, %v1140_v22  ;;  %vm818_vm8 = vcmp.eq.f32.partialorder %v2033_v57, 0.0  ;;  %1579 = vrsqrt.f32 %v2062_v24  ;;  %v1574_v15 = vpop.eup %1573  ;;  %v819_v38 = vand.u32 2147483648, %v2033_v57 }
 0x21f   :  { %v935_v34 = vmax.f32 %v923_v26, 0.0  ;;  %1128 = vst.msk [vmem:[#allocation2 + $0x10] sm:$0xff] %vm25_vm4, %v1115_v32  ;;  %v887_v37 = vadd.f32 0.2, %v875_v35  ;;  %vm684_vm9 = vcmp.eq.f32.partialorder %v2035_v47, inf  ;;  %vm686_vm10 = vcmp.eq.f32.partialorder %v2035_v47, 0.0 }
 0x220   :  { %1164 = vst.msk [vmem:[#allocation3 + $0x10] sm:$0xff] %vm25_vm4, %v1152_v33  ;;  %v815_v39 = vmul.f32 %v1574_v15, %v2033_v57  ;;  %v687_v62 = vand.u32 2147483648, %v2035_v47  ;;  %vm837_vm11 = vcmp.eq.f32.partialorder %v2060_v23, inf  ;;  %1581 = vrsqrt.f32 %v2068_v28  ;;  %v1576_v40 = vpop.eup %1575  ;;  %v600_v32 = vld [vmem:[%s2352_s4 + $0x30] sm:$0xff] }
 0x221   :  { %v769_v31 = vpop.xlane.xlu0 %768  ;;  %vm2086_vm12 = vcmp.gt.f32.partialorder %v935_v34, 0.0  ;;  %v899_v42 = vmax.f32 %v887_v37, 0.0  ;;  %vm839_vm13 = vcmp.eq.f32.partialorder %v2060_v23, 0.0  ;;  %v840_v44 = vand.u32 2147483648, %v2060_v23 }
 0x222   :  { %1583 = vrsqrt.f32 %v2072_v36  ;;  %v637_v45 = vpop.xlane.xlu1 %636  ;;  %v817_v48 = vsel %vm816_vm7, %v2033_v57, %v815_v39  ;;  %v683_v49 = vmul.f32 %v1576_v40, %v2035_v47  ;;  %vm705_vm14 = vcmp.eq.f32.partialorder %v2062_v24, inf }
 0x223   :  { %v708_v51 = vand.u32 2147483648, %v2062_v24  ;;  %vm1034_vm15 = vcmp.gt.f32.partialorder %v899_v42, 0.0  ;;  %v1106_v52 = vadd.f32 %v935_v34, %v899_v42  ;;  %v820_v54 = vsel %vm818_vm8, %v819_v38, %v817_v48 }
 0x224   :  { %vm707_vm0 = vcmp.eq.f32.partialorder %v2062_v24, 0.0  ;;  %v2105_v55 = vadd.f32 1e-08, %v769_v31  ;;  %vm1058_vm1 = vmor %vm1034_vm15, %vm2086_vm12  ;;  %v910_v58 = vsub.f32 %v598_v43, %v820_v54  ;;  %v685_v59 = vsel %vm684_vm9, %v2035_v47, %v683_v49 }
 0x225   :  { %v767_v56 = vpop.xlane.xlu0 %766  ;;  %vm830_vm2 = vcmp.eq.f32.partialorder %v2068_v28, inf  ;;  %v2113_v60 = vadd.f32 1e-08, %v637_v45  ;;  %v1321_v57 = vsel %vm1058_vm1, 1.0, %v1628_v1  ;;  %v1118_v63 = vadd.f32 %v1106_v52, %v1094_v46 }
 0x226   :  { %v2115_v61 = vadd.f32 1e-08, %v767_v56  ;;  %v688_v0 = vsel %vm686_vm10, %v687_v62, %v685_v59  ;;  %1585 = vrsqrt.f32 %v2105_v55  ;;  %v1578_v2 = vpop.eup %1577  ;;  %v1155_v50 = vadd.f32 %v1321_v57, %v1143_v53  ;;  %v1096_v53 = vld [vmem:[#allocation2 + $0x38] sm:$0xff] }
 0x227   :  { %v922_v3 = vadd.f32 0.2, %v910_v58  ;;  %v874_v4 = vsub.f32 %v688_v0, %v598_v43  ;;  %vm832_vm3 = vcmp.eq.f32.partialorder %v2068_v28, 0.0  ;;  %1131 = vst.msk [vmem:[#allocation2 + $0x28] sm:$0xff] %vm25_vm4, %v1118_v63  ;;  %v836_v5 = vmul.f32 %v1578_v2, %v2060_v23  ;;  %v1145_v57 = vld [vmem:[#allocation3 + $0x38] sm:$0xff]  ;;  %v603_v2 = vld [vmem:[%s2352_s4 + $0x48] sm:$0xff] }
 0x228   :  { %v833_v6 = vand.u32 2147483648, %v2068_v28  ;;  %vm698_vm5 = vcmp.eq.f32.partialorder %v2072_v36, inf  ;;  %1587 = vrsqrt.f32 %v2113_v60  ;;  %v1580_v47 = vpop.eup %1579  ;;  %1167 = vst.msk [vmem:[#allocation3 + $0x28] sm:$0xff] %vm25_vm4, %v1155_v50  ;;  %vm700_vm6 = vcmp.eq.f32.partialorder %v2072_v36, 0.0 }
 0x229   :  { %v934_v7 = vmax.f32 %v922_v3, 0.0  ;;  %v886_v8 = vadd.f32 0.2, %v874_v4  ;;  %v701_v10 = vand.u32 2147483648, %v2072_v36  ;;  %v838_v12 = vsel %vm837_vm11, %v2060_v23, %v836_v5 }
 0x22a   :  { %v704_v13 = vmul.f32 %v1580_v47, %v2062_v24  ;;  %vm851_vm7 = vcmp.eq.f32.partialorder %v2105_v55, inf  ;;  %1589 = vrsqrt.f32 %v2115_v61  ;;  %v1582_v14 = vpop.eup %1581  ;;  %v841_v18 = vsel %vm839_vm13, %v840_v44, %v838_v12  ;;  %v1095_v12 = vld [vmem:[#allocation2 + $0x30] sm:$0xff] }
 0x22b   :  { %vm2139_vm8 = vcmp.gt.f32.partialorder %v934_v7, 0.0  ;;  %v898_v17 = vmax.f32 %v886_v8, 0.0  ;;  %v854_v19 = vand.u32 2147483648, %v2105_v55  ;;  %v913_v21 = vsub.f32 %v601_v9, %v841_v18  ;;  %v1144_v18 = vld [vmem:[#allocation3 + $0x30] sm:$0xff]  ;;  %v1146_v8 = vld [vmem:[#allocation3 + $0x40] sm:$0xff] }
 0x22c   :  { %v1584_v20 = vpop.eup %1583  ;;  %v706_v22 = vsel %vm705_vm14, %v2062_v24, %v704_v13  ;;  %v829_v25 = vmul.f32 %v1582_v14, %v2068_v28  ;;  %vm853_vm9 = vcmp.eq.f32.partialorder %v2105_v55, 0.0  ;;  %vm719_vm10 = vcmp.eq.f32.partialorder %v2113_v60, inf  ;;  %v635_v24 = vpop.xlane.xlu1 %634 }
 0x22d   :  { %v722_v26 = vand.u32 2147483648, %v2113_v60  ;;  %vm1033_vm11 = vcmp.gt.f32.partialorder %v898_v17, 0.0  ;;  %v1105_v23 = vadd.f32 %v934_v7, %v898_v17  ;;  %v709_v29 = vsel %vm707_vm0, %v708_v51, %v706_v22 }
 0x22e   :  { %v697_v30 = vmul.f32 %v1584_v20, %v2072_v36  ;;  %vm1057_vm12 = vmor %vm1033_vm11, %vm2139_vm8  ;;  %v925_v33 = vadd.f32 0.2, %v913_v21  ;;  %v877_v34 = vsub.f32 %v709_v29, %v601_v9  ;;  %v831_v35 = vsel %vm830_vm2, %v2068_v28, %v829_v25  ;;  %v771_v52 = vpop.xlane.xlu0 %770 }
 0x22f   :  { %vm721_vm13 = vcmp.eq.f32.partialorder %v2113_v60, 0.0  ;;  %vm844_vm14 = vcmp.eq.f32.partialorder %v2115_v61, inf  ;;  %v1320_v15 = vsel %vm1057_vm12, 1.0, %v1628_v1  ;;  %v1117_v37 = vadd.f32 %v1105_v23, %v1093_v11 }
 0x230   :  { %v834_v38 = vsel %vm832_vm3, %v833_v6, %v831_v35  ;;  %v699_v31 = vsel %vm698_vm5, %v2072_v36, %v697_v30  ;;  %v1586_v39 = vpop.eup %1585  ;;  %v1154_v62 = vadd.f32 %v1320_v15, %v1142_v27  ;;  %v937_v40 = vmax.f32 %v925_v33, 0.0  ;;  %v639_v50 = vpop.xlane.xlu1 %638  ;;  %v1098_v35 = vld [vmem:[#allocation2 + $0x48] sm:$0xff] }
 0x231   :  { %v889_v41 = vadd.f32 0.2, %v877_v34  ;;  %v912_v42 = vsub.f32 %v600_v32, %v834_v38  ;;  %1130 = vst.msk [vmem:[#allocation2 + $0x20] sm:$0xff] %vm25_vm4, %v1117_v37  ;;  %v702_v43 = vsel %vm700_vm6, %v701_v10, %v699_v31  ;;  %v850_v44 = vmul.f32 %v1586_v39, %v2105_v55  ;;  %v1147_v37 = vld [vmem:[#allocation3 + $0x48] sm:$0xff] }
 0x232   :  { %vm846_vm15 = vcmp.eq.f32.partialorder %v2115_v61, 0.0  ;;  %v2177_v28 = vadd.f32 1e-08, %v635_v24  ;;  %v1588_v45 = vpop.eup %1587  ;;  %1166 = vst.msk [vmem:[#allocation3 + $0x20] sm:$0xff] %vm25_vm4, %v1154_v62  ;;  %vm2180_vm0 = vcmp.gt.f32.partialorder %v937_v40, 0.0  ;;  %v876_v51 = vsub.f32 %v702_v43, %v600_v32  ;;  %v773_v21 = vpop.xlane.xlu0 %772 }
 0x233   :  { %v901_v48 = vmax.f32 %v889_v41, 0.0  ;;  %v924_v49 = vadd.f32 0.2, %v912_v42  ;;  %v852_v36 = vsel %vm851_vm7, %v2105_v55, %v850_v44  ;;  %v718_v54 = vmul.f32 %v1588_v45, %v2113_v60  ;;  %v602_v55 = vld [vmem:[%s2352_s4 + $0x40] sm:$0xff] }
 0x234   :  { %v847_v56 = vand.u32 2147483648, %v2115_v61  ;;  %1591 = vrsqrt.f32 %v2177_v28  ;;  %v1590_v58 = vpop.eup %1589  ;;  %v888_v0 = vadd.f32 0.2, %v876_v51  ;;  %v855_v3 = vsel %vm853_vm9, %v854_v19, %v852_v36  ;;  %v641_v23 = vpop.xlane.xlu1 %640  ;;  %v1177_v42 = vld [vmem:[#allocation2] sm:$0xff] }
 0x235   :  { %vm1036_vm1 = vcmp.gt.f32.partialorder %v901_v48, 0.0  ;;  %v1108_v59 = vadd.f32 %v937_v40, %v901_v48  ;;  %v936_v63 = vmax.f32 %v924_v49, 0.0  ;;  %v720_v4 = vsel %vm719_vm10, %v2113_v60, %v718_v54  ;;  %v1218_v36 = vld [vmem:[#allocation3] sm:$0xff]  ;;  %v604_v54 = vld [vmem:[%s2352_s4 + $0x50] sm:$0xff] }
 0x236   :  { %vm1060_vm2 = vmor %vm1036_vm1, %vm2180_vm0  ;;  %v843_v5 = vmul.f32 %v1590_v58, %v2115_v61  ;;  %v2201_v6 = vadd.f32 1e-08, %v771_v52  ;;  %v900_v9 = vmax.f32 %v888_v0, 0.0  ;;  %v915_v13 = vsub.f32 %v603_v2, %v855_v3  ;;  %v1179_v58 = vld [vmem:[#allocation2 + $0x10] sm:$0xff]  ;;  %v1219_v0 = vld [vmem:[#allocation3 + $0x8] sm:$0xff] }
 0x237   :  { %v1323_v47 = vsel %vm1060_vm2, 1.0, %v1628_v1  ;;  %v1120_v7 = vadd.f32 %v1108_v59, %v1096_v53  ;;  %vm2204_vm3 = vcmp.gt.f32.partialorder %v936_v63, 0.0  ;;  %v723_v14 = vsel %vm721_vm13, %v722_v26, %v720_v4  ;;  %v1178_v53 = vld [vmem:[#allocation2 + $0x8] sm:$0xff] }
 0x238   :  { %v1157_v10 = vadd.f32 %v1323_v47, %v1145_v57  ;;  %v845_v16 = vsel %vm844_vm14, %v2115_v61, %v843_v5  ;;  %vm1035_vm5 = vcmp.gt.f32.partialorder %v900_v9, 0.0  ;;  %v1107_v17 = vadd.f32 %v936_v63, %v900_v9 }
 0x239   :  { %1133 = vst.msk [vmem:[#allocation2 + $0x38] sm:$0xff] %vm25_vm4, %v1120_v7  ;;  %v879_v19 = vsub.f32 %v723_v14, %v603_v2  ;;  %v848_v20 = vsel %vm846_vm15, %v847_v56, %v845_v16  ;;  %vm1059_vm6 = vmor %vm1035_vm5, %vm2204_vm3  ;;  %v927_v60 = vadd.f32 0.2, %v915_v13  ;;  %1593 = vrsqrt.f32 %v2201_v6  ;;  %v1220_v2 = vld [vmem:[#allocation3 + $0x10] sm:$0xff]  ;;  %v1222_v13 = vld [vmem:[#allocation3 + $0x20] sm:$0xff] }
 0x23a   :  { %1169 = vst.msk [vmem:[#allocation3 + $0x38] sm:$0xff] %vm25_vm4, %v1157_v10  ;;  %v914_v11 = vsub.f32 %v602_v55, %v848_v20  ;;  %v1322_v22 = vsel %vm1059_vm6, 1.0, %v1628_v1  ;;  %v1119_v25 = vadd.f32 %v1107_v17, %v1095_v12  ;;  %v2225_v30 = vadd.f32 1e-08, %v639_v50  ;;  %v1097_v50 = vld [vmem:[#allocation2 + $0x40] sm:$0xff]  ;;  %v1221_v12 = vld [vmem:[#allocation3 + $0x18] sm:$0xff] }
 0x23b   :  { %v891_v26 = vadd.f32 0.2, %v879_v19  ;;  %v1156_v27 = vadd.f32 %v1322_v22, %v1144_v18  ;;  %v939_v29 = vmax.f32 %v927_v60, 0.0  ;;  %v2227_v33 = vadd.f32 1e-08, %v773_v21 }
 0x23c   :  { %v926_v32 = vadd.f32 0.2, %v914_v11  ;;  %1132 = vst.msk [vmem:[#allocation2 + $0x30] sm:$0xff] %vm25_vm4, %v1119_v25  ;;  %v2230_v24 = vadd.f32 1e-08, %v641_v23  ;;  %1595 = vrsqrt.f32 %v2225_v30  ;;  %vm712_vm10 = vcmp.eq.f32.partialorder %v2177_v28, inf }
 0x23d   :  { %v903_v61 = vmax.f32 %v891_v26, 0.0  ;;  %1168 = vst.msk [vmem:[#allocation3 + $0x30] sm:$0xff] %vm25_vm4, %v1156_v27  ;;  %vm1050_vm7 = vcmp.gt.f32.partialorder %v939_v29, 0.0  ;;  %vm714_vm11 = vcmp.eq.f32.partialorder %v2177_v28, 0.0  ;;  %v715_v39 = vand.u32 2147483648, %v2177_v28  ;;  %v1180_v25 = vld [vmem:[#allocation2 + $0x18] sm:$0xff] }
 0x23e   :  { %v1592_v34 = vpop.eup %1591  ;;  %v938_v31 = vmax.f32 %v926_v32, 0.0  ;;  %1597 = vrsqrt.f32 %v2227_v33  ;;  %vm858_vm12 = vcmp.eq.f32.partialorder %v2201_v6, inf  ;;  %vm860_vm13 = vcmp.eq.f32.partialorder %v2201_v6, 0.0  ;;  %v1181_v32 = vld [vmem:[#allocation2 + $0x20] sm:$0xff] }
 0x23f   :  { %vm1038_vm8 = vcmp.gt.f32.partialorder %v903_v61, 0.0  ;;  %v1110_v15 = vadd.f32 %v939_v29, %v903_v61  ;;  %v711_v38 = vmul.f32 %v1592_v34, %v2177_v28  ;;  %1599 = vrsqrt.f32 %v2230_v24  ;;  %v605_v29 = vld [vmem:[%s2352_s4 + $0x58] sm:$0xff]  ;;  %s1629_s4 = smov [#allocation4]  }
 0x240   :  { %vm1062_vm9 = vmor %vm1038_vm8, %vm1050_vm7  ;;  %v861_v48 = vand.u32 2147483648, %v2201_v6  ;;  %vm2247_vm14 = vcmp.gt.f32.partialorder %v938_v31, 0.0  ;;  %vm726_vm15 = vcmp.eq.f32.partialorder %v2225_v30, inf  ;;  %vm728_vm0 = vcmp.eq.f32.partialorder %v2225_v30, 0.0  ;;  %s1272_s16 = sshll.u32 %s1629_s4, 4  ;;  %s1273_s16 = int_to_ptr.vmem [resolvable:$true] %s1272_s16 }
 0x241   :  { %v1325_v62 = vsel %vm1062_vm9, 1.0, %v1628_v1  ;;  %v1122_v40 = vadd.f32 %v1110_v15, %v1098_v35  ;;  %v713_v41 = vsel %vm712_vm10, %v2177_v28, %v711_v38  ;;  %v1189_v28 = vsel %vm25_vm4, %v1177_v42, 0.0  ;;  %s1603_s3 = scalar_lea.vmem %s1273_s16, 16  ;;  %s1607_s17 = scalar_lea.vmem %s1273_s16, 32 }
 0x242   :  { %v1159_v43 = vadd.f32 %v1325_v62, %v1147_v37  ;;  %v716_v44 = vsel %vm714_vm11, %v715_v39, %v713_v41  ;;  %v729_v56 = vand.u32 2147483648, %v2225_v30  ;;  %vm865_vm1 = vcmp.eq.f32.partialorder %v2227_v33, inf  ;;  %p1604_p0 = scmp.ne.s32.totalorder %s1273_s16, %s1603_s3  ;;  %p1608_p1 = scmp.lt.s32.totalorder %s1273_s16, %s1273_s16 }
 0x243   :  { %1135 = vst.msk [vmem:[#allocation2 + $0x48] sm:$0xff] %vm25_vm4, %v1122_v40  ;;  %v878_v45 = vsub.f32 %v716_v44, %v602_v55  ;;  %v1594_v46 = vpop.eup %1593  ;;  %vm867_vm2 = vcmp.eq.f32.partialorder %v2227_v33, 0.0  ;;  %v868_v63 = vand.u32 2147483648, %v2227_v33  ;;  %vm733_vm3 = vcmp.eq.f32.partialorder %v2230_v24, inf  ;;  %p1609_p2 = scmp.lt.s32.totalorder %s1607_s17, %s1603_s3 }
 0x244   :  { %1171 = vst.msk [vmem:[#allocation3 + $0x48] sm:$0xff] %vm25_vm4, %v1159_v43  ;;  %v857_v52 = vmul.f32 %v1594_v46, %v2201_v6  ;;  %vm735_vm5 = vcmp.eq.f32.partialorder %v2230_v24, 0.0  ;;  %v1190_v4 = vsel %vm25_vm4, %v1178_v53, 0.0  ;;  %v1230_v5 = vsel %vm25_vm4, %v1218_v36, 0.0  ;;  %v1183_v36 = vld [vmem:[#allocation2 + $0x30] sm:$0xff] }
 0x245   :  { %v890_v51 = vadd.f32 0.2, %v878_v45  ;;  %v1192_v55 = vsel %vm25_vm4, %v1179_v58, 0.0  ;;  %v1231_v14 = vsel %vm25_vm4, %v1219_v0, 0.0  ;;  %v1233_v16 = vsel %vm25_vm4, %v1220_v2, 0.0  ;;  %v1223_v45 = vld [vmem:[#allocation3 + $0x28] sm:$0xff]  ;;  %p1610_p3 = por %p1609_p2, %p1608_p1 }
 0x246   :  { %v859_v57 = vsel %vm858_vm12, %v2201_v6, %v857_v52  ;;  %v1596_v47 = vpop.eup %1595  ;;  %v1191_v6 = vadd.f32 %v1190_v4, %v1189_v28  ;;  %v1232_v60 = vadd.f32 %v1231_v14, %v1230_v5  ;;  %v1235_v34 = vsel %vm25_vm4, %v1221_v12, 0.0  ;;  %v1149_v12 = vld [vmem:[#allocation3 + $0x58] sm:$0xff] }
 0x247   :  { %v902_v59 = vmax.f32 %v890_v51, 0.0  ;;  %v862_v3 = vsel %vm860_vm13, %v861_v48, %v859_v57  ;;  %v725_v10 = vmul.f32 %v1596_v47, %v2225_v30  ;;  %v1237_v35 = vsel %vm25_vm4, %v1222_v13, 0.0  ;;  %v1182_v48 = vld [vmem:[#allocation2 + $0x28] sm:$0xff]  ;;  %v1225_v13 = vld [vmem:[#allocation3 + $0x38] sm:$0xff]  ;;  %p1611_p4 = pnand %p1610_p3, %p1604_p0 }
 0x248   :  { %v916_v9 = vsub.f32 %v604_v54, %v862_v3  ;;  %v1598_v17 = vpop.eup %1597  ;;  %v1193_v26 = vadd.f32 %v1192_v55, %v1191_v6  ;;  %v1234_v61 = vadd.f32 %v1233_v16, %v1232_v60  ;;  %v736_v39 = vand.u32 2147483648, %v2230_v24  ;;  %v1100_v55 = vld [vmem:[#allocation2 + $0x58] sm:$0xff] }
 0x249   :  { %vm1037_vm6 = vcmp.gt.f32.partialorder %v902_v59, 0.0  ;;  %v1109_v7 = vadd.f32 %v938_v31, %v902_v59  ;;  %v727_v21 = vsel %vm726_vm15, %v2225_v30, %v725_v10  ;;  %v864_v22 = vmul.f32 %v1598_v17, %v2227_v33  ;;  %v1600_v23 = vpop.eup %1599  ;;  %v1184_v17 = vld [vmem:[#allocation2 + $0x38] sm:$0xff] }
 0x24a   :  { %vm1061_vm7 = vmor %vm1037_vm6, %vm2247_vm14  ;;  %v928_v20 = vadd.f32 0.2, %v916_v9  ;;  %v730_v27 = vsel %vm728_vm0, %v729_v56, %v727_v21  ;;  %v732_v30 = vmul.f32 %v1600_v23, %v2230_v24  ;;  %v1194_v62 = vsel %vm25_vm4, %v1180_v25, 0.0  ;;  %v1099_v56 = vld [vmem:[#allocation2 + $0x50] sm:$0xff] }
 0x24b   :  { %v1324_v18 = vsel %vm1061_vm7, 1.0, %v1628_v1  ;;  %v1121_v19 = vadd.f32 %v1109_v7, %v1097_v50  ;;  %v880_v37 = vsub.f32 %v730_v27, %v604_v54  ;;  %v866_v38 = vsel %vm865_vm1, %v2227_v33, %v864_v22  ;;  %v1224_v54 = vld [vmem:[#allocation3 + $0x30] sm:$0xff] }
 0x24c   :  { %v1158_v11 = vadd.f32 %v1324_v18, %v1146_v8  ;;  %v940_v15 = vmax.f32 %v928_v20, 0.0  ;;  %v869_v31 = vsel %vm867_vm2, %v868_v63, %v866_v38  ;;  %v1236_v40 = vadd.f32 %v1235_v34, %v1234_v61  ;;  %v1186_v61 = vld [vmem:[#allocation2 + $0x48] sm:$0xff] }
 0x24d   :  { %1134 = vst.msk [vmem:[#allocation2 + $0x40] sm:$0xff] %vm25_vm4, %v1121_v19  ;;  %v892_v41 = vadd.f32 0.2, %v880_v37  ;;  %v917_v42 = vsub.f32 %v605_v29, %v869_v31  ;;  %v734_v43 = vsel %vm733_vm3, %v2230_v24, %v732_v30  ;;  %v1196_v44 = vsel %vm25_vm4, %v1181_v32, 0.0  ;;  %v1148_v24 = vld [vmem:[#allocation3 + $0x50] sm:$0xff] }
 0x24e   :  { %1170 = vst.msk [vmem:[#allocation3 + $0x40] sm:$0xff] %vm25_vm4, %v1158_v11  ;;  %v737_v46 = vsel %vm735_vm5, %v736_v39, %v734_v43  ;;  %v1195_v33 = vadd.f32 %v1194_v62, %v1193_v26  ;;  %v1238_v28 = vadd.f32 %v1237_v35, %v1236_v40  ;;  %vm2304_vm8 = vcmp.gt.f32.partialorder %v940_v15, 0.0 }
 0x24f   :  { %v904_v51 = vmax.f32 %v892_v41, 0.0  ;;  %v929_v52 = vadd.f32 0.2, %v917_v42  ;;  %v881_v53 = vsub.f32 %v737_v46, %v605_v29  ;;  %v1239_v59 = vsel %vm25_vm4, %v1223_v45, 0.0  ;;  %v1227_v29 = vld [vmem:[#allocation3 + $0x48] sm:$0xff] }
 0x250   :  { %v1197_v58 = vadd.f32 %v1196_v44, %v1195_v33  ;;  %v1198_v2 = vsel %vm25_vm4, %v1182_v48, 0.0  ;;  %v1200_v50 = vsel %vm25_vm4, %v1183_v36, 0.0  ;;  %v1240_v3 = vadd.f32 %v1239_v59, %v1238_v28 }
 0x251   :  { %vm1039_vm9 = vcmp.gt.f32.partialorder %v904_v51, 0.0  ;;  %v1111_v57 = vadd.f32 %v940_v15, %v904_v51  ;;  %v941_v63 = vmax.f32 %v929_v52, 0.0  ;;  %v893_v0 = vadd.f32 0.2, %v881_v53 }
 0x252   :  { %vm1063_vm10 = vmor %vm1039_vm9, %vm2304_vm8  ;;  %v1241_v4 = vsel %vm25_vm4, %v1224_v54, 0.0  ;;  %v1199_v10 = vadd.f32 %v1198_v2, %v1197_v58  ;;  %v1243_v21 = vsel %vm25_vm4, %v1225_v13, 0.0  ;;  %v1202_v25 = vsel %vm25_vm4, %v1184_v17, 0.0 }
 0x253   :  { %v1326_v5 = vsel %vm1063_vm10, 1.0, %v1628_v1  ;;  %v1123_v47 = vadd.f32 %v1111_v57, %v1099_v56  ;;  %vm2315_vm11 = vcmp.gt.f32.partialorder %v941_v63, 0.0  ;;  %v905_v8 = vmax.f32 %v893_v0, 0.0 }
 0x254   :  { %v1160_v9 = vadd.f32 %v1326_v5, %v1148_v24  ;;  %v1242_v16 = vadd.f32 %v1241_v4, %v1240_v3  ;;  %v1185_v18 = vld [vmem:[#allocation2 + $0x40] sm:$0xff]  ;;  %v1201_v19 = vadd.f32 %v1200_v50, %v1199_v10  ;;  %v1247_v15 = vsel %vm25_vm4, %v1227_v29, 0.0 }
 0x255   :  { %1136 = vst.msk [vmem:[#allocation2 + $0x50] sm:$0xff] %vm25_vm4, %v1123_v47  ;;  %vm1040_vm12 = vcmp.gt.f32.partialorder %v905_v8, 0.0  ;;  %v1112_v6 = vadd.f32 %v941_v63, %v905_v8  ;;  %v1226_v14 = vld [vmem:[#allocation3 + $0x40] sm:$0xff]  ;;  %v1204_v26 = vsel %vm25_vm4, %v1185_v18, 0.0  ;;  %v1206_v38 = vsel %vm25_vm4, %v1186_v61, 0.0 }
 0x256   :  { %1172 = vst.msk [vmem:[#allocation3 + $0x50] sm:$0xff] %vm25_vm4, %v1160_v9  ;;  %vm1064_vm13 = vmor %vm1040_vm12, %vm2315_vm11  ;;  %v1245_v22 = vsel %vm25_vm4, %v1226_v14, 0.0  ;;  %v1244_v23 = vadd.f32 %v1243_v21, %v1242_v16  ;;  %v1203_v27 = vadd.f32 %v1202_v25, %v1201_v19 }
 0x257   :  { %v1327_v20 = vsel %vm1064_vm13, 1.0, %v1628_v1  ;;  %v1124_v60 = vadd.f32 %v1112_v6, %v1100_v55 }
 0x258   :  { %v1161_v11 = vadd.f32 %v1327_v20, %v1149_v12  ;;  %v1246_v32 = vadd.f32 %v1245_v22, %v1244_v23  ;;  %v1205_v34 = vadd.f32 %v1204_v26, %v1203_v27 }
 0x259   :  { %1137 = vst.msk [vmem:[#allocation2 + $0x58] sm:$0xff] %vm25_vm4, %v1124_v60 }
 0x25a   :  { %1173 = vst.msk [vmem:[#allocation3 + $0x58] sm:$0xff] %vm25_vm4, %v1161_v11  ;;  %v1248_v31 = vadd.f32 %v1247_v15, %v1246_v32  ;;  %v1207_v62 = vadd.f32 %v1206_v38, %v1205_v34 }
 0x25c   :  { %v1187_v1 = vld [vmem:[#allocation2 + $0x50] sm:$0xff] }
 0x25d   :  { %v1228_v35 = vld [vmem:[#allocation3 + $0x50] sm:$0xff]  ;;  %v1208_v30 = vsel %vm25_vm4, %v1187_v1, 0.0 }
 0x25e   :  { %v1249_v37 = vsel %vm25_vm4, %v1228_v35, 0.0  ;;  %v1209_v43 = vadd.f32 %v1208_v30, %v1207_v62 }
 0x25f   :  { %v1250_v42 = vadd.f32 %v1249_v37, %v1248_v31 }
 0x260   :  { %v1188_v39 = vld [vmem:[#allocation2 + $0x58] sm:$0xff] }
 0x261   :  { %v1210_v40 = vsel %vm25_vm4, %v1188_v39, 0.0  ;;  %v1229_v41 = vld [vmem:[#allocation3 + $0x58] sm:$0xff] }
 0x262   :  { %v1251_v44 = vsel %vm25_vm4, %v1229_v41, 0.0  ;;  %v1211_v46 = vadd.f32 %v1210_v40, %v1209_v43  ;;  %vm1264_vm4 = vcmask 0  }
 0x263   :  { %v1252_v45 = vadd.f32 %v1251_v44, %v1250_v42 }
 0x264   :  { %v1212_v28 = vrot.slane %v1211_v46, 4 }
 0x265   :  { %v1253_v48 = vrot.slane %v1252_v45, 4 }
 0x266   :  { %v1213_v52 = vadd.f32 %v1212_v28, %v1211_v46 }
 0x267   :  { %v1254_v33 = vadd.f32 %v1253_v48, %v1252_v45 }
 0x268   :  { %v1214_v54 = vrot.slane %v1213_v52, 2 }
 0x269   :  { %v1255_v49 = vrot.slane %v1254_v33, 2 }
 0x26a   :  { %v1215_v58 = vadd.f32 %v1214_v54, %v1213_v52 }
 0x26b   :  { %v1256_v51 = vadd.f32 %v1255_v49, %v1254_v33 }
 0x26c   :  { %v1216_v59 = vrot.slane %v1215_v58, 1 }
 0x26d   :  { %v1257_v53 = vrot.slane %v1256_v51, 1 }
 0x26e   :  { %v1217_v57 = vadd.f32 %v1216_v59, %v1215_v58 }
 0x26f   :  { %v1258_v36 = vadd.f32 %v1257_v53, %v1256_v51 }
 0x271   :  { %v1259_v56 = vmax.f32 %v1258_v36, 1.0  ;;  %vm1261_vm14 = vcmp.eq.f32.partialorder %v1258_v36, 0.0 }
 0x273   :  { %1601 = vrcp.f32 %v1259_v56 }
 0x27d   :  { %v1602_v24 = vpop.eup %1601 }
 0x27e   :  { %v1262_v63 = vmul.f32 %v1602_v24, %v1217_v57 }
 0x280   :  { %v1263_v0 = vsel %vm1261_vm14, %v1217_v57, %v1262_v63 }
 0x281   :  { %1265 = vst.msk [vmem:[#allocation4] sm:$0x1] %vm1264_vm4, %v1263_v0 }
 0x282   :  { %1614 = shalt.err (!%p1611_p4)
}
 0x283   :  { %s1615_s0 = scalar_lea.hbm %s2353_s5, 16 }
 0x284   :  { %p1616_p5 = scmp.ne.s32.totalorder %s2353_s5, %s1615_s0  ;;  %p1619_p6 = scmp.lt.u32.totalorder %s1615_s0, %s2353_s5 }
 0x286   :  { %p1621_p7 = pnand %p1619_p6, %p1616_p5 }
 0x288   :  { %1624 = shalt.err (!%p1621_p7)
}
 0x289   :  { %1275 = dma.vmem_to_hbm [thread:$0]  %s1273_s16, 16, %s2353_s5, [#allocation5]  }
 0x28a   :  { %1625 = dma.done.wait [#allocation5], 16  }
 0x28b   :  { %1626 = vsyncadd [#allocation5], 4294967280 }
 0x28c   :  { %1279 = vsyncpa [#allocation5], 1 }

// kernel: tpu_custom_call.1
= control target key start
LH: loop header
LB: loop body
LE: loop exit
PB: predicated region body
PF: predicated region fallthrough
CT: control target
= control target key end

     0   :  { %v1627_v2 = vmov 0   ;;  %s2348_s0 = inlined_call_operand.vmem [shape: s32[96,1], index: 0, kind: input, shape index: {}]   ;;  %s2349_s1 = inlined_call_operand.vmem [shape: s32[96,1], index: 1, kind: input, shape index: {}]   ;;  %s2350_s2 = inlined_call_operand.vmem [shape: s32[96,1], index: 2, kind: input, shape index: {}]   ;;  %s2351_s3 = inlined_call_operand.vmem [shape: f32[128,128], index: 3, kind: input, shape index: {}]   ;;  %s2352_s4 = inlined_call_operand.vmem [shape: f32[96,1], index: 4, kind: input, shape index: {}]   ;;  %s2353_s5 = inlined_call_operand.hbm [shape: f32[1,1], index: 5, kind: output, shape index: {}]  }
   0x1   :  { %v220_v0 = vld [vmem:[%s2350_s2] sm:$0xff]  ;;  %1552 = vset.pattern.permute.xlu1 %v1627_v2  ;;  %1551 = vset.pattern.permute.xlu0 %v1627_v2  ;;  %v53_v3 = vld [vmem:[%s2348_s0 + $0x8] sm:$0xff]  ;;  %v138_v7 = vld [vmem:[%s2349_s1 + $0x10] sm:$0xff] }
   0x2   :  { %v52_v1 = vld [vmem:[%s2348_s0] sm:$0xff]  ;;  %233 = vperm.xlu1 %1552, %v220_v0   ;;  %v221_v5 = vld [vmem:[%s2350_s2 + $0x8] sm:$0xff]  ;;  %v54_v8 = vld [vmem:[%s2348_s0 + $0x10] sm:$0xff] }
   0x3   :  { %65 = vperm.xlu0 %1551, %v52_v1   ;;  %v136_v4 = vld [vmem:[%s2349_s1] sm:$0xff]  ;;  %v137_v6 = vld [vmem:[%s2349_s1 + $0x8] sm:$0xff]  ;;  %v330_v11 = vld [vmem:[%s2351_s3 + $0x10] sm:$0xff] }
   0x4   :  { %v328_v9 = vld [vmem:[%s2351_s3] sm:$0xff]  ;;  %v329_v10 = vld [vmem:[%s2351_s3 + $0x8] sm:$0xff]  ;;  %v331_v13 = vld [vmem:[%s2351_s3 + $0x18] sm:$0xff] }
   0x5   :  { %v1484_v12 = vpack.c.bf16 %v329_v10, %v328_v9  ;;  %v1488_v14 = vpack.c.bf16 %v331_v13, %v330_v11  ;;  %v332_v15 = vld [vmem:[%s2351_s3 + $0x20] sm:$0xff]  ;;  %v333_v16 = vld [vmem:[%s2351_s3 + $0x28] sm:$0xff]  ;;  %v55_v17 = vld [vmem:[%s2348_s0 + $0x18] sm:$0xff] }
   0x6   :  { %68 = vperm.xlu1 %1552, %v53_v3   ;;  %v222_v18 = vld [vmem:[%s2350_s2 + $0x10] sm:$0xff]  ;;  %v1492_v19 = vpack.c.bf16 %v333_v16, %v332_v15 }
   0x7   :  { %149 = vperm.xlu0 %1551, %v136_v4   ;;  %1485 = vmatprep.subr.bf16.mxu0 %v1484_v12 }
   0x8   :  { %1517 = vmatprep.subr.bf16.mxu1 %v1484_v12  ;;  %1487 = vmatpush3.bf16.msra.mxu0 %v1484_v12 }
   0x9   :  { %1519 = vmatpush3.bf16.msra.mxu1 %v1484_v12  ;;  %1489 = vmatprep.subr.bf16.mxu0 %v1488_v14 }
   0xa   :  { %236 = vperm.xlu1 %1552, %v221_v5   ;;  %1521 = vmatprep.subr.bf16.mxu1 %v1488_v14 }
   0xb   :  { %152 = vperm.xlu0 %1551, %v137_v6  }
   0xe   :  { %155 = vperm.xlu1 %1552, %v138_v7  }
   0xf   :  { %71 = vperm.xlu0 %1551, %v54_v8  }
  0x10   :  { %10 = vsyncpa [#allocation5], 0  ;;  %v334_v20 = vld [vmem:[%s2351_s3 + $0x30] sm:$0xff]  ;;  %v335_v21 = vld [vmem:[%s2351_s3 + $0x38] sm:$0xff]  ;;  %1491 = vmatpush3.bf16.msra.mxu0 %v1488_v14  ;;  %1523 = vmatpush3.bf16.msra.mxu1 %v1488_v14  ;;  %v50_v61 = vlaneseq  ;;  %v1628_v1 = vmov 0.0  }
  0x11   :  { %v223_v22 = vld [vmem:[%s2350_s2 + $0x18] sm:$0xff]  ;;  %1493 = vmatprep.subr.bf16.mxu0 %v1492_v19  ;;  %1525 = vmatprep.subr.bf16.mxu1 %v1492_v19  ;;  %v1496_v24 = vpack.c.bf16 %v335_v21, %v334_v20  ;;  %v336_v25 = vld [vmem:[%s2351_s3 + $0x40] sm:$0xff]  ;;  %v337_v26 = vld [vmem:[%s2351_s3 + $0x48] sm:$0xff] }
  0x12   :  { %74 = vperm.xlu1 %1552, %v55_v17   ;;  %v139_v23 = vld [vmem:[%s2349_s1 + $0x18] sm:$0xff]  ;;  %v140_v27 = vld [vmem:[%s2349_s1 + $0x20] sm:$0xff]  ;;  %v1500_v29 = vpack.c.bf16 %v337_v26, %v336_v25  ;;  %v338_v30 = vld [vmem:[%s2351_s3 + $0x50] sm:$0xff]  ;;  %v1816_v62 = vand.u32 127, %v50_v61 }
  0x13   :  { %239 = vperm.xlu0 %1551, %v222_v18   ;;  %v56_v28 = vld [vmem:[%s2348_s0 + $0x20] sm:$0xff]  ;;  %v339_v31 = vld [vmem:[%s2351_s3 + $0x58] sm:$0xff]  ;;  %v57_v32 = vld [vmem:[%s2348_s0 + $0x28] sm:$0xff] }
  0x14   :  { %1495 = vmatpush3.bf16.msra.mxu0 %v1492_v19  ;;  %1527 = vmatpush3.bf16.msra.mxu1 %v1492_v19  ;;  %v224_v33 = vld [vmem:[%s2350_s2 + $0x20] sm:$0xff]  ;;  %v1504_v34 = vpack.c.bf16 %v339_v31, %v338_v30  ;;  %v341_v36 = vld [vmem:[%s2351_s3 + $0x68] sm:$0xff]  ;;  %v342_v40 = vld [vmem:[%s2351_s3 + $0x70] sm:$0xff] }
  0x15   :  { %1497 = vmatprep.subr.bf16.mxu0 %v1496_v24  ;;  %1529 = vmatprep.subr.bf16.mxu1 %v1496_v24  ;;  %v340_v35 = vld [vmem:[%s2351_s3 + $0x60] sm:$0xff]  ;;  %v225_v37 = vld [vmem:[%s2350_s2 + $0x28] sm:$0xff]  ;;  %v343_v41 = vld [vmem:[%s2351_s3 + $0x78] sm:$0xff] }
  0x16   :  { %242 = vperm.xlu1 %1552, %v223_v22   ;;  %v141_v38 = vld [vmem:[%s2349_s1 + $0x28] sm:$0xff]  ;;  %v1508_v39 = vpack.c.bf16 %v341_v36, %v340_v35  ;;  %v142_v42 = vld [vmem:[%s2349_s1 + $0x30] sm:$0xff]  ;;  %v1512_v44 = vpack.c.bf16 %v343_v41, %v342_v40  ;;  %v59_v45 = vld [vmem:[%s2348_s0 + $0x38] sm:$0xff] }
  0x17   :  { %158 = vperm.xlu0 %1551, %v139_v23   ;;  %v58_v43 = vld [vmem:[%s2348_s0 + $0x30] sm:$0xff]  ;;  %v227_v47 = vld [vmem:[%s2350_s2 + $0x38] sm:$0xff]  ;;  %v144_v49 = vld [vmem:[%s2349_s1 + $0x40] sm:$0xff] }
  0x18   :  { %1499 = vmatpush3.bf16.msra.mxu0 %v1496_v24  ;;  %1531 = vmatpush3.bf16.msra.mxu1 %v1496_v24  ;;  %v226_v46 = vld [vmem:[%s2350_s2 + $0x30] sm:$0xff]  ;;  %v143_v48 = vld [vmem:[%s2349_s1 + $0x38] sm:$0xff]  ;;  %v60_v50 = vld [vmem:[%s2348_s0 + $0x40] sm:$0xff] }
  0x19   :  { %1501 = vmatprep.subr.bf16.mxu0 %v1500_v29  ;;  %1533 = vmatprep.subr.bf16.mxu1 %v1500_v29  ;;  %v61_v51 = vld [vmem:[%s2348_s0 + $0x48] sm:$0xff]  ;;  %v228_v52 = vld [vmem:[%s2350_s2 + $0x40] sm:$0xff]  ;;  %v146_v55 = vld [vmem:[%s2349_s1 + $0x50] sm:$0xff] }
  0x1a   :  { %161 = vperm.xlu1 %1552, %v140_v27   ;;  %v229_v53 = vld [vmem:[%s2350_s2 + $0x48] sm:$0xff]  ;;  %v62_v56 = vld [vmem:[%s2348_s0 + $0x50] sm:$0xff]  ;;  %v63_v57 = vld [vmem:[%s2348_s0 + $0x58] sm:$0xff] }
  0x1b   :  { %77 = vperm.xlu0 %1551, %v56_v28   ;;  %v145_v54 = vld [vmem:[%s2349_s1 + $0x48] sm:$0xff]  ;;  %v230_v58 = vld [vmem:[%s2350_s2 + $0x50] sm:$0xff]  ;;  %v231_v59 = vld [vmem:[%s2350_s2 + $0x58] sm:$0xff] }
  0x1c   :  { %1503 = vmatpush3.bf16.msra.mxu0 %v1500_v29  ;;  %1535 = vmatpush3.bf16.msra.mxu1 %v1500_v29  ;;  %v147_v60 = vld [vmem:[%s2349_s1 + $0x58] sm:$0xff] }
  0x1d   :  { %1505 = vmatprep.subr.bf16.mxu0 %v1504_v34  ;;  %1537 = vmatprep.subr.bf16.mxu1 %v1504_v34 }
  0x1e   :  { %80 = vperm.xlu1 %1552, %v57_v32  }
  0x1f   :  { %245 = vperm.xlu0 %1551, %v224_v33  }
  0x20   :  { %1507 = vmatpush3.bf16.msra.mxu0 %v1504_v34  ;;  %1539 = vmatpush3.bf16.msra.mxu1 %v1504_v34 }
  0x21   :  { %1509 = vmatprep.subr.bf16.mxu0 %v1508_v39  ;;  %1541 = vmatprep.subr.bf16.mxu1 %v1508_v39 }
  0x22   :  { %248 = vperm.xlu1 %1552, %v225_v37  }
  0x23   :  { %164 = vperm.xlu0 %1551, %v141_v38  }
  0x24   :  { %1511 = vmatpush3.bf16.msra.mxu0 %v1508_v39  ;;  %1543 = vmatpush3.bf16.msra.mxu1 %v1508_v39 }
  0x25   :  { %1513 = vmatprep.subr.bf16.mxu0 %v1512_v44  ;;  %1545 = vmatprep.subr.bf16.mxu1 %v1512_v44 }
  0x26   :  { %167 = vperm.xlu1 %1552, %v142_v42  }
  0x27   :  { %83 = vperm.xlu0 %1551, %v58_v43  }
  0x28   :  { %1515 = vmatpush3.bf16.msra.mxu0 %v1512_v44  ;;  %1547 = vmatpush3.bf16.msra.mxu1 %v1512_v44 }
  0x2a   :  { %86 = vperm.xlu1 %1552, %v59_v45  }
  0x2b   :  { %251 = vperm.xlu0 %1551, %v226_v46  }
  0x2e   :  { %254 = vperm.xlu1 %1552, %v227_v47  }
  0x2f   :  { %170 = vperm.xlu0 %1551, %v143_v48  }
  0x32   :  { %173 = vperm.xlu1 %1552, %v144_v49  }
  0x33   :  { %89 = vperm.xlu0 %1551, %v60_v50  }
  0x36   :  { %92 = vperm.xlu1 %1552, %v61_v51  }
  0x37   :  { %257 = vperm.xlu0 %1551, %v228_v52  }
  0x3a   :  { %260 = vperm.xlu1 %1552, %v229_v53  }
  0x3b   :  { %176 = vperm.xlu0 %1551, %v145_v54  }
  0x3e   :  { %179 = vperm.xlu1 %1552, %v146_v55  }
  0x3f   :  { %95 = vperm.xlu0 %1551, %v62_v56  }
  0x42   :  { %98 = vperm.xlu1 %1552, %v63_v57  }
  0x43   :  { %263 = vperm.xlu0 %1551, %v230_v58  }
  0x46   :  { %266 = vperm.xlu1 %1552, %v231_v59  }
  0x47   :  { %182 = vperm.xlu0 %1551, %v147_v60  }
  0x81   :  { %v234_v63 = vpop.permute.xlu1 %233 }
  0x82   :  { %v66_v0 = vpop.permute.xlu0 %65  ;;  %vm268_vm0 = vcmp.eq.s32.totalorder %v1816_v62, %v234_v63 }
  0x83   :  { %vm100_vm1 = vcmp.eq.s32.totalorder %v1816_v62, %v66_v0  ;;  %v1304_v3 = vsel %vm268_vm0, 1.0, %v1628_v1 }
  0x84   :  { %v1280_v2 = vsel %vm100_vm1, 1.0, %v1628_v1 }
  0x85   :  { %v316_v4 = vsub.f32 %v1280_v2, %v1304_v3  ;;  %v69_v5 = vpop.permute.xlu1 %68 }
  0x86   :  { %v150_v6 = vpop.permute.xlu0 %149  ;;  %vm101_vm3 = vcmp.eq.s32.totalorder %v1816_v62, %v69_v5 }
  0x87   :  { %vm184_vm2 = vcmp.eq.s32.totalorder %v1816_v62, %v150_v6  ;;  %1466 = vmatprep.mubr.f32.mxu1 %v316_v4  ;;  %v1281_v11 = vsel %vm101_vm3, 1.0, %v1628_v1 }
  0x88   :  { %v1292_v7 = vsel %vm184_vm2, 1.0, %v1628_v1 }
  0x89   :  { %v304_v8 = vsub.f32 %v1280_v2, %v1292_v7  ;;  %v237_v9 = vpop.permute.xlu1 %236 }
  0x8a   :  { %v153_v10 = vpop.permute.xlu0 %152  ;;  %vm269_vm4 = vcmp.eq.s32.totalorder %v1816_v62, %v237_v9 }
  0x8b   :  { %vm185_vm5 = vcmp.eq.s32.totalorder %v1816_v62, %v153_v10  ;;  %1416 = vmatprep.mubr.f32.mxu0 %v304_v8  ;;  %v1305_v12 = vsel %vm269_vm4, 1.0, %v1628_v1 }
  0x8c   :  { %v1293_v13 = vsel %vm185_vm5, 1.0, %v1628_v1  ;;  %v317_v14 = vsub.f32 %v1281_v11, %v1305_v12 }
  0x8d   :  { %v305_v15 = vsub.f32 %v1281_v11, %v1293_v13  ;;  %v156_v16 = vpop.permute.xlu1 %155 }
  0x8e   :  { %v72_v17 = vpop.permute.xlu0 %71  ;;  %vm186_vm6 = vcmp.eq.s32.totalorder %v1816_v62, %v156_v16  ;;  %1467 = vmatmul.mubr.f32.vlgmr.msra.gmra.mrb[0].mxu1 %v317_v14 }
  0x8f   :  { %vm102_vm7 = vcmp.eq.s32.totalorder %v1816_v62, %v72_v17  ;;  %1417 = vmatmul.mubr.f32.vlgmr.msra.gmra.mrb[0].mxu0 %v305_v15  ;;  %v1294_v18 = vsel %vm186_vm6, 1.0, %v1628_v1 }
  0x90   :  { %v1282_v19 = vsel %vm102_vm7, 1.0, %v1628_v1 }
  0x91   :  { %v306_v20 = vsub.f32 %v1282_v19, %v1294_v18  ;;  %v75_v21 = vpop.permute.xlu1 %74 }
  0x92   :  { %v240_v22 = vpop.permute.xlu0 %239  ;;  %vm103_vm9 = vcmp.eq.s32.totalorder %v1816_v62, %v75_v21 }
  0x93   :  { %vm270_vm8 = vcmp.eq.s32.totalorder %v1816_v62, %v240_v22  ;;  %1419 = vmatprep.mubr.f32.mxu0 %v306_v20  ;;  %v1283_v27 = vsel %vm103_vm9, 1.0, %v1628_v1 }
  0x94   :  { %v1306_v23 = vsel %vm270_vm8, 1.0, %v1628_v1 }
  0x95   :  { %v318_v24 = vsub.f32 %v1282_v19, %v1306_v23  ;;  %v243_v25 = vpop.permute.xlu1 %242 }
  0x96   :  { %v159_v26 = vpop.permute.xlu0 %158  ;;  %vm271_vm10 = vcmp.eq.s32.totalorder %v1816_v62, %v243_v25 }
  0x97   :  { %vm187_vm11 = vcmp.eq.s32.totalorder %v1816_v62, %v159_v26  ;;  %1469 = vmatprep.mubr.f32.mxu1 %v318_v24  ;;  %v1307_v28 = vsel %vm271_vm10, 1.0, %v1628_v1 }
  0x98   :  { %v1295_v29 = vsel %vm187_vm11, 1.0, %v1628_v1  ;;  %v319_v30 = vsub.f32 %v1283_v27, %v1307_v28 }
  0x99   :  { %v307_v31 = vsub.f32 %v1283_v27, %v1295_v29  ;;  %v162_v32 = vpop.permute.xlu1 %161 }
  0x9a   :  { %v78_v33 = vpop.permute.xlu0 %77  ;;  %vm188_vm12 = vcmp.eq.s32.totalorder %v1816_v62, %v162_v32  ;;  %1470 = vmatmul.mubr.f32.gmra.mrb[2].mxu1 %v319_v30 }
  0x9b   :  { %vm104_vm13 = vcmp.eq.s32.totalorder %v1816_v62, %v78_v33  ;;  %1420 = vmatmul.mubr.f32.gmra.mrb[2].mxu0 %v307_v31  ;;  %v1296_v34 = vsel %vm188_vm12, 1.0, %v1628_v1 }
  0x9c   :  { %v1284_v35 = vsel %vm104_vm13, 1.0, %v1628_v1 }
  0x9d   :  { %v308_v36 = vsub.f32 %v1284_v35, %v1296_v34  ;;  %v81_v37 = vpop.permute.xlu1 %80 }
  0x9e   :  { %v246_v38 = vpop.permute.xlu0 %245  ;;  %vm105_vm15 = vcmp.eq.s32.totalorder %v1816_v62, %v81_v37 }
  0x9f   :  { %vm272_vm14 = vcmp.eq.s32.totalorder %v1816_v62, %v246_v38  ;;  %1422 = vmatprep.mubr.f32.mxu0 %v308_v36  ;;  %v1285_v43 = vsel %vm105_vm15, 1.0, %v1628_v1 }
  0xa0   :  { %v1308_v39 = vsel %vm272_vm14, 1.0, %v1628_v1 }
  0xa1   :  { %v320_v40 = vsub.f32 %v1284_v35, %v1308_v39  ;;  %v249_v41 = vpop.permute.xlu1 %248 }
  0xa2   :  { %v165_v42 = vpop.permute.xlu0 %164  ;;  %vm273_vm0 = vcmp.eq.s32.totalorder %v1816_v62, %v249_v41 }
  0xa3   :  { %vm189_vm1 = vcmp.eq.s32.totalorder %v1816_v62, %v165_v42  ;;  %1472 = vmatprep.mubr.f32.mxu1 %v320_v40  ;;  %v1309_v44 = vsel %vm273_vm0, 1.0, %v1628_v1 }
  0xa4   :  { %v1297_v45 = vsel %vm189_vm1, 1.0, %v1628_v1  ;;  %v321_v46 = vsub.f32 %v1285_v43, %v1309_v44 }
  0xa5   :  { %v309_v47 = vsub.f32 %v1285_v43, %v1297_v45  ;;  %v168_v48 = vpop.permute.xlu1 %167 }
  0xa6   :  { %v84_v49 = vpop.permute.xlu0 %83  ;;  %vm190_vm2 = vcmp.eq.s32.totalorder %v1816_v62, %v168_v48  ;;  %1473 = vmatmul.mubr.f32.gmra.mrb[4].mxu1 %v321_v46 }
  0xa7   :  { %vm106_vm3 = vcmp.eq.s32.totalorder %v1816_v62, %v84_v49  ;;  %1423 = vmatmul.mubr.f32.gmra.mrb[4].mxu0 %v309_v47  ;;  %v1298_v50 = vsel %vm190_vm2, 1.0, %v1628_v1 }
  0xa8   :  { %v1286_v51 = vsel %vm106_vm3, 1.0, %v1628_v1 }
  0xa9   :  { %v310_v52 = vsub.f32 %v1286_v51, %v1298_v50  ;;  %v87_v53 = vpop.permute.xlu1 %86 }
  0xaa   :  { %v252_v54 = vpop.permute.xlu0 %251  ;;  %vm107_vm5 = vcmp.eq.s32.totalorder %v1816_v62, %v87_v53 }
  0xab   :  { %vm274_vm4 = vcmp.eq.s32.totalorder %v1816_v62, %v252_v54  ;;  %1425 = vmatprep.mubr.f32.mxu0 %v310_v52  ;;  %v1287_v59 = vsel %vm107_vm5, 1.0, %v1628_v1 }
  0xac   :  { %v1310_v55 = vsel %vm274_vm4, 1.0, %v1628_v1  ;;  %vm25_vm4 = vcmask 7168  }
  0xad   :  { %v322_v56 = vsub.f32 %v1286_v51, %v1310_v55  ;;  %v255_v57 = vpop.permute.xlu1 %254  ;;  %27 = vst.msk [vmem:[#allocation2 + $0x8] sm:$0xff] %vm25_vm4, %v1628_v1  ;;  %39 = vst.msk [vmem:[#allocation3 + $0x8] sm:$0xff] %vm25_vm4, %v1628_v1 }
  0xae   :  { %v171_v58 = vpop.permute.xlu0 %170  ;;  %vm275_vm6 = vcmp.eq.s32.totalorder %v1816_v62, %v255_v57  ;;  %26 = vst.msk [vmem:[#allocation2] sm:$0xff] %vm25_vm4, %v1628_v1  ;;  %28 = vst.msk [vmem:[#allocation2 + $0x10] sm:$0xff] %vm25_vm4, %v1628_v1 }
  0xaf   :  { %vm191_vm7 = vcmp.eq.s32.totalorder %v1816_v62, %v171_v58  ;;  %1475 = vmatprep.mubr.f32.mxu1 %v322_v56  ;;  %v1311_v60 = vsel %vm275_vm6, 1.0, %v1628_v1  ;;  %29 = vst.msk [vmem:[#allocation2 + $0x18] sm:$0xff] %vm25_vm4, %v1628_v1  ;;  %30 = vst.msk [vmem:[#allocation2 + $0x20] sm:$0xff] %vm25_vm4, %v1628_v1 }
  0xb0   :  { %v1299_v61 = vsel %vm191_vm7, 1.0, %v1628_v1  ;;  %v323_v63 = vsub.f32 %v1287_v59, %v1311_v60  ;;  %31 = vst.msk [vmem:[#allocation2 + $0x28] sm:$0xff] %vm25_vm4, %v1628_v1  ;;  %32 = vst.msk [vmem:[#allocation2 + $0x30] sm:$0xff] %vm25_vm4, %v1628_v1 }
  0xb1   :  { %v311_v0 = vsub.f32 %v1287_v59, %v1299_v61  ;;  %v174_v2 = vpop.permute.xlu1 %173  ;;  %33 = vst.msk [vmem:[#allocation2 + $0x38] sm:$0xff] %vm25_vm4, %v1628_v1  ;;  %34 = vst.msk [vmem:[#allocation2 + $0x40] sm:$0xff] %vm25_vm4, %v1628_v1 }
  0xb2   :  { %v90_v3 = vpop.permute.xlu0 %89  ;;  %vm192_vm8 = vcmp.eq.s32.totalorder %v1816_v62, %v174_v2  ;;  %1476 = vmatmul.mubr.f32.gmra.mrb[6].mxu1 %v323_v63  ;;  %35 = vst.msk [vmem:[#allocation2 + $0x48] sm:$0xff] %vm25_vm4, %v1628_v1  ;;  %36 = vst.msk [vmem:[#allocation2 + $0x50] sm:$0xff] %vm25_vm4, %v1628_v1 }
  0xb3   :  { %vm108_vm9 = vcmp.eq.s32.totalorder %v1816_v62, %v90_v3  ;;  %1426 = vmatmul.mubr.f32.gmra.mrb[6].mxu0 %v311_v0  ;;  %v1300_v4 = vsel %vm192_vm8, 1.0, %v1628_v1  ;;  %37 = vst.msk [vmem:[#allocation2 + $0x58] sm:$0xff] %vm25_vm4, %v1628_v1  ;;  %38 = vst.msk [vmem:[#allocation3] sm:$0xff] %vm25_vm4, %v1628_v1 }
  0xb4   :  { %v1288_v5 = vsel %vm108_vm9, 1.0, %v1628_v1  ;;  %40 = vst.msk [vmem:[#allocation3 + $0x10] sm:$0xff] %vm25_vm4, %v1628_v1  ;;  %41 = vst.msk [vmem:[#allocation3 + $0x18] sm:$0xff] %vm25_vm4, %v1628_v1 }
  0xb5   :  { %v312_v6 = vsub.f32 %v1288_v5, %v1300_v4  ;;  %v93_v7 = vpop.permute.xlu1 %92  ;;  %42 = vst.msk [vmem:[#allocation3 + $0x20] sm:$0xff] %vm25_vm4, %v1628_v1  ;;  %43 = vst.msk [vmem:[#allocation3 + $0x28] sm:$0xff] %vm25_vm4, %v1628_v1 }
  0xb6   :  { %v258_v8 = vpop.permute.xlu0 %257  ;;  %vm109_vm11 = vcmp.eq.s32.totalorder %v1816_v62, %v93_v7  ;;  %44 = vst.msk [vmem:[#allocation3 + $0x30] sm:$0xff] %vm25_vm4, %v1628_v1  ;;  %45 = vst.msk [vmem:[#allocation3 + $0x38] sm:$0xff] %vm25_vm4, %v1628_v1 }
  0xb7   :  { %vm276_vm10 = vcmp.eq.s32.totalorder %v1816_v62, %v258_v8  ;;  %1428 = vmatprep.mubr.f32.mxu0 %v312_v6  ;;  %v1289_v13 = vsel %vm109_vm11, 1.0, %v1628_v1  ;;  %46 = vst.msk [vmem:[#allocation3 + $0x40] sm:$0xff] %vm25_vm4, %v1628_v1  ;;  %47 = vst.msk [vmem:[#allocation3 + $0x48] sm:$0xff] %vm25_vm4, %v1628_v1 }
  0xb8   :  { %v1312_v9 = vsel %vm276_vm10, 1.0, %v1628_v1  ;;  %48 = vst.msk [vmem:[#allocation3 + $0x50] sm:$0xff] %vm25_vm4, %v1628_v1  ;;  %49 = vst.msk [vmem:[#allocation3 + $0x58] sm:$0xff] %vm25_vm4, %v1628_v1 }
  0xb9   :  { %v324_v10 = vsub.f32 %v1288_v5, %v1312_v9  ;;  %v261_v11 = vpop.permute.xlu1 %260 }
  0xba   :  { %v177_v12 = vpop.permute.xlu0 %176  ;;  %vm277_vm12 = vcmp.eq.s32.totalorder %v1816_v62, %v261_v11 }
  0xbb   :  { %vm193_vm13 = vcmp.eq.s32.totalorder %v1816_v62, %v177_v12  ;;  %1478 = vmatprep.mubr.f32.mxu1 %v324_v10  ;;  %v1313_v14 = vsel %vm277_vm12, 1.0, %v1628_v1 }
  0xbc   :  { %v1301_v15 = vsel %vm193_vm13, 1.0, %v1628_v1  ;;  %v325_v16 = vsub.f32 %v1289_v13, %v1313_v14 }
  0xbd   :  { %v313_v17 = vsub.f32 %v1289_v13, %v1301_v15  ;;  %v180_v18 = vpop.permute.xlu1 %179 }
  0xbe   :  { %v96_v19 = vpop.permute.xlu0 %95  ;;  %vm194_vm14 = vcmp.eq.s32.totalorder %v1816_v62, %v180_v18  ;;  %1479 = vmatmul.mubr.f32.gmra.mrb[8].mxu1 %v325_v16 }
  0xbf   :  { %vm110_vm15 = vcmp.eq.s32.totalorder %v1816_v62, %v96_v19  ;;  %1429 = vmatmul.mubr.f32.gmra.mrb[8].mxu0 %v313_v17  ;;  %v1302_v20 = vsel %vm194_vm14, 1.0, %v1628_v1 }
  0xc0   :  { %v1290_v21 = vsel %vm110_vm15, 1.0, %v1628_v1 }
  0xc1   :  { %v314_v22 = vsub.f32 %v1290_v21, %v1302_v20  ;;  %v99_v23 = vpop.permute.xlu1 %98 }
  0xc2   :  { %v264_v24 = vpop.permute.xlu0 %263  ;;  %vm111_vm1 = vcmp.eq.s32.totalorder %v1816_v62, %v99_v23 }
  0xc3   :  { %vm278_vm0 = vcmp.eq.s32.totalorder %v1816_v62, %v264_v24  ;;  %1431 = vmatprep.mubr.f32.mxu0 %v314_v22  ;;  %v1291_v29 = vsel %vm111_vm1, 1.0, %v1628_v1 }
  0xc4   :  { %v1314_v25 = vsel %vm278_vm0, 1.0, %v1628_v1 }
  0xc5   :  { %v326_v26 = vsub.f32 %v1290_v21, %v1314_v25  ;;  %v267_v27 = vpop.permute.xlu1 %266 }
  0xc6   :  { %v183_v28 = vpop.permute.xlu0 %182  ;;  %vm279_vm2 = vcmp.eq.s32.totalorder %v1816_v62, %v267_v27 }
  0xc7   :  { %vm195_vm3 = vcmp.eq.s32.totalorder %v1816_v62, %v183_v28  ;;  %1481 = vmatprep.mubr.f32.mxu1 %v326_v26  ;;  %v1315_v30 = vsel %vm279_vm2, 1.0, %v1628_v1 }
  0xc8   :  { %v1303_v31 = vsel %vm195_vm3, 1.0, %v1628_v1  ;;  %v327_v32 = vsub.f32 %v1291_v29, %v1315_v30 }
  0xc9   :  { %v315_v33 = vsub.f32 %v1291_v29, %v1303_v31 }
  0xca   :  { %1482 = vmatmul.mubr.f32.gmra.mrb[10].mxu1 %v327_v32 }
  0xcb   :  { %1432 = vmatmul.mubr.f32.gmra.mrb[10].mxu0 %v315_v33 }
 0x161   :  { %v1468_v35 = vpop.f32.mrb[0].mxu1 }
 0x162   :  { %v1418_v34 = vpop.f32.mrb[0].mxu0  ;;  %v739_v37 = vmul.f32 %v1468_v35, %v1468_v35  ;;  %v535_v39 = vpop.f32.mrb[1].mxu1  ;;  %v595_v35 = vld [vmem:[%s2352_s4 + $0x8] sm:$0xff] }
 0x163   :  { %v607_v36 = vmul.f32 %v1418_v34, %v1418_v34  ;;  %v410_v38 = vpop.f32.mrb[1].mxu0  ;;  %v738_v40 = vmul.f32 %v535_v39, %v535_v39 }
 0x164   :  { %752 = vadd.xlane.f32.xlu0 %v739_v37  ;;  %v606_v62 = vmul.f32 %v410_v38, %v410_v38 }
 0x165   :  { %620 = vadd.xlane.f32.xlu1 %v607_v36 }
 0x168   :  { %618 = vadd.xlane.f32.xlu0 %v606_v62 }
 0x16c   :  { %750 = vadd.xlane.f32.xlu0 %v738_v40 }
 0x16d   :  { %v1471_v42 = vpop.f32.mrb[2].mxu1 }
 0x16e   :  { %v1421_v41 = vpop.f32.mrb[2].mxu0  ;;  %v741_v44 = vmul.f32 %v1471_v42, %v1471_v42  ;;  %v545_v46 = vpop.f32.mrb[3].mxu1 }
 0x16f   :  { %v609_v43 = vmul.f32 %v1421_v41, %v1421_v41  ;;  %v420_v45 = vpop.f32.mrb[3].mxu0  ;;  %v740_v48 = vmul.f32 %v545_v46, %v545_v46 }
 0x170   :  { %756 = vadd.xlane.f32.xlu0 %v741_v44  ;;  %v608_v47 = vmul.f32 %v420_v45, %v420_v45 }
 0x171   :  { %624 = vadd.xlane.f32.xlu1 %v609_v43 }
 0x174   :  { %754 = vadd.xlane.f32.xlu0 %v740_v48 }
 0x175   :  { %622 = vadd.xlane.f32.xlu1 %v608_v47 }
 0x179   :  { %v1474_v50 = vpop.f32.mrb[4].mxu1 }
 0x17a   :  { %v1424_v49 = vpop.f32.mrb[4].mxu0  ;;  %v743_v52 = vmul.f32 %v1474_v50, %v1474_v50  ;;  %v555_v54 = vpop.f32.mrb[5].mxu1 }
 0x17b   :  { %v611_v51 = vmul.f32 %v1424_v49, %v1424_v49  ;;  %v430_v53 = vpop.f32.mrb[5].mxu0  ;;  %v742_v56 = vmul.f32 %v555_v54, %v555_v54  ;;  %v594_v49 = vld [vmem:[%s2352_s4] sm:$0xff] }
 0x17c   :  { %760 = vadd.xlane.f32.xlu0 %v743_v52  ;;  %v610_v55 = vmul.f32 %v430_v53, %v430_v53 }
 0x17d   :  { %628 = vadd.xlane.f32.xlu1 %v611_v51 }
 0x180   :  { %758 = vadd.xlane.f32.xlu0 %v742_v56 }
 0x181   :  { %626 = vadd.xlane.f32.xlu1 %v610_v55 }
 0x185   :  { %v1477_v58 = vpop.f32.mrb[6].mxu1 }
 0x186   :  { %v1427_v57 = vpop.f32.mrb[6].mxu0  ;;  %v745_v60 = vmul.f32 %v1477_v58, %v1477_v58  ;;  %v565_v63 = vpop.f32.mrb[7].mxu1 }
 0x187   :  { %v613_v59 = vmul.f32 %v1427_v57, %v1427_v57  ;;  %v440_v61 = vpop.f32.mrb[7].mxu0  ;;  %v744_v2 = vmul.f32 %v565_v63, %v565_v63 }
 0x188   :  { %764 = vadd.xlane.f32.xlu0 %v745_v60  ;;  %v612_v0 = vmul.f32 %v440_v61, %v440_v61 }
 0x189   :  { %632 = vadd.xlane.f32.xlu1 %v613_v59 }
 0x18c   :  { %762 = vadd.xlane.f32.xlu0 %v744_v2 }
 0x18d   :  { %630 = vadd.xlane.f32.xlu1 %v612_v0  ;;  %v1090_v0 = vld [vmem:[#allocation2 + $0x8] sm:$0xff] }
 0x191   :  { %v1480_v4 = vpop.f32.mrb[8].mxu1 }
 0x192   :  { %v1430_v3 = vpop.f32.mrb[8].mxu0  ;;  %v747_v6 = vmul.f32 %v1480_v4, %v1480_v4  ;;  %v575_v8 = vpop.f32.mrb[9].mxu1 }
 0x193   :  { %v615_v5 = vmul.f32 %v1430_v3, %v1430_v3  ;;  %v450_v7 = vpop.f32.mrb[9].mxu0  ;;  %v746_v10 = vmul.f32 %v575_v8, %v575_v8 }
 0x194   :  { %768 = vadd.xlane.f32.xlu0 %v747_v6  ;;  %v614_v9 = vmul.f32 %v450_v7, %v450_v7 }
 0x195   :  { %636 = vadd.xlane.f32.xlu1 %v615_v5 }
 0x198   :  { %766 = vadd.xlane.f32.xlu0 %v746_v10 }
 0x199   :  { %634 = vadd.xlane.f32.xlu1 %v614_v9  ;;  %v1139_v9 = vld [vmem:[#allocation3 + $0x8] sm:$0xff] }
 0x19d   :  { %v1483_v12 = vpop.f32.mrb[10].mxu1 }
 0x19e   :  { %v1433_v11 = vpop.f32.mrb[10].mxu0  ;;  %v585_v14 = vpop.f32.mrb[11].mxu1  ;;  %v749_v18 = vmul.f32 %v1483_v12, %v1483_v12 }
 0x19f   :  { %v460_v13 = vpop.f32.mrb[11].mxu0  ;;  %v748_v16 = vmul.f32 %v585_v14, %v585_v14  ;;  %v617_v17 = vmul.f32 %v1433_v11, %v1433_v11 }
 0x1a0   :  { %v616_v15 = vmul.f32 %v460_v13, %v460_v13 }
 0x1a1   :  { %770 = vadd.xlane.f32.xlu0 %v748_v16 }
 0x1a2   :  { %638 = vadd.xlane.f32.xlu1 %v616_v15 }
 0x1a5   :  { %772 = vadd.xlane.f32.xlu0 %v749_v18  ;;  %v597_v18 = vld [vmem:[%s2352_s4 + $0x18] sm:$0xff] }
 0x1a6   :  { %640 = vadd.xlane.f32.xlu1 %v617_v17 }
 0x1f1   :  { %v753_v19 = vpop.xlane.xlu0 %752 }
 0x1f2   :  { %v621_v20 = vpop.xlane.xlu1 %620  ;;  %v775_v21 = vadd.f32 1e-08, %v753_v19 }
 0x1f3   :  { %v643_v22 = vadd.f32 1e-08, %v621_v20 }
 0x1f4   :  { %1553 = vrsqrt.f32 %v775_v21  ;;  %vm795_vm5 = vcmp.eq.f32.partialorder %v775_v21, inf  ;;  %vm797_vm6 = vcmp.eq.f32.partialorder %v775_v21, 0.0  ;;  %v798_v34 = vand.u32 2147483648, %v775_v21 }
 0x1f5   :  { %1555 = vrsqrt.f32 %v643_v22  ;;  %v619_v23 = vpop.xlane.xlu0 %618  ;;  %vm663_vm7 = vcmp.eq.f32.partialorder %v643_v22, inf  ;;  %vm665_vm8 = vcmp.eq.f32.partialorder %v643_v22, 0.0  ;;  %v666_v38 = vand.u32 2147483648, %v643_v22 }
 0x1f6   :  { %v642_v24 = vadd.f32 1e-08, %v619_v23 }
 0x1f8   :  { %1557 = vrsqrt.f32 %v642_v24  ;;  %vm656_vm9 = vcmp.eq.f32.partialorder %v642_v24, inf  ;;  %vm658_vm10 = vcmp.eq.f32.partialorder %v642_v24, 0.0  ;;  %v659_v43 = vand.u32 2147483648, %v642_v24 }
 0x1f9   :  { %v751_v25 = vpop.xlane.xlu0 %750 }
 0x1fa   :  { %v1938_v26 = vadd.f32 1e-08, %v751_v25 }
 0x1fc   :  { %1559 = vrsqrt.f32 %v1938_v26  ;;  %vm788_vm11 = vcmp.eq.f32.partialorder %v1938_v26, inf  ;;  %vm790_vm12 = vcmp.eq.f32.partialorder %v1938_v26, 0.0  ;;  %v791_v53 = vand.u32 2147483648, %v1938_v26 }
 0x1fd   :  { %v757_v27 = vpop.xlane.xlu0 %756 }
 0x1fe   :  { %v625_v28 = vpop.xlane.xlu1 %624  ;;  %v1554_v29 = vpop.eup %1553  ;;  %v1941_v30 = vadd.f32 1e-08, %v757_v27 }
 0x1ff   :  { %v1943_v31 = vadd.f32 1e-08, %v625_v28  ;;  %v1556_v32 = vpop.eup %1555  ;;  %v794_v33 = vmul.f32 %v1554_v29, %v775_v21 }
 0x200   :  { %v662_v36 = vmul.f32 %v1556_v32, %v643_v22  ;;  %1561 = vrsqrt.f32 %v1941_v30  ;;  %vm809_vm13 = vcmp.eq.f32.partialorder %v1941_v30, inf  ;;  %vm811_vm14 = vcmp.eq.f32.partialorder %v1941_v30, 0.0 }
 0x201   :  { %v796_v37 = vsel %vm795_vm5, %v775_v21, %v794_v33  ;;  %1563 = vrsqrt.f32 %v1943_v31  ;;  %v755_v39 = vpop.xlane.xlu0 %754  ;;  %v812_v61 = vand.u32 2147483648, %v1941_v30  ;;  %vm677_vm15 = vcmp.eq.f32.partialorder %v1943_v31, inf }
 0x202   :  { %v623_v62 = vpop.xlane.xlu1 %622  ;;  %v1558_v40 = vpop.eup %1557  ;;  %v799_v41 = vsel %vm797_vm6, %v798_v34, %v796_v37  ;;  %v664_v42 = vsel %vm663_vm7, %v643_v22, %v662_v36  ;;  %v1950_v47 = vadd.f32 1e-08, %v755_v39  ;;  %vm679_vm0 = vcmp.eq.f32.partialorder %v1943_v31, 0.0  ;;  %v1138_v37 = vld [vmem:[#allocation3] sm:$0xff] }
 0x203   :  { %v907_v44 = vsub.f32 %v595_v35, %v799_v41  ;;  %v667_v45 = vsel %vm665_vm8, %v666_v38, %v664_v42  ;;  %v655_v46 = vmul.f32 %v1558_v40, %v642_v24  ;;  %v1957_v50 = vadd.f32 1e-08, %v623_v62 }
 0x204   :  { %v871_v48 = vsub.f32 %v667_v45, %v595_v35  ;;  %1565 = vrsqrt.f32 %v1950_v47  ;;  %v680_v4 = vand.u32 2147483648, %v1943_v31  ;;  %vm802_vm5 = vcmp.eq.f32.partialorder %v1950_v47, inf }
 0x205   :  { %v919_v51 = vadd.f32 0.2, %v907_v44  ;;  %v657_v52 = vsel %vm656_vm9, %v642_v24, %v655_v46  ;;  %1567 = vrsqrt.f32 %v1957_v50  ;;  %vm804_vm6 = vcmp.eq.f32.partialorder %v1950_v47, 0.0 }
 0x206   :  { %v1560_v54 = vpop.eup %1559  ;;  %v883_v55 = vadd.f32 0.2, %v871_v48  ;;  %v660_v56 = vsel %vm658_vm10, %v659_v43, %v657_v52  ;;  %vm670_vm7 = vcmp.eq.f32.partialorder %v1957_v50, inf  ;;  %vm672_vm8 = vcmp.eq.f32.partialorder %v1957_v50, 0.0 }
 0x207   :  { %v931_v57 = vmax.f32 %v919_v51, 0.0  ;;  %v870_v58 = vsub.f32 %v660_v56, %v594_v49  ;;  %v787_v59 = vmul.f32 %v1560_v54, %v1938_v26  ;;  %v673_v42 = vand.u32 2147483648, %v1957_v50 }
 0x208   :  { %v895_v60 = vmax.f32 %v883_v55, 0.0  ;;  %v1092_v55 = vld [vmem:[#allocation2 + $0x18] sm:$0xff] }
 0x209   :  { %vm1970_vm1 = vcmp.gt.f32.partialorder %v931_v57, 0.0  ;;  %v882_v2 = vadd.f32 0.2, %v870_v58  ;;  %v789_v3 = vsel %vm788_vm11, %v1938_v26, %v787_v59  ;;  %v761_v5 = vpop.xlane.xlu0 %760  ;;  %v805_v26 = vand.u32 2147483648, %v1950_v47 }
 0x20a   :  { %v629_v6 = vpop.xlane.xlu1 %628  ;;  %v1562_v7 = vpop.eup %1561  ;;  %vm1030_vm2 = vcmp.gt.f32.partialorder %v895_v60, 0.0  ;;  %v1102_v8 = vadd.f32 %v931_v57, %v895_v60  ;;  %v792_v10 = vsel %vm790_vm12, %v791_v53, %v789_v3  ;;  %v1980_v11 = vadd.f32 1e-08, %v761_v5 }
 0x20b   :  { %v1564_v12 = vpop.eup %1563  ;;  %vm1054_vm3 = vmor %vm1030_vm2, %vm1970_vm1  ;;  %v906_v13 = vsub.f32 %v594_v49, %v792_v10  ;;  %v808_v14 = vmul.f32 %v1562_v7, %v1941_v30  ;;  %v1986_v15 = vadd.f32 1e-08, %v629_v6  ;;  %v894_v21 = vmax.f32 %v882_v2, 0.0 }
 0x20c   :  { %v1317_v16 = vsel %vm1054_vm3, 1.0, %v1628_v1  ;;  %v1114_v17 = vadd.f32 %v1102_v8, %v1090_v0  ;;  %v676_v19 = vmul.f32 %v1564_v12, %v1943_v31  ;;  %1569 = vrsqrt.f32 %v1980_v11  ;;  %v599_v8 = vld [vmem:[%s2352_s4 + $0x28] sm:$0xff] }
 0x20d   :  { %v1151_v20 = vadd.f32 %v1317_v16, %v1139_v9  ;;  %v918_v22 = vadd.f32 0.2, %v906_v13  ;;  %v810_v23 = vsel %vm809_vm13, %v1941_v30, %v808_v14  ;;  %v1089_v30 = vld [vmem:[#allocation2] sm:$0xff]  ;;  %1571 = vrsqrt.f32 %v1986_v15  ;;  %v759_v39 = vpop.xlane.xlu0 %758 }
 0x20e   :  { %1127 = vst.msk [vmem:[#allocation2 + $0x8] sm:$0xff] %vm25_vm4, %v1114_v17  ;;  %v813_v24 = vsel %vm811_vm14, %v812_v61, %v810_v23  ;;  %v678_v25 = vsel %vm677_vm15, %v1943_v31, %v676_v19  ;;  %v1566_v27 = vpop.eup %1565  ;;  %vm1029_vm9 = vcmp.gt.f32.partialorder %v894_v21, 0.0  ;;  %v596_v31 = vld [vmem:[%s2352_s4 + $0x10] sm:$0xff]  ;;  %v627_v43 = vpop.xlane.xlu1 %626  ;;  %v2033_v57 = vadd.f32 1e-08, %v759_v39  ;;  %v1141_v61 = vld [vmem:[#allocation3 + $0x18] sm:$0xff] }
 0x20f   :  { %1163 = vst.msk [vmem:[#allocation3 + $0x8] sm:$0xff] %vm25_vm4, %v1151_v20  ;;  %v930_v28 = vmax.f32 %v918_v22, 0.0  ;;  %v909_v29 = vsub.f32 %v597_v18, %v813_v24  ;;  %v681_v32 = vsel %vm679_vm0, %v680_v4, %v678_v25  ;;  %v801_v34 = vmul.f32 %v1566_v27, %v1950_v47  ;;  %v1568_v35 = vpop.eup %1567  ;;  %v1140_v22 = vld [vmem:[#allocation3 + $0x10] sm:$0xff] }
 0x210   :  { %v873_v33 = vsub.f32 %v681_v32, %v597_v18  ;;  %v669_v41 = vmul.f32 %v1568_v35, %v1957_v50  ;;  %vm823_vm15 = vcmp.eq.f32.partialorder %v1980_v11, inf  ;;  %v826_v3 = vand.u32 2147483648, %v1980_v11  ;;  %v1091_v18 = vld [vmem:[#allocation2 + $0x10] sm:$0xff] }
 0x211   :  { %vm1041_vm10 = vcmp.gt.f32.partialorder %v930_v28, 0.0  ;;  %v1101_v36 = vadd.f32 %v930_v28, %v894_v21  ;;  %v921_v38 = vadd.f32 0.2, %v909_v29  ;;  %v803_v40 = vsel %vm802_vm5, %v1950_v47, %v801_v34 }
 0x212   :  { %vm1053_vm11 = vmor %vm1029_vm9, %vm1041_vm10  ;;  %v885_v62 = vadd.f32 0.2, %v873_v33  ;;  %v806_v48 = vsel %vm804_vm6, %v805_v26, %v803_v40  ;;  %v671_v53 = vsel %vm670_vm7, %v1957_v50, %v669_v41  ;;  %v2035_v47 = vadd.f32 1e-08, %v627_v43  ;;  %v598_v43 = vld [vmem:[%s2352_s4 + $0x20] sm:$0xff] }
 0x213   :  { %v1316_v44 = vsel %vm1053_vm11, 1.0, %v1628_v1  ;;  %v1113_v45 = vadd.f32 %v1101_v36, %v1089_v30  ;;  %v933_v46 = vmax.f32 %v921_v38, 0.0  ;;  %v908_v52 = vsub.f32 %v596_v31, %v806_v48 }
 0x214   :  { %v1150_v49 = vadd.f32 %v1316_v44, %v1138_v37  ;;  %v897_v51 = vmax.f32 %v885_v62, 0.0  ;;  %v674_v56 = vsel %vm672_vm8, %v673_v42, %v671_v53  ;;  %1573 = vrsqrt.f32 %v2033_v57  ;;  %v1143_v53 = vld [vmem:[#allocation3 + $0x28] sm:$0xff] }
 0x215   :  { %1126 = vst.msk [vmem:[#allocation2] sm:$0xff] %vm25_vm4, %v1113_v45  ;;  %vm2027_vm12 = vcmp.gt.f32.partialorder %v933_v46, 0.0  ;;  %v765_v58 = vpop.xlane.xlu0 %764  ;;  %v920_v63 = vadd.f32 0.2, %v908_v52  ;;  %v872_v0 = vsub.f32 %v674_v56, %v596_v31  ;;  %vm825_vm0 = vcmp.eq.f32.partialorder %v1980_v11, 0.0 }
 0x216   :  { %v1570_v59 = vpop.eup %1569  ;;  %1162 = vst.msk [vmem:[#allocation3] sm:$0xff] %vm25_vm4, %v1150_v49  ;;  %vm1032_vm13 = vcmp.gt.f32.partialorder %v897_v51, 0.0  ;;  %v1104_v60 = vadd.f32 %v933_v46, %v897_v51  ;;  %v633_v2 = vpop.xlane.xlu1 %632  ;;  %1575 = vrsqrt.f32 %v2035_v47  ;;  %vm691_vm2 = vcmp.eq.f32.partialorder %v1986_v15, inf  ;;  %v1094_v46 = vld [vmem:[#allocation2 + $0x28] sm:$0xff] }
 0x217   :  { %vm1056_vm14 = vmor %vm1032_vm13, %vm2027_vm12  ;;  %v822_v50 = vmul.f32 %v1570_v59, %v1980_v11  ;;  %v932_v6 = vmax.f32 %v920_v63, 0.0  ;;  %v884_v7 = vadd.f32 0.2, %v872_v0  ;;  %v1572_v12 = vpop.eup %1571  ;;  %v2060_v23 = vadd.f32 1e-08, %v765_v58 }
 0x218   :  { %v1319_v4 = vsel %vm1056_vm14, 1.0, %v1628_v1  ;;  %v1116_v5 = vadd.f32 %v1104_v60, %v1092_v55  ;;  %v690_v20 = vmul.f32 %v1572_v12, %v1986_v15  ;;  %v2062_v24 = vadd.f32 1e-08, %v633_v2 }
 0x219   :  { %v1153_v9 = vadd.f32 %v1319_v4, %v1141_v61  ;;  %v824_v10 = vsel %vm823_vm15, %v1980_v11, %v822_v50  ;;  %vm2052_vm1 = vcmp.gt.f32.partialorder %v932_v6, 0.0  ;;  %v896_v14 = vmax.f32 %v884_v7, 0.0  ;;  %v763_v17 = vpop.xlane.xlu0 %762 }
 0x21a   :  { %1129 = vst.msk [vmem:[#allocation2 + $0x18] sm:$0xff] %vm25_vm4, %v1116_v5  ;;  %v827_v16 = vsel %vm825_vm0, %v826_v3, %v824_v10  ;;  %v694_v11 = vand.u32 2147483648, %v1986_v15  ;;  %v631_v25 = vpop.xlane.xlu1 %630  ;;  %v692_v27 = vsel %vm691_vm2, %v1986_v15, %v690_v20  ;;  %vm693_vm6 = vcmp.eq.f32.partialorder %v1986_v15, 0.0 }
 0x21b   :  { %1165 = vst.msk [vmem:[#allocation3 + $0x18] sm:$0xff] %vm25_vm4, %v1153_v9  ;;  %v911_v19 = vsub.f32 %v599_v8, %v827_v16  ;;  %vm1031_vm3 = vcmp.gt.f32.partialorder %v896_v14, 0.0  ;;  %v1103_v21 = vadd.f32 %v932_v6, %v896_v14  ;;  %v2068_v28 = vadd.f32 1e-08, %v763_v17  ;;  %v601_v9 = vld [vmem:[%s2352_s4 + $0x38] sm:$0xff] }
 0x21c   :  { %vm1055_vm5 = vmor %vm1031_vm3, %vm2052_vm1  ;;  %v695_v30 = vsel %vm693_vm6, %v694_v11, %v692_v27  ;;  %1577 = vrsqrt.f32 %v2060_v23  ;;  %v2072_v36 = vadd.f32 1e-08, %v631_v25  ;;  %vm816_vm7 = vcmp.eq.f32.partialorder %v2033_v57, inf  ;;  %v1093_v11 = vld [vmem:[#allocation2 + $0x20] sm:$0xff] }
 0x21d   :  { %v923_v26 = vadd.f32 0.2, %v911_v19  ;;  %v1318_v29 = vsel %vm1055_vm5, 1.0, %v1628_v1  ;;  %v1115_v32 = vadd.f32 %v1103_v21, %v1091_v18  ;;  %v875_v35 = vsub.f32 %v695_v30, %v599_v8  ;;  %v1142_v27 = vld [vmem:[#allocation3 + $0x20] sm:$0xff] }
 0x21e   :  { %v1152_v33 = vadd.f32 %v1318_v29, %v1140_v22  ;;  %vm818_vm8 = vcmp.eq.f32.partialorder %v2033_v57, 0.0  ;;  %1579 = vrsqrt.f32 %v2062_v24  ;;  %v1574_v15 = vpop.eup %1573  ;;  %v819_v38 = vand.u32 2147483648, %v2033_v57 }
 0x21f   :  { %v935_v34 = vmax.f32 %v923_v26, 0.0  ;;  %1128 = vst.msk [vmem:[#allocation2 + $0x10] sm:$0xff] %vm25_vm4, %v1115_v32  ;;  %v887_v37 = vadd.f32 0.2, %v875_v35  ;;  %vm684_vm9 = vcmp.eq.f32.partialorder %v2035_v47, inf  ;;  %vm686_vm10 = vcmp.eq.f32.partialorder %v2035_v47, 0.0 }
 0x220   :  { %1164 = vst.msk [vmem:[#allocation3 + $0x10] sm:$0xff] %vm25_vm4, %v1152_v33  ;;  %v815_v39 = vmul.f32 %v1574_v15, %v2033_v57  ;;  %v687_v62 = vand.u32 2147483648, %v2035_v47  ;;  %vm837_vm11 = vcmp.eq.f32.partialorder %v2060_v23, inf  ;;  %1581 = vrsqrt.f32 %v2068_v28  ;;  %v1576_v40 = vpop.eup %1575  ;;  %v600_v32 = vld [vmem:[%s2352_s4 + $0x30] sm:$0xff] }
 0x221   :  { %v769_v31 = vpop.xlane.xlu0 %768  ;;  %vm2086_vm12 = vcmp.gt.f32.partialorder %v935_v34, 0.0  ;;  %v899_v42 = vmax.f32 %v887_v37, 0.0  ;;  %vm839_vm13 = vcmp.eq.f32.partialorder %v2060_v23, 0.0  ;;  %v840_v44 = vand.u32 2147483648, %v2060_v23 }
 0x222   :  { %1583 = vrsqrt.f32 %v2072_v36  ;;  %v637_v45 = vpop.xlane.xlu1 %636  ;;  %v817_v48 = vsel %vm816_vm7, %v2033_v57, %v815_v39  ;;  %v683_v49 = vmul.f32 %v1576_v40, %v2035_v47  ;;  %vm705_vm14 = vcmp.eq.f32.partialorder %v2062_v24, inf }
 0x223   :  { %v708_v51 = vand.u32 2147483648, %v2062_v24  ;;  %vm1034_vm15 = vcmp.gt.f32.partialorder %v899_v42, 0.0  ;;  %v1106_v52 = vadd.f32 %v935_v34, %v899_v42  ;;  %v820_v54 = vsel %vm818_vm8, %v819_v38, %v817_v48 }
 0x224   :  { %vm707_vm0 = vcmp.eq.f32.partialorder %v2062_v24, 0.0  ;;  %v2105_v55 = vadd.f32 1e-08, %v769_v31  ;;  %vm1058_vm1 = vmor %vm1034_vm15, %vm2086_vm12  ;;  %v910_v58 = vsub.f32 %v598_v43, %v820_v54  ;;  %v685_v59 = vsel %vm684_vm9, %v2035_v47, %v683_v49 }
 0x225   :  { %v767_v56 = vpop.xlane.xlu0 %766  ;;  %vm830_vm2 = vcmp.eq.f32.partialorder %v2068_v28, inf  ;;  %v2113_v60 = vadd.f32 1e-08, %v637_v45  ;;  %v1321_v57 = vsel %vm1058_vm1, 1.0, %v1628_v1  ;;  %v1118_v63 = vadd.f32 %v1106_v52, %v1094_v46 }
 0x226   :  { %v2115_v61 = vadd.f32 1e-08, %v767_v56  ;;  %v688_v0 = vsel %vm686_vm10, %v687_v62, %v685_v59  ;;  %1585 = vrsqrt.f32 %v2105_v55  ;;  %v1578_v2 = vpop.eup %1577  ;;  %v1155_v50 = vadd.f32 %v1321_v57, %v1143_v53  ;;  %v1096_v53 = vld [vmem:[#allocation2 + $0x38] sm:$0xff] }
 0x227   :  { %v922_v3 = vadd.f32 0.2, %v910_v58  ;;  %v874_v4 = vsub.f32 %v688_v0, %v598_v43  ;;  %vm832_vm3 = vcmp.eq.f32.partialorder %v2068_v28, 0.0  ;;  %1131 = vst.msk [vmem:[#allocation2 + $0x28] sm:$0xff] %vm25_vm4, %v1118_v63  ;;  %v836_v5 = vmul.f32 %v1578_v2, %v2060_v23  ;;  %v1145_v57 = vld [vmem:[#allocation3 + $0x38] sm:$0xff]  ;;  %v603_v2 = vld [vmem:[%s2352_s4 + $0x48] sm:$0xff] }
 0x228   :  { %v833_v6 = vand.u32 2147483648, %v2068_v28  ;;  %vm698_vm5 = vcmp.eq.f32.partialorder %v2072_v36, inf  ;;  %1587 = vrsqrt.f32 %v2113_v60  ;;  %v1580_v47 = vpop.eup %1579  ;;  %1167 = vst.msk [vmem:[#allocation3 + $0x28] sm:$0xff] %vm25_vm4, %v1155_v50  ;;  %vm700_vm6 = vcmp.eq.f32.partialorder %v2072_v36, 0.0 }
 0x229   :  { %v934_v7 = vmax.f32 %v922_v3, 0.0  ;;  %v886_v8 = vadd.f32 0.2, %v874_v4  ;;  %v701_v10 = vand.u32 2147483648, %v2072_v36  ;;  %v838_v12 = vsel %vm837_vm11, %v2060_v23, %v836_v5 }
 0x22a   :  { %v704_v13 = vmul.f32 %v1580_v47, %v2062_v24  ;;  %vm851_vm7 = vcmp.eq.f32.partialorder %v2105_v55, inf  ;;  %1589 = vrsqrt.f32 %v2115_v61  ;;  %v1582_v14 = vpop.eup %1581  ;;  %v841_v18 = vsel %vm839_vm13, %v840_v44, %v838_v12  ;;  %v1095_v12 = vld [vmem:[#allocation2 + $0x30] sm:$0xff] }
 0x22b   :  { %vm2139_vm8 = vcmp.gt.f32.partialorder %v934_v7, 0.0  ;;  %v898_v17 = vmax.f32 %v886_v8, 0.0  ;;  %v854_v19 = vand.u32 2147483648, %v2105_v55  ;;  %v913_v21 = vsub.f32 %v601_v9, %v841_v18  ;;  %v1144_v18 = vld [vmem:[#allocation3 + $0x30] sm:$0xff]  ;;  %v1146_v8 = vld [vmem:[#allocation3 + $0x40] sm:$0xff] }
 0x22c   :  { %v1584_v20 = vpop.eup %1583  ;;  %v706_v22 = vsel %vm705_vm14, %v2062_v24, %v704_v13  ;;  %v829_v25 = vmul.f32 %v1582_v14, %v2068_v28  ;;  %vm853_vm9 = vcmp.eq.f32.partialorder %v2105_v55, 0.0  ;;  %vm719_vm10 = vcmp.eq.f32.partialorder %v2113_v60, inf  ;;  %v635_v24 = vpop.xlane.xlu1 %634 }
 0x22d   :  { %v722_v26 = vand.u32 2147483648, %v2113_v60  ;;  %vm1033_vm11 = vcmp.gt.f32.partialorder %v898_v17, 0.0  ;;  %v1105_v23 = vadd.f32 %v934_v7, %v898_v17  ;;  %v709_v29 = vsel %vm707_vm0, %v708_v51, %v706_v22 }
 0x22e   :  { %v697_v30 = vmul.f32 %v1584_v20, %v2072_v36  ;;  %vm1057_vm12 = vmor %vm1033_vm11, %vm2139_vm8  ;;  %v925_v33 = vadd.f32 0.2, %v913_v21  ;;  %v877_v34 = vsub.f32 %v709_v29, %v601_v9  ;;  %v831_v35 = vsel %vm830_vm2, %v2068_v28, %v829_v25  ;;  %v771_v52 = vpop.xlane.xlu0 %770 }
 0x22f   :  { %vm721_vm13 = vcmp.eq.f32.partialorder %v2113_v60, 0.0  ;;  %vm844_vm14 = vcmp.eq.f32.partialorder %v2115_v61, inf  ;;  %v1320_v15 = vsel %vm1057_vm12, 1.0, %v1628_v1  ;;  %v1117_v37 = vadd.f32 %v1105_v23, %v1093_v11 }
 0x230   :  { %v834_v38 = vsel %vm832_vm3, %v833_v6, %v831_v35  ;;  %v699_v31 = vsel %vm698_vm5, %v2072_v36, %v697_v30  ;;  %v1586_v39 = vpop.eup %1585  ;;  %v1154_v62 = vadd.f32 %v1320_v15, %v1142_v27  ;;  %v937_v40 = vmax.f32 %v925_v33, 0.0  ;;  %v639_v50 = vpop.xlane.xlu1 %638  ;;  %v1098_v35 = vld [vmem:[#allocation2 + $0x48] sm:$0xff] }
 0x231   :  { %v889_v41 = vadd.f32 0.2, %v877_v34  ;;  %v912_v42 = vsub.f32 %v600_v32, %v834_v38  ;;  %1130 = vst.msk [vmem:[#allocation2 + $0x20] sm:$0xff] %vm25_vm4, %v1117_v37  ;;  %v702_v43 = vsel %vm700_vm6, %v701_v10, %v699_v31  ;;  %v850_v44 = vmul.f32 %v1586_v39, %v2105_v55  ;;  %v1147_v37 = vld [vmem:[#allocation3 + $0x48] sm:$0xff] }
 0x232   :  { %vm846_vm15 = vcmp.eq.f32.partialorder %v2115_v61, 0.0  ;;  %v2177_v28 = vadd.f32 1e-08, %v635_v24  ;;  %v1588_v45 = vpop.eup %1587  ;;  %1166 = vst.msk [vmem:[#allocation3 + $0x20] sm:$0xff] %vm25_vm4, %v1154_v62  ;;  %vm2180_vm0 = vcmp.gt.f32.partialorder %v937_v40, 0.0  ;;  %v876_v51 = vsub.f32 %v702_v43, %v600_v32  ;;  %v773_v21 = vpop.xlane.xlu0 %772 }
 0x233   :  { %v901_v48 = vmax.f32 %v889_v41, 0.0  ;;  %v924_v49 = vadd.f32 0.2, %v912_v42  ;;  %v852_v36 = vsel %vm851_vm7, %v2105_v55, %v850_v44  ;;  %v718_v54 = vmul.f32 %v1588_v45, %v2113_v60  ;;  %v602_v55 = vld [vmem:[%s2352_s4 + $0x40] sm:$0xff] }
 0x234   :  { %v847_v56 = vand.u32 2147483648, %v2115_v61  ;;  %1591 = vrsqrt.f32 %v2177_v28  ;;  %v1590_v58 = vpop.eup %1589  ;;  %v888_v0 = vadd.f32 0.2, %v876_v51  ;;  %v855_v3 = vsel %vm853_vm9, %v854_v19, %v852_v36  ;;  %v641_v23 = vpop.xlane.xlu1 %640  ;;  %v1177_v42 = vld [vmem:[#allocation2] sm:$0xff] }
 0x235   :  { %vm1036_vm1 = vcmp.gt.f32.partialorder %v901_v48, 0.0  ;;  %v1108_v59 = vadd.f32 %v937_v40, %v901_v48  ;;  %v936_v63 = vmax.f32 %v924_v49, 0.0  ;;  %v720_v4 = vsel %vm719_vm10, %v2113_v60, %v718_v54  ;;  %v1218_v36 = vld [vmem:[#allocation3] sm:$0xff]  ;;  %v604_v54 = vld [vmem:[%s2352_s4 + $0x50] sm:$0xff] }
 0x236   :  { %vm1060_vm2 = vmor %vm1036_vm1, %vm2180_vm0  ;;  %v843_v5 = vmul.f32 %v1590_v58, %v2115_v61  ;;  %v2201_v6 = vadd.f32 1e-08, %v771_v52  ;;  %v900_v9 = vmax.f32 %v888_v0, 0.0  ;;  %v915_v13 = vsub.f32 %v603_v2, %v855_v3  ;;  %v1179_v58 = vld [vmem:[#allocation2 + $0x10] sm:$0xff]  ;;  %v1219_v0 = vld [vmem:[#allocation3 + $0x8] sm:$0xff] }
 0x237   :  { %v1323_v47 = vsel %vm1060_vm2, 1.0, %v1628_v1  ;;  %v1120_v7 = vadd.f32 %v1108_v59, %v1096_v53  ;;  %vm2204_vm3 = vcmp.gt.f32.partialorder %v936_v63, 0.0  ;;  %v723_v14 = vsel %vm721_vm13, %v722_v26, %v720_v4  ;;  %v1178_v53 = vld [vmem:[#allocation2 + $0x8] sm:$0xff] }
 0x238   :  { %v1157_v10 = vadd.f32 %v1323_v47, %v1145_v57  ;;  %v845_v16 = vsel %vm844_vm14, %v2115_v61, %v843_v5  ;;  %vm1035_vm5 = vcmp.gt.f32.partialorder %v900_v9, 0.0  ;;  %v1107_v17 = vadd.f32 %v936_v63, %v900_v9 }
 0x239   :  { %1133 = vst.msk [vmem:[#allocation2 + $0x38] sm:$0xff] %vm25_vm4, %v1120_v7  ;;  %v879_v19 = vsub.f32 %v723_v14, %v603_v2  ;;  %v848_v20 = vsel %vm846_vm15, %v847_v56, %v845_v16  ;;  %vm1059_vm6 = vmor %vm1035_vm5, %vm2204_vm3  ;;  %v927_v60 = vadd.f32 0.2, %v915_v13  ;;  %1593 = vrsqrt.f32 %v2201_v6  ;;  %v1220_v2 = vld [vmem:[#allocation3 + $0x10] sm:$0xff]  ;;  %v1222_v13 = vld [vmem:[#allocation3 + $0x20] sm:$0xff] }
 0x23a   :  { %1169 = vst.msk [vmem:[#allocation3 + $0x38] sm:$0xff] %vm25_vm4, %v1157_v10  ;;  %v914_v11 = vsub.f32 %v602_v55, %v848_v20  ;;  %v1322_v22 = vsel %vm1059_vm6, 1.0, %v1628_v1  ;;  %v1119_v25 = vadd.f32 %v1107_v17, %v1095_v12  ;;  %v2225_v30 = vadd.f32 1e-08, %v639_v50  ;;  %v1097_v50 = vld [vmem:[#allocation2 + $0x40] sm:$0xff]  ;;  %v1221_v12 = vld [vmem:[#allocation3 + $0x18] sm:$0xff] }
 0x23b   :  { %v891_v26 = vadd.f32 0.2, %v879_v19  ;;  %v1156_v27 = vadd.f32 %v1322_v22, %v1144_v18  ;;  %v939_v29 = vmax.f32 %v927_v60, 0.0  ;;  %v2227_v33 = vadd.f32 1e-08, %v773_v21 }
 0x23c   :  { %v926_v32 = vadd.f32 0.2, %v914_v11  ;;  %1132 = vst.msk [vmem:[#allocation2 + $0x30] sm:$0xff] %vm25_vm4, %v1119_v25  ;;  %v2230_v24 = vadd.f32 1e-08, %v641_v23  ;;  %1595 = vrsqrt.f32 %v2225_v30  ;;  %vm712_vm10 = vcmp.eq.f32.partialorder %v2177_v28, inf }
 0x23d   :  { %v903_v61 = vmax.f32 %v891_v26, 0.0  ;;  %1168 = vst.msk [vmem:[#allocation3 + $0x30] sm:$0xff] %vm25_vm4, %v1156_v27  ;;  %vm1050_vm7 = vcmp.gt.f32.partialorder %v939_v29, 0.0  ;;  %vm714_vm11 = vcmp.eq.f32.partialorder %v2177_v28, 0.0  ;;  %v715_v39 = vand.u32 2147483648, %v2177_v28  ;;  %v1180_v25 = vld [vmem:[#allocation2 + $0x18] sm:$0xff] }
 0x23e   :  { %v1592_v34 = vpop.eup %1591  ;;  %v938_v31 = vmax.f32 %v926_v32, 0.0  ;;  %1597 = vrsqrt.f32 %v2227_v33  ;;  %vm858_vm12 = vcmp.eq.f32.partialorder %v2201_v6, inf  ;;  %vm860_vm13 = vcmp.eq.f32.partialorder %v2201_v6, 0.0  ;;  %v1181_v32 = vld [vmem:[#allocation2 + $0x20] sm:$0xff] }
 0x23f   :  { %vm1038_vm8 = vcmp.gt.f32.partialorder %v903_v61, 0.0  ;;  %v1110_v15 = vadd.f32 %v939_v29, %v903_v61  ;;  %v711_v38 = vmul.f32 %v1592_v34, %v2177_v28  ;;  %1599 = vrsqrt.f32 %v2230_v24  ;;  %v605_v29 = vld [vmem:[%s2352_s4 + $0x58] sm:$0xff]  ;;  %s1629_s4 = smov [#allocation4]  }
 0x240   :  { %vm1062_vm9 = vmor %vm1038_vm8, %vm1050_vm7  ;;  %v861_v48 = vand.u32 2147483648, %v2201_v6  ;;  %vm2247_vm14 = vcmp.gt.f32.partialorder %v938_v31, 0.0  ;;  %vm726_vm15 = vcmp.eq.f32.partialorder %v2225_v30, inf  ;;  %vm728_vm0 = vcmp.eq.f32.partialorder %v2225_v30, 0.0  ;;  %s1272_s16 = sshll.u32 %s1629_s4, 4  ;;  %s1273_s16 = int_to_ptr.vmem [resolvable:$true] %s1272_s16 }
 0x241   :  { %v1325_v62 = vsel %vm1062_vm9, 1.0, %v1628_v1  ;;  %v1122_v40 = vadd.f32 %v1110_v15, %v1098_v35  ;;  %v713_v41 = vsel %vm712_vm10, %v2177_v28, %v711_v38  ;;  %v1189_v28 = vsel %vm25_vm4, %v1177_v42, 0.0  ;;  %s1603_s3 = scalar_lea.vmem %s1273_s16, 16  ;;  %s1607_s17 = scalar_lea.vmem %s1273_s16, 32 }
 0x242   :  { %v1159_v43 = vadd.f32 %v1325_v62, %v1147_v37  ;;  %v716_v44 = vsel %vm714_vm11, %v715_v39, %v713_v41  ;;  %v729_v56 = vand.u32 2147483648, %v2225_v30  ;;  %vm865_vm1 = vcmp.eq.f32.partialorder %v2227_v33, inf  ;;  %p1604_p0 = scmp.ne.s32.totalorder %s1273_s16, %s1603_s3  ;;  %p1608_p1 = scmp.lt.s32.totalorder %s1273_s16, %s1273_s16 }
 0x243   :  { %1135 = vst.msk [vmem:[#allocation2 + $0x48] sm:$0xff] %vm25_vm4, %v1122_v40  ;;  %v878_v45 = vsub.f32 %v716_v44, %v602_v55  ;;  %v1594_v46 = vpop.eup %1593  ;;  %vm867_vm2 = vcmp.eq.f32.partialorder %v2227_v33, 0.0  ;;  %v868_v63 = vand.u32 2147483648, %v2227_v33  ;;  %vm733_vm3 = vcmp.eq.f32.partialorder %v2230_v24, inf  ;;  %p1609_p2 = scmp.lt.s32.totalorder %s1607_s17, %s1603_s3 }
 0x244   :  { %1171 = vst.msk [vmem:[#allocation3 + $0x48] sm:$0xff] %vm25_vm4, %v1159_v43  ;;  %v857_v52 = vmul.f32 %v1594_v46, %v2201_v6  ;;  %vm735_vm5 = vcmp.eq.f32.partialorder %v2230_v24, 0.0  ;;  %v1190_v4 = vsel %vm25_vm4, %v1178_v53, 0.0  ;;  %v1230_v5 = vsel %vm25_vm4, %v1218_v36, 0.0  ;;  %v1183_v36 = vld [vmem:[#allocation2 + $0x30] sm:$0xff] }
 0x245   :  { %v890_v51 = vadd.f32 0.2, %v878_v45  ;;  %v1192_v55 = vsel %vm25_vm4, %v1179_v58, 0.0  ;;  %v1231_v14 = vsel %vm25_vm4, %v1219_v0, 0.0  ;;  %v1233_v16 = vsel %vm25_vm4, %v1220_v2, 0.0  ;;  %v1223_v45 = vld [vmem:[#allocation3 + $0x28] sm:$0xff]  ;;  %p1610_p3 = por %p1609_p2, %p1608_p1 }
 0x246   :  { %v859_v57 = vsel %vm858_vm12, %v2201_v6, %v857_v52  ;;  %v1596_v47 = vpop.eup %1595  ;;  %v1191_v6 = vadd.f32 %v1190_v4, %v1189_v28  ;;  %v1232_v60 = vadd.f32 %v1231_v14, %v1230_v5  ;;  %v1235_v34 = vsel %vm25_vm4, %v1221_v12, 0.0  ;;  %v1149_v12 = vld [vmem:[#allocation3 + $0x58] sm:$0xff] }
 0x247   :  { %v902_v59 = vmax.f32 %v890_v51, 0.0  ;;  %v862_v3 = vsel %vm860_vm13, %v861_v48, %v859_v57  ;;  %v725_v10 = vmul.f32 %v1596_v47, %v2225_v30  ;;  %v1237_v35 = vsel %vm25_vm4, %v1222_v13, 0.0  ;;  %v1182_v48 = vld [vmem:[#allocation2 + $0x28] sm:$0xff]  ;;  %v1225_v13 = vld [vmem:[#allocation3 + $0x38] sm:$0xff]  ;;  %p1611_p4 = pnand %p1610_p3, %p1604_p0 }
 0x248   :  { %v916_v9 = vsub.f32 %v604_v54, %v862_v3  ;;  %v1598_v17 = vpop.eup %1597  ;;  %v1193_v26 = vadd.f32 %v1192_v55, %v1191_v6  ;;  %v1234_v61 = vadd.f32 %v1233_v16, %v1232_v60  ;;  %v736_v39 = vand.u32 2147483648, %v2230_v24  ;;  %v1100_v55 = vld [vmem:[#allocation2 + $0x58] sm:$0xff] }
 0x249   :  { %vm1037_vm6 = vcmp.gt.f32.partialorder %v902_v59, 0.0  ;;  %v1109_v7 = vadd.f32 %v938_v31, %v902_v59  ;;  %v727_v21 = vsel %vm726_vm15, %v2225_v30, %v725_v10  ;;  %v864_v22 = vmul.f32 %v1598_v17, %v2227_v33  ;;  %v1600_v23 = vpop.eup %1599  ;;  %v1184_v17 = vld [vmem:[#allocation2 + $0x38] sm:$0xff] }
 0x24a   :  { %vm1061_vm7 = vmor %vm1037_vm6, %vm2247_vm14  ;;  %v928_v20 = vadd.f32 0.2, %v916_v9  ;;  %v730_v27 = vsel %vm728_vm0, %v729_v56, %v727_v21  ;;  %v732_v30 = vmul.f32 %v1600_v23, %v2230_v24  ;;  %v1194_v62 = vsel %vm25_vm4, %v1180_v25, 0.0  ;;  %v1099_v56 = vld [vmem:[#allocation2 + $0x50] sm:$0xff] }
 0x24b   :  { %v1324_v18 = vsel %vm1061_vm7, 1.0, %v1628_v1  ;;  %v1121_v19 = vadd.f32 %v1109_v7, %v1097_v50  ;;  %v880_v37 = vsub.f32 %v730_v27, %v604_v54  ;;  %v866_v38 = vsel %vm865_vm1, %v2227_v33, %v864_v22  ;;  %v1224_v54 = vld [vmem:[#allocation3 + $0x30] sm:$0xff] }
 0x24c   :  { %v1158_v11 = vadd.f32 %v1324_v18, %v1146_v8  ;;  %v940_v15 = vmax.f32 %v928_v20, 0.0  ;;  %v869_v31 = vsel %vm867_vm2, %v868_v63, %v866_v38  ;;  %v1236_v40 = vadd.f32 %v1235_v34, %v1234_v61  ;;  %v1186_v61 = vld [vmem:[#allocation2 + $0x48] sm:$0xff] }
 0x24d   :  { %1134 = vst.msk [vmem:[#allocation2 + $0x40] sm:$0xff] %vm25_vm4, %v1121_v19  ;;  %v892_v41 = vadd.f32 0.2, %v880_v37  ;;  %v917_v42 = vsub.f32 %v605_v29, %v869_v31  ;;  %v734_v43 = vsel %vm733_vm3, %v2230_v24, %v732_v30  ;;  %v1196_v44 = vsel %vm25_vm4, %v1181_v32, 0.0  ;;  %v1148_v24 = vld [vmem:[#allocation3 + $0x50] sm:$0xff] }
 0x24e   :  { %1170 = vst.msk [vmem:[#allocation3 + $0x40] sm:$0xff] %vm25_vm4, %v1158_v11  ;;  %v737_v46 = vsel %vm735_vm5, %v736_v39, %v734_v43  ;;  %v1195_v33 = vadd.f32 %v1194_v62, %v1193_v26  ;;  %v1238_v28 = vadd.f32 %v1237_v35, %v1236_v40  ;;  %vm2304_vm8 = vcmp.gt.f32.partialorder %v940_v15, 0.0 }
 0x24f   :  { %v904_v51 = vmax.f32 %v892_v41, 0.0  ;;  %v929_v52 = vadd.f32 0.2, %v917_v42  ;;  %v881_v53 = vsub.f32 %v737_v46, %v605_v29  ;;  %v1239_v59 = vsel %vm25_vm4, %v1223_v45, 0.0  ;;  %v1227_v29 = vld [vmem:[#allocation3 + $0x48] sm:$0xff] }
 0x250   :  { %v1197_v58 = vadd.f32 %v1196_v44, %v1195_v33  ;;  %v1198_v2 = vsel %vm25_vm4, %v1182_v48, 0.0  ;;  %v1200_v50 = vsel %vm25_vm4, %v1183_v36, 0.0  ;;  %v1240_v3 = vadd.f32 %v1239_v59, %v1238_v28 }
 0x251   :  { %vm1039_vm9 = vcmp.gt.f32.partialorder %v904_v51, 0.0  ;;  %v1111_v57 = vadd.f32 %v940_v15, %v904_v51  ;;  %v941_v63 = vmax.f32 %v929_v52, 0.0  ;;  %v893_v0 = vadd.f32 0.2, %v881_v53 }
 0x252   :  { %vm1063_vm10 = vmor %vm1039_vm9, %vm2304_vm8  ;;  %v1241_v4 = vsel %vm25_vm4, %v1224_v54, 0.0  ;;  %v1199_v10 = vadd.f32 %v1198_v2, %v1197_v58  ;;  %v1243_v21 = vsel %vm25_vm4, %v1225_v13, 0.0  ;;  %v1202_v25 = vsel %vm25_vm4, %v1184_v17, 0.0 }
 0x253   :  { %v1326_v5 = vsel %vm1063_vm10, 1.0, %v1628_v1  ;;  %v1123_v47 = vadd.f32 %v1111_v57, %v1099_v56  ;;  %vm2315_vm11 = vcmp.gt.f32.partialorder %v941_v63, 0.0  ;;  %v905_v8 = vmax.f32 %v893_v0, 0.0 }
 0x254   :  { %v1160_v9 = vadd.f32 %v1326_v5, %v1148_v24  ;;  %v1242_v16 = vadd.f32 %v1241_v4, %v1240_v3  ;;  %v1185_v18 = vld [vmem:[#allocation2 + $0x40] sm:$0xff]  ;;  %v1201_v19 = vadd.f32 %v1200_v50, %v1199_v10  ;;  %v1247_v15 = vsel %vm25_vm4, %v1227_v29, 0.0 }
 0x255   :  { %1136 = vst.msk [vmem:[#allocation2 + $0x50] sm:$0xff] %vm25_vm4, %v1123_v47  ;;  %vm1040_vm12 = vcmp.gt.f32.partialorder %v905_v8, 0.0  ;;  %v1112_v6 = vadd.f32 %v941_v63, %v905_v8  ;;  %v1226_v14 = vld [vmem:[#allocation3 + $0x40] sm:$0xff]  ;;  %v1204_v26 = vsel %vm25_vm4, %v1185_v18, 0.0  ;;  %v1206_v38 = vsel %vm25_vm4, %v1186_v61, 0.0 }
 0x256   :  { %1172 = vst.msk [vmem:[#allocation3 + $0x50] sm:$0xff] %vm25_vm4, %v1160_v9  ;;  %vm1064_vm13 = vmor %vm1040_vm12, %vm2315_vm11  ;;  %v1245_v22 = vsel %vm25_vm4, %v1226_v14, 0.0  ;;  %v1244_v23 = vadd.f32 %v1243_v21, %v1242_v16  ;;  %v1203_v27 = vadd.f32 %v1202_v25, %v1201_v19 }
 0x257   :  { %v1327_v20 = vsel %vm1064_vm13, 1.0, %v1628_v1  ;;  %v1124_v60 = vadd.f32 %v1112_v6, %v1100_v55 }
 0x258   :  { %v1161_v11 = vadd.f32 %v1327_v20, %v1149_v12  ;;  %v1246_v32 = vadd.f32 %v1245_v22, %v1244_v23  ;;  %v1205_v34 = vadd.f32 %v1204_v26, %v1203_v27 }
 0x259   :  { %1137 = vst.msk [vmem:[#allocation2 + $0x58] sm:$0xff] %vm25_vm4, %v1124_v60 }
 0x25a   :  { %1173 = vst.msk [vmem:[#allocation3 + $0x58] sm:$0xff] %vm25_vm4, %v1161_v11  ;;  %v1248_v31 = vadd.f32 %v1247_v15, %v1246_v32  ;;  %v1207_v62 = vadd.f32 %v1206_v38, %v1205_v34 }
 0x25c   :  { %v1187_v1 = vld [vmem:[#allocation2 + $0x50] sm:$0xff] }
 0x25d   :  { %v1228_v35 = vld [vmem:[#allocation3 + $0x50] sm:$0xff]  ;;  %v1208_v30 = vsel %vm25_vm4, %v1187_v1, 0.0 }
 0x25e   :  { %v1249_v37 = vsel %vm25_vm4, %v1228_v35, 0.0  ;;  %v1209_v43 = vadd.f32 %v1208_v30, %v1207_v62 }
 0x25f   :  { %v1250_v42 = vadd.f32 %v1249_v37, %v1248_v31 }
 0x260   :  { %v1188_v39 = vld [vmem:[#allocation2 + $0x58] sm:$0xff] }
 0x261   :  { %v1210_v40 = vsel %vm25_vm4, %v1188_v39, 0.0  ;;  %v1229_v41 = vld [vmem:[#allocation3 + $0x58] sm:$0xff] }
 0x262   :  { %v1251_v44 = vsel %vm25_vm4, %v1229_v41, 0.0  ;;  %v1211_v46 = vadd.f32 %v1210_v40, %v1209_v43  ;;  %vm1264_vm4 = vcmask 0  }
 0x263   :  { %v1252_v45 = vadd.f32 %v1251_v44, %v1250_v42 }
 0x264   :  { %v1212_v28 = vrot.slane %v1211_v46, 4 }
 0x265   :  { %v1253_v48 = vrot.slane %v1252_v45, 4 }
 0x266   :  { %v1213_v52 = vadd.f32 %v1212_v28, %v1211_v46 }
 0x267   :  { %v1254_v33 = vadd.f32 %v1253_v48, %v1252_v45 }
 0x268   :  { %v1214_v54 = vrot.slane %v1213_v52, 2 }
 0x269   :  { %v1255_v49 = vrot.slane %v1254_v33, 2 }
 0x26a   :  { %v1215_v58 = vadd.f32 %v1214_v54, %v1213_v52 }
 0x26b   :  { %v1256_v51 = vadd.f32 %v1255_v49, %v1254_v33 }
 0x26c   :  { %v1216_v59 = vrot.slane %v1215_v58, 1 }
 0x26d   :  { %v1257_v53 = vrot.slane %v1256_v51, 1 }
 0x26e   :  { %v1217_v57 = vadd.f32 %v1216_v59, %v1215_v58 }
 0x26f   :  { %v1258_v36 = vadd.f32 %v1257_v53, %v1256_v51 }
 0x271   :  { %v1259_v56 = vmax.f32 %v1258_v36, 1.0  ;;  %vm1261_vm14 = vcmp.eq.f32.partialorder %v1258_v36, 0.0 }
 0x273   :  { %1601 = vrcp.f32 %v1259_v56 }
 0x27d   :  { %v1602_v24 = vpop.eup %1601 }
 0x27e   :  { %v1262_v63 = vmul.f32 %v1602_v24, %v1217_v57 }
 0x280   :  { %v1263_v0 = vsel %vm1261_vm14, %v1217_v57, %v1262_v63 }
 0x281   :  { %1265 = vst.msk [vmem:[#allocation4] sm:$0x1] %vm1264_vm4, %v1263_v0 }
 0x282   :  { %1614 = shalt.err (!%p1611_p4)
}
 0x283   :  { %s1615_s0 = scalar_lea.hbm %s2353_s5, 16 }
 0x284   :  { %p1616_p5 = scmp.ne.s32.totalorder %s2353_s5, %s1615_s0  ;;  %p1619_p6 = scmp.lt.u32.totalorder %s1615_s0, %s2353_s5 }
 0x286   :  { %p1621_p7 = pnand %p1619_p6, %p1616_p5 }
 0x288   :  { %1624 = shalt.err (!%p1621_p7)
}
 0x289   :  { %1275 = dma.vmem_to_hbm [thread:$0]  %s1273_s16, 16, %s2353_s5, [#allocation5]  }
 0x28a   :  { %1625 = dma.done.wait [#allocation5], 16  }
 0x28b   :  { %1626 = vsyncadd [#allocation5], 4294967280 }
 0x28c   :  { %1279 = vsyncpa [#allocation5], 1 }

</bundles_post_ra>
